<compile_context>
chip_gen: v7x
topology: tpu7x:2x2x1
jax: 0.10.0
libtpu: 0.0.40
codegen_flags: <defaults>
</compile_context>

<pallas_src>
import functools

import jax
import jax.numpy as jnp
from jax import lax
from jax.experimental import pallas as pl
from jax.experimental.pallas import tpu as pltpu

LANE = 128
SUBLANE = 8


def _silu(v):
    return v * jax.nn.sigmoid(v)


def _round_up(n, m):
    return ((n + m - 1) // m) * m


def _pad_axis(a, axis, target):
    pad = target - a.shape[axis]
    if pad == 0:
        return a
    widths = [(0, 0)] * a.ndim
    widths[axis] = (0, pad)
    return jnp.pad(a, widths)


def bresblock_kernel(x_ref, w1_ref, b1_ref, w2_ref, b2_ref, w3_ref,
                     pre_act_ref, pre_c1_ref, pre_c2_ref, pre_c3_ref,
                     id_scale_ref, out_ref,
                     pad0_ref, pad1_ref, pad2_ref,
                     *, H, W, Wp, Cmid_p):
    HW = H * W
    n_flat = H * Wp
    f32 = jnp.float32

    xf = x_ref[0].astype(f32)                                    # (HW, Cin)

    # ---- pre-activation + conv1 (1x1 == MXU matmul) + silu + pre-conv2 bias ----
    r = _silu(xf + pre_act_ref[...].astype(f32))
    lhs1 = (r + pre_c1_ref[...].astype(f32)).astype(w1_ref.dtype)
    y1 = jnp.dot(lhs1, w1_ref[...], preferred_element_type=f32)
    y1 = _silu(y1 + b1_ref[...].astype(f32)) + pre_c2_ref[...].astype(f32)
    a3 = y1.astype(pad0_ref.dtype).reshape(H, W, Cmid_p)         # conv2 input (interior)

    # ---- three column-pre-shifted, zero-padded conv2 inputs in VMEM ----
    # Invariant: pad{d}[i, j, :] == conv2_input[i-1, j+d-1, :] (zero outside the image)
    # for all j < W, so every 3x3 tap (dh, dw) reads an aligned row slab of pad{dw}.
    # Only the thin zero borders are refreshed; the interior is rewritten every step.
    zrow = jnp.zeros((Wp, Cmid_p), pad0_ref.dtype)
    zcol = jnp.zeros((H, 1, Cmid_p), pad0_ref.dtype)
    for ref in (pad0_ref, pad1_ref, pad2_ref):
        ref[0] = zrow                                  # top zero padding (image row -1)
        ref[H + 1] = zrow                              # bottom zero padding (image row H)
    pad0_ref[1:H + 1, 0:1, :] = zcol                   # left zero padding (image col -1)
    pad0_ref[1:H + 1, 1:W + 1, :] = a3
    pad1_ref[1:H + 1, 0:W, :] = a3                     # aligned, unshifted copy
    pad2_ref[1:H + 1, 0:W - 1, :] = a3[:, 1:, :]
    pad2_ref[1:H + 1, W - 1:W, :] = zcol               # right zero padding (image col W)
    # Columns >= W (sublane-alignment slack) may hold stale data; they only ever feed
    # accumulator columns that are sliced away below, so they need no re-zeroing.

    # ---- 3x3 conv: 9 aligned row-slab MXU matmuls, fp32 accumulation ----
    acc = None
    for dw, pad_d in enumerate((pad0_ref, pad1_ref, pad2_ref)):
        for dh in range(3):
            slab = pad_d[dh:dh + H].reshape(n_flat, Cmid_p)      # layout-compatible (Wp % 8 == 0)
            z = jnp.dot(slab, w2_ref[dh, dw], preferred_element_type=f32)
            acc = z if acc is None else acc + z

    # keep only the interior columns [0, W) of the width-padded accumulator
    y2 = acc.reshape(H, Wp, Cmid_p)[:, :W, :].reshape(HW, Cmid_p)
    y2 = _silu(y2 + b2_ref[...].astype(f32)) + pre_c3_ref[...].astype(f32)

    # ---- conv3 (1x1, no bias) + scaled identity ----
    y3 = jnp.dot(y2.astype(w3_ref.dtype), w3_ref[...], preferred_element_type=f32)
    out = xf * id_scale_ref[...].astype(f32) + y3
    out_ref[0] = out.astype(out_ref.dtype)


@jax.jit
def bresblock_forward(x, w1, b1, w2, b2, w3,
                      pre_act_b, pre_c1_b, pre_c2_b, pre_c3_b, id_scale):
    """x: (N,H,W,Cin) NHWC.  w1:(Cin,Cmid), w2:(3,3,Cmid,Cmid) HWIO, w3:(Cmid,Cin).
    Per-channel params: (1, C)."""
    N, H, W, Cin = x.shape
    Cmid = w1.shape[1]
    Cmid_p = _round_up(Cmid, LANE)
    Wp = _round_up(W + 2, SUBLANE)
    HW = H * W
    dt = x.dtype

    # Lane-pad only the small weights / mid-channel params host-side; padded channels
    # are zero-filled so they stay exactly zero through the whole block.
    w1p = _pad_axis(w1, 1, Cmid_p).astype(dt)
    w2p = _pad_axis(_pad_axis(w2, 2, Cmid_p), 3, Cmid_p).astype(dt)
    w3p = _pad_axis(w3, 0, Cmid_p).astype(dt)
    b1p = _pad_axis(b1, 1, Cmid_p).astype(dt)
    b2p = _pad_axis(b2, 1, Cmid_p).astype(dt)
    pre_c2p = _pad_axis(pre_c2_b, 1, Cmid_p).astype(dt)
    pre_c3p = _pad_axis(pre_c3_b, 1, Cmid_p).astype(dt)
    pre_act = pre_act_b.astype(dt)
    pre_c1 = pre_c1_b.astype(dt)
    id_s = id_scale.astype(dt)

    # Free metadata-only reshape: (N, H*W, Cin) view of the activations (no copy, no padding).
    x2d = x.reshape(N, HW, Cin)

    kernel = functools.partial(bresblock_kernel, H=H, W=W, Wp=Wp, Cmid_p=Cmid_p)

    grid_spec = pltpu.PrefetchScalarGridSpec(
        num_scalar_prefetch=0,
        grid=(N,),
        in_specs=[
            pl.BlockSpec((1, HW, Cin), lambda n: (n, 0, 0)),               # x (unpadded)
            pl.BlockSpec((Cin, Cmid_p), lambda n: (0, 0)),                 # w1 (resident)
            pl.BlockSpec((1, Cmid_p), lambda n: (0, 0)),                   # b1
            pl.BlockSpec((3, 3, Cmid_p, Cmid_p), lambda n: (0, 0, 0, 0)),  # w2 (resident)
            pl.BlockSpec((1, Cmid_p), lambda n: (0, 0)),                   # b2
            pl.BlockSpec((Cmid_p, Cin), lambda n: (0, 0)),                 # w3 (resident)
            pl.BlockSpec((1, Cin), lambda n: (0, 0)),                      # pre_act_bias
            pl.BlockSpec((1, Cin), lambda n: (0, 0)),                      # pre_conv1_bias
            pl.BlockSpec((1, Cmid_p), lambda n: (0, 0)),                   # pre_conv2_bias
            pl.BlockSpec((1, Cmid_p), lambda n: (0, 0)),                   # pre_conv3_bias
            pl.BlockSpec((1, Cin), lambda n: (0, 0)),                      # id_scale
        ],
        out_specs=pl.BlockSpec((1, HW, Cin), lambda n: (n, 0, 0)),
        scratch_shapes=[pltpu.VMEM((H + 2, Wp, Cmid_p), dt) for _ in range(3)],
    )

    out2d = pl.pallas_call(
        kernel,
        out_shape=jax.ShapeDtypeStruct((N, HW, Cin), dt),
        grid_spec=grid_spec,
        compiler_params=pltpu.CompilerParams(
            dimension_semantics=("parallel",),
            vmem_limit_bytes=32 * 1024 * 1024),
    )(x2d, w1p, b1p, w2p, b2p, w3p,
      pre_act, pre_c1, pre_c2p, pre_c3p, id_s)

    return out2d.reshape(N, H, W, Cin)


def bresblock_reference(x, w1, b1, w2, b2, w3,
                        pre_act_b, pre_c1_b, pre_c2_b, pre_c3_b, id_scale):
    hp = lax.Precision.HIGHEST
    r = jax.nn.silu(x + pre_act_b)
    r = jnp.einsum('nhwc,cm->nhwm', r + pre_c1_b, w1, precision=hp) + b1
    r = jax.nn.silu(r)
    r = lax.conv_general_dilated(r + pre_c2_b, w2, (1, 1), ((1, 1), (1, 1)),
                                 dimension_numbers=('NHWC', 'HWIO', 'NHWC'),
                                 precision=hp) + b2
    r = jax.nn.silu(r)
    r = jnp.einsum('nhwc,cm->nhwm', r + pre_c3_b, w3, precision=hp)
    return x * id_scale + r


if __name__ == "__main__":
    N, H, W, Cin, Cmid = 2, 16, 16, 4, 8

    key = jax.random.PRNGKey(0)
    ks = jax.random.split(key, 11)
    x = jax.random.normal(ks[0], (N, H, W, Cin), jnp.float32)
    w1 = jax.random.normal(ks[1], (Cin, Cmid), jnp.float32) * 0.2
    b1 = jax.random.normal(ks[2], (1, Cmid), jnp.float32) * 0.1
    w2 = jax.random.normal(ks[3], (3, 3, Cmid, Cmid), jnp.float32) * 0.1   # HWIO
    b2 = jax.random.normal(ks[4], (1, Cmid), jnp.float32) * 0.1
    # conv3 is zero-initialized in the module; use non-zero weights to exercise the path.
    w3 = jax.random.normal(ks[5], (Cmid, Cin), jnp.float32) * 0.2
    pre_act_b = jax.random.normal(ks[6], (1, Cin), jnp.float32) * 0.1
    pre_c1_b = jax.random.normal(ks[7], (1, Cin), jnp.float32) * 0.1
    pre_c2_b = jax.random.normal(ks[8], (1, Cmid), jnp.float32) * 0.1
    pre_c3_b = jax.random.normal(ks[9], (1, Cmid), jnp.float32) * 0.1
    id_scale = 1.0 + jax.random.normal(ks[10], (1, Cin), jnp.float32) * 0.1

    args = (x, w1, b1, w2, b2, w3, pre_act_b, pre_c1_b, pre_c2_b, pre_c3_b, id_scale)

    out = bresblock_forward(*args)
    jax.block_until_ready(out)

    ref = bresblock_reference(*args)
    assert out.shape == ref.shape
    err = float(jnp.max(jnp.abs(out - ref)))
    assert jnp.allclose(out, ref, atol=1e-3, rtol=1e-3), err

    print("KERNEL_OK")
</pallas_src>

<mosaic_0001>
module attributes {stable_mosaic.version = 11 : i64} {
  func.func @bresblock_kernel(%arg0: i32, %arg1: memref<1x256x4xf32, #tpu.memory_space<vmem>>, %arg2: memref<4x128xf32, #tpu.memory_space<vmem>>, %arg3: memref<1x128xf32, #tpu.memory_space<vmem>>, %arg4: memref<3x3x128x128xf32, #tpu.memory_space<vmem>>, %arg5: memref<1x128xf32, #tpu.memory_space<vmem>>, %arg6: memref<128x4xf32, #tpu.memory_space<vmem>>, %arg7: memref<1x4xf32, #tpu.memory_space<vmem>>, %arg8: memref<1x4xf32, #tpu.memory_space<vmem>>, %arg9: memref<1x128xf32, #tpu.memory_space<vmem>>, %arg10: memref<1x128xf32, #tpu.memory_space<vmem>>, %arg11: memref<1x4xf32, #tpu.memory_space<vmem>>, %arg12: memref<1x256x4xf32, #tpu.memory_space<vmem>>, %arg13: memref<18x24x128xf32, #tpu.memory_space<vmem>>, %arg14: memref<18x24x128xf32, #tpu.memory_space<vmem>>, %arg15: memref<18x24x128xf32, #tpu.memory_space<vmem>>) attributes {dimension_semantics = [#tpu.dimension_semantics<parallel>], iteration_bounds = array<i64: 2>, scalar_prefetch = 0 : i64, scratch_operands = 3 : i64, tpu.core_type = #tpu.core_type<tc>, window_params = [{transform_indices = @transform_0, window_bounds = array<i64: 1, 256, 4>}, {pipeline_mode = #tpu.pipeline_mode<synchronous>, transform_indices = @transform_1, window_bounds = array<i64: 4, 128>}, {pipeline_mode = #tpu.pipeline_mode<synchronous>, transform_indices = @transform_2, window_bounds = array<i64: 1, 128>}, {pipeline_mode = #tpu.pipeline_mode<synchronous>, transform_indices = @transform_3, window_bounds = array<i64: 3, 3, 128, 128>}, {pipeline_mode = #tpu.pipeline_mode<synchronous>, transform_indices = @transform_4, window_bounds = array<i64: 1, 128>}, {pipeline_mode = #tpu.pipeline_mode<synchronous>, transform_indices = @transform_5, window_bounds = array<i64: 128, 4>}, {pipeline_mode = #tpu.pipeline_mode<synchronous>, transform_indices = @transform_6, window_bounds = array<i64: 1, 4>}, {pipeline_mode = #tpu.pipeline_mode<synchronous>, transform_indices = @transform_7, window_bounds = array<i64: 1, 4>}, {pipeline_mode = #tpu.pipeline_mode<synchronous>, transform_indices = @transform_8, window_bounds = array<i64: 1, 128>}, {pipeline_mode = #tpu.pipeline_mode<synchronous>, transform_indices = @transform_9, window_bounds = array<i64: 1, 128>}, {pipeline_mode = #tpu.pipeline_mode<synchronous>, transform_indices = @transform_10, window_bounds = array<i64: 1, 4>}, {transform_indices = @transform_11, window_bounds = array<i64: 1, 256, 4>}]} {
    %c0 = arith.constant 0 : index
    %c0_0 = arith.constant 0 : index
    %c0_1 = arith.constant 0 : index
    %0 = vector.load %arg1[%c0, %c0_0, %c0_1] : memref<1x256x4xf32, #tpu.memory_space<vmem>>, vector<1x256x4xf32>
    %1 = vector.shape_cast %0 : vector<1x256x4xf32> to vector<256x4xf32>
    %c0_2 = arith.constant 0 : index
    %c0_3 = arith.constant 0 : index
    %2 = vector.load %arg7[%c0_2, %c0_3] : memref<1x4xf32, #tpu.memory_space<vmem>>, vector<1x4xf32>
    %3 = vector.broadcast %2 : vector<1x4xf32> to vector<256x4xf32>
    %4 = arith.addf %1, %3 : vector<256x4xf32>
    %5 = arith.negf %4 : vector<256x4xf32>
    %6 = math.exp %5 : vector<256x4xf32>
    %cst = arith.constant 1.000000e+00 : f32
    %7 = vector.broadcast %cst : f32 to vector<256x4xf32>
    %8 = arith.addf %7, %6 : vector<256x4xf32>
    %9 = arith.divf %7, %8 : vector<256x4xf32>
    %10 = arith.mulf %4, %9 : vector<256x4xf32>
    %c0_4 = arith.constant 0 : index
    %c0_5 = arith.constant 0 : index
    %11 = vector.load %arg8[%c0_4, %c0_5] : memref<1x4xf32, #tpu.memory_space<vmem>>, vector<1x4xf32>
    %12 = vector.broadcast %11 : vector<1x4xf32> to vector<256x4xf32>
    %13 = arith.addf %10, %12 : vector<256x4xf32>
    %c0_6 = arith.constant 0 : index
    %c0_7 = arith.constant 0 : index
    %14 = vector.load %arg2[%c0_6, %c0_7] : memref<4x128xf32, #tpu.memory_space<vmem>>, vector<4x128xf32>
    %cst_8 = arith.constant dense<0.000000e+00> : vector<256x128xf32>
    %15 = tpu.matmul %13, %14, %cst_8 {dimension_numbers = #tpu.dot_dimension_numbers<[1], [0], [0], [1], [0, 0, 1, 1], [], []>} : vector<256x4xf32>, vector<4x128xf32>, vector<256x128xf32> -> vector<256x128xf32>
    %c0_9 = arith.constant 0 : index
    %c0_10 = arith.constant 0 : index
    %16 = vector.load %arg3[%c0_9, %c0_10] : memref<1x128xf32, #tpu.memory_space<vmem>>, vector<1x128xf32>
    %17 = vector.broadcast %16 : vector<1x128xf32> to vector<256x128xf32>
    %18 = arith.addf %15, %17 : vector<256x128xf32>
    %19 = arith.negf %18 : vector<256x128xf32>
    %20 = math.exp %19 : vector<256x128xf32>
    %cst_11 = arith.constant 1.000000e+00 : f32
    %21 = vector.broadcast %cst_11 : f32 to vector<256x128xf32>
    %22 = arith.addf %21, %20 : vector<256x128xf32>
    %23 = arith.divf %21, %22 : vector<256x128xf32>
    %24 = arith.mulf %18, %23 : vector<256x128xf32>
    %c0_12 = arith.constant 0 : index
    %c0_13 = arith.constant 0 : index
    %25 = vector.load %arg9[%c0_12, %c0_13] : memref<1x128xf32, #tpu.memory_space<vmem>>, vector<1x128xf32>
    %26 = vector.broadcast %25 : vector<1x128xf32> to vector<256x128xf32>
    %27 = arith.addf %24, %26 : vector<256x128xf32>
    %28 = vector.shape_cast %27 : vector<256x128xf32> to vector<16x16x128xf32>
    %cst_14 = arith.constant 0.000000e+00 : f32
    %29 = vector.broadcast %cst_14 : f32 to vector<24x128xf32>
    %cst_15 = arith.constant 0.000000e+00 : f32
    %30 = vector.broadcast %cst_15 : f32 to vector<16x1x128xf32>
    %c0_16 = arith.constant 0 : index
    %c0_17 = arith.constant 0 : index
    %c0_18 = arith.constant 0 : index
    %31 = vector.load %arg13[%c0_16, %c0_17, %c0_18] : memref<18x24x128xf32, #tpu.memory_space<vmem>>, vector<1x24x128xf32>
    %32 = vector.shape_cast %31 : vector<1x24x128xf32> to vector<24x128xf32>
    %33 = vector.shape_cast %29 : vector<24x128xf32> to vector<1x24x128xf32>
    tpu.vector_store %arg13[%c0_16, %c0_17, %c0_18], %33 {strides = array<i32>} : memref<18x24x128xf32, #tpu.memory_space<vmem>>, vector<1x24x128xf32>,
    %c17 = arith.constant 17 : index
    %c0_19 = arith.constant 0 : index
    %c0_20 = arith.constant 0 : index
    %34 = vector.load %arg13[%c17, %c0_19, %c0_20] : memref<18x24x128xf32, #tpu.memory_space<vmem>>, vector<1x24x128xf32>
    %35 = vector.shape_cast %34 : vector<1x24x128xf32> to vector<24x128xf32>
    %36 = vector.shape_cast %29 : vector<24x128xf32> to vector<1x24x128xf32>
    tpu.vector_store %arg13[%c17, %c0_19, %c0_20], %36 {strides = array<i32>} : memref<18x24x128xf32, #tpu.memory_space<vmem>>, vector<1x24x128xf32>,
    %c0_21 = arith.constant 0 : index
    %c0_22 = arith.constant 0 : index
    %c0_23 = arith.constant 0 : index
    %37 = vector.load %arg14[%c0_21, %c0_22, %c0_23] : memref<18x24x128xf32, #tpu.memory_space<vmem>>, vector<1x24x128xf32>
    %38 = vector.shape_cast %37 : vector<1x24x128xf32> to vector<24x128xf32>
    %39 = vector.shape_cast %29 : vector<24x128xf32> to vector<1x24x128xf32>
    tpu.vector_store %arg14[%c0_21, %c0_22, %c0_23], %39 {strides = array<i32>} : memref<18x24x128xf32, #tpu.memory_space<vmem>>, vector<1x24x128xf32>,
    %c17_24 = arith.constant 17 : index
    %c0_25 = arith.constant 0 : index
    %c0_26 = arith.constant 0 : index
    %40 = vector.load %arg14[%c17_24, %c0_25, %c0_26] : memref<18x24x128xf32, #tpu.memory_space<vmem>>, vector<1x24x128xf32>
    %41 = vector.shape_cast %40 : vector<1x24x128xf32> to vector<24x128xf32>
    %42 = vector.shape_cast %29 : vector<24x128xf32> to vector<1x24x128xf32>
    tpu.vector_store %arg14[%c17_24, %c0_25, %c0_26], %42 {strides = array<i32>} : memref<18x24x128xf32, #tpu.memory_space<vmem>>, vector<1x24x128xf32>,
    %c0_27 = arith.constant 0 : index
    %c0_28 = arith.constant 0 : index
    %c0_29 = arith.constant 0 : index
    %43 = vector.load %arg15[%c0_27, %c0_28, %c0_29] : memref<18x24x128xf32, #tpu.memory_space<vmem>>, vector<1x24x128xf32>
    %44 = vector.shape_cast %43 : vector<1x24x128xf32> to vector<24x128xf32>
    %45 = vector.shape_cast %29 : vector<24x128xf32> to vector<1x24x128xf32>
    tpu.vector_store %arg15[%c0_27, %c0_28, %c0_29], %45 {strides = array<i32>} : memref<18x24x128xf32, #tpu.memory_space<vmem>>, vector<1x24x128xf32>,
    %c17_30 = arith.constant 17 : index
    %c0_31 = arith.constant 0 : index
    %c0_32 = arith.constant 0 : index
    %46 = vector.load %arg15[%c17_30, %c0_31, %c0_32] : memref<18x24x128xf32, #tpu.memory_space<vmem>>, vector<1x24x128xf32>
    %47 = vector.shape_cast %46 : vector<1x24x128xf32> to vector<24x128xf32>
    %48 = vector.shape_cast %29 : vector<24x128xf32> to vector<1x24x128xf32>
    tpu.vector_store %arg15[%c17_30, %c0_31, %c0_32], %48 {strides = array<i32>} : memref<18x24x128xf32, #tpu.memory_space<vmem>>, vector<1x24x128xf32>,
    %c1 = arith.constant 1 : index
    %c0_33 = arith.constant 0 : index
    %c0_34 = arith.constant 0 : index
    %49 = vector.load %arg13[%c1, %c0_33, %c0_34] : memref<18x24x128xf32, #tpu.memory_space<vmem>>, vector<16x1x128xf32>
    tpu.vector_store %arg13[%c1, %c0_33, %c0_34], %30 {strides = array<i32>} : memref<18x24x128xf32, #tpu.memory_space<vmem>>, vector<16x1x128xf32>,
    %c1_35 = arith.constant 1 : index
    %c1_36 = arith.constant 1 : index
    %c0_37 = arith.constant 0 : index
    %50 = vector.load %arg13[%c1_35, %c1_36, %c0_37] : memref<18x24x128xf32, #tpu.memory_space<vmem>>, vector<16x16x128xf32>
    tpu.vector_store %arg13[%c1_35, %c1_36, %c0_37], %28 {strides = array<i32>} : memref<18x24x128xf32, #tpu.memory_space<vmem>>, vector<16x16x128xf32>,
    %c1_38 = arith.constant 1 : index
    %c0_39 = arith.constant 0 : index
    %c0_40 = arith.constant 0 : index
    %51 = vector.load %arg14[%c1_38, %c0_39, %c0_40] : memref<18x24x128xf32, #tpu.memory_space<vmem>>, vector<16x16x128xf32>
    tpu.vector_store %arg14[%c1_38, %c0_39, %c0_40], %28 {strides = array<i32>} : memref<18x24x128xf32, #tpu.memory_space<vmem>>, vector<16x16x128xf32>,
    %52 = vector.extract_strided_slice %28 {offsets = [0, 1, 0], sizes = [16, 15, 128], strides = [1, 1, 1]} : vector<16x16x128xf32> to vector<16x15x128xf32>
    %c1_41 = arith.constant 1 : index
    %c0_42 = arith.constant 0 : index
    %c0_43 = arith.constant 0 : index
    %53 = vector.load %arg15[%c1_41, %c0_42, %c0_43] : memref<18x24x128xf32, #tpu.memory_space<vmem>>, vector<16x15x128xf32>
    tpu.vector_store %arg15[%c1_41, %c0_42, %c0_43], %52 {strides = array<i32>} : memref<18x24x128xf32, #tpu.memory_space<vmem>>, vector<16x15x128xf32>,
    %c1_44 = arith.constant 1 : index
    %c15 = arith.constant 15 : index
    %c0_45 = arith.constant 0 : index
    %54 = vector.load %arg15[%c1_44, %c15, %c0_45] : memref<18x24x128xf32, #tpu.memory_space<vmem>>, vector<16x1x128xf32>
    tpu.vector_store %arg15[%c1_44, %c15, %c0_45], %30 {strides = array<i32>} : memref<18x24x128xf32, #tpu.memory_space<vmem>>, vector<16x1x128xf32>,
    %c0_46 = arith.constant 0 : index
    %c0_47 = arith.constant 0 : index
    %c0_48 = arith.constant 0 : index
    %55 = vector.load %arg13[%c0_46, %c0_47, %c0_48] : memref<18x24x128xf32, #tpu.memory_space<vmem>>, vector<16x24x128xf32>
    %56 = vector.shape_cast %55 : vector<16x24x128xf32> to vector<384x128xf32>
    %c0_49 = arith.constant 0 : index
    %c0_50 = arith.constant 0 : index
    %c0_51 = arith.constant 0 : index
    %c0_52 = arith.constant 0 : index
    %57 = vector.load %arg4[%c0_49, %c0_50, %c0_51, %c0_52] : memref<3x3x128x128xf32, #tpu.memory_space<vmem>>, vector<1x1x128x128xf32>
    %58 = vector.shape_cast %57 : vector<1x1x128x128xf32> to vector<128x128xf32>
    %cst_53 = arith.constant dense<0.000000e+00> : vector<384x128xf32>
    %59 = tpu.matmul %56, %58, %cst_53 {dimension_numbers = #tpu.dot_dimension_numbers<[1], [0], [0], [1], [0, 0, 1, 1], [], []>} : vector<384x128xf32>, vector<128x128xf32>, vector<384x128xf32> -> vector<384x128xf32>
    %c1_54 = arith.constant 1 : index
    %c0_55 = arith.constant 0 : index
    %c0_56 = arith.constant 0 : index
    %60 = vector.load %arg13[%c1_54, %c0_55, %c0_56] : memref<18x24x128xf32, #tpu.memory_space<vmem>>, vector<16x24x128xf32>
    %61 = vector.shape_cast %60 : vector<16x24x128xf32> to vector<384x128xf32>
    %c1_57 = arith.constant 1 : index
    %c0_58 = arith.constant 0 : index
    %c0_59 = arith.constant 0 : index
    %c0_60 = arith.constant 0 : index
    %62 = vector.load %arg4[%c1_57, %c0_58, %c0_59, %c0_60] : memref<3x3x128x128xf32, #tpu.memory_space<vmem>>, vector<1x1x128x128xf32>
    %63 = vector.shape_cast %62 : vector<1x1x128x128xf32> to vector<128x128xf32>
    %cst_61 = arith.constant dense<0.000000e+00> : vector<384x128xf32>
    %64 = tpu.matmul %61, %63, %cst_61 {dimension_numbers = #tpu.dot_dimension_numbers<[1], [0], [0], [1], [0, 0, 1, 1], [], []>} : vector<384x128xf32>, vector<128x128xf32>, vector<384x128xf32> -> vector<384x128xf32>
    %65 = arith.addf %59, %64 : vector<384x128xf32>
    %c2 = arith.constant 2 : index
    %c0_62 = arith.constant 0 : index
    %c0_63 = arith.constant 0 : index
    %66 = vector.load %arg13[%c2, %c0_62, %c0_63] : memref<18x24x128xf32, #tpu.memory_space<vmem>>, vector<16x24x128xf32>
    %67 = vector.shape_cast %66 : vector<16x24x128xf32> to vector<384x128xf32>
    %c2_64 = arith.constant 2 : index
    %c0_65 = arith.constant 0 : index
    %c0_66 = arith.constant 0 : index
    %c0_67 = arith.constant 0 : index
    %68 = vector.load %arg4[%c2_64, %c0_65, %c0_66, %c0_67] : memref<3x3x128x128xf32, #tpu.memory_space<vmem>>, vector<1x1x128x128xf32>
    %69 = vector.shape_cast %68 : vector<1x1x128x128xf32> to vector<128x128xf32>
    %cst_68 = arith.constant dense<0.000000e+00> : vector<384x128xf32>
    %70 = tpu.matmul %67, %69, %cst_68 {dimension_numbers = #tpu.dot_dimension_numbers<[1], [0], [0], [1], [0, 0, 1, 1], [], []>} : vector<384x128xf32>, vector<128x128xf32>, vector<384x128xf32> -> vector<384x128xf32>
    %71 = arith.addf %65, %70 : vector<384x128xf32>
    %c0_69 = arith.constant 0 : index
    %c0_70 = arith.constant 0 : index
    %c0_71 = arith.constant 0 : index
    %72 = vector.load %arg14[%c0_69, %c0_70, %c0_71] : memref<18x24x128xf32, #tpu.memory_space<vmem>>, vector<16x24x128xf32>
    %73 = vector.shape_cast %72 : vector<16x24x128xf32> to vector<384x128xf32>
    %c0_72 = arith.constant 0 : index
    %c1_73 = arith.constant 1 : index
    %c0_74 = arith.constant 0 : index
    %c0_75 = arith.constant 0 : index
    %74 = vector.load %arg4[%c0_72, %c1_73, %c0_74, %c0_75] : memref<3x3x128x128xf32, #tpu.memory_space<vmem>>, vector<1x1x128x128xf32>
    %75 = vector.shape_cast %74 : vector<1x1x128x128xf32> to vector<128x128xf32>
    %cst_76 = arith.constant dense<0.000000e+00> : vector<384x128xf32>
    %76 = tpu.matmul %73, %75, %cst_76 {dimension_numbers = #tpu.dot_dimension_numbers<[1], [0], [0], [1], [0, 0, 1, 1], [], []>} : vector<384x128xf32>, vector<128x128xf32>, vector<384x128xf32> -> vector<384x128xf32>
    %77 = arith.addf %71, %76 : vector<384x128xf32>
    %c1_77 = arith.constant 1 : index
    %c0_78 = arith.constant 0 : index
    %c0_79 = arith.constant 0 : index
    %78 = vector.load %arg14[%c1_77, %c0_78, %c0_79] : memref<18x24x128xf32, #tpu.memory_space<vmem>>, vector<16x24x128xf32>
    %79 = vector.shape_cast %78 : vector<16x24x128xf32> to vector<384x128xf32>
    %c1_80 = arith.constant 1 : index
    %c1_81 = arith.constant 1 : index
    %c0_82 = arith.constant 0 : index
    %c0_83 = arith.constant 0 : index
    %80 = vector.load %arg4[%c1_80, %c1_81, %c0_82, %c0_83] : memref<3x3x128x128xf32, #tpu.memory_space<vmem>>, vector<1x1x128x128xf32>
    %81 = vector.shape_cast %80 : vector<1x1x128x128xf32> to vector<128x128xf32>
    %cst_84 = arith.constant dense<0.000000e+00> : vector<384x128xf32>
    %82 = tpu.matmul %79, %81, %cst_84 {dimension_numbers = #tpu.dot_dimension_numbers<[1], [0], [0], [1], [0, 0, 1, 1], [], []>} : vector<384x128xf32>, vector<128x128xf32>, vector<384x128xf32> -> vector<384x128xf32>
    %83 = arith.addf %77, %82 : vector<384x128xf32>
    %c2_85 = arith.constant 2 : index
    %c0_86 = arith.constant 0 : index
    %c0_87 = arith.constant 0 : index
    %84 = vector.load %arg14[%c2_85, %c0_86, %c0_87] : memref<18x24x128xf32, #tpu.memory_space<vmem>>, vector<16x24x128xf32>
    %85 = vector.shape_cast %84 : vector<16x24x128xf32> to vector<384x128xf32>
    %c2_88 = arith.constant 2 : index
    %c1_89 = arith.constant 1 : index
    %c0_90 = arith.constant 0 : index
    %c0_91 = arith.constant 0 : index
    %86 = vector.load %arg4[%c2_88, %c1_89, %c0_90, %c0_91] : memref<3x3x128x128xf32, #tpu.memory_space<vmem>>, vector<1x1x128x128xf32>
    %87 = vector.shape_cast %86 : vector<1x1x128x128xf32> to vector<128x128xf32>
    %cst_92 = arith.constant dense<0.000000e+00> : vector<384x128xf32>
    %88 = tpu.matmul %85, %87, %cst_92 {dimension_numbers = #tpu.dot_dimension_numbers<[1], [0], [0], [1], [0, 0, 1, 1], [], []>} : vector<384x128xf32>, vector<128x128xf32>, vector<384x128xf32> -> vector<384x128xf32>
    %89 = arith.addf %83, %88 : vector<384x128xf32>
    %c0_93 = arith.constant 0 : index
    %c0_94 = arith.constant 0 : index
    %c0_95 = arith.constant 0 : index
    %90 = vector.load %arg15[%c0_93, %c0_94, %c0_95] : memref<18x24x128xf32, #tpu.memory_space<vmem>>, vector<16x24x128xf32>
    %91 = vector.shape_cast %90 : vector<16x24x128xf32> to vector<384x128xf32>
    %c0_96 = arith.constant 0 : index
    %c2_97 = arith.constant 2 : index
    %c0_98 = arith.constant 0 : index
    %c0_99 = arith.constant 0 : index
    %92 = vector.load %arg4[%c0_96, %c2_97, %c0_98, %c0_99] : memref<3x3x128x128xf32, #tpu.memory_space<vmem>>, vector<1x1x128x128xf32>
    %93 = vector.shape_cast %92 : vector<1x1x128x128xf32> to vector<128x128xf32>
    %cst_100 = arith.constant dense<0.000000e+00> : vector<384x128xf32>
    %94 = tpu.matmul %91, %93, %cst_100 {dimension_numbers = #tpu.dot_dimension_numbers<[1], [0], [0], [1], [0, 0, 1, 1], [], []>} : vector<384x128xf32>, vector<128x128xf32>, vector<384x128xf32> -> vector<384x128xf32>
    %95 = arith.addf %89, %94 : vector<384x128xf32>
    %c1_101 = arith.constant 1 : index
    %c0_102 = arith.constant 0 : index
    %c0_103 = arith.constant 0 : index
    %96 = vector.load %arg15[%c1_101, %c0_102, %c0_103] : memref<18x24x128xf32, #tpu.memory_space<vmem>>, vector<16x24x128xf32>
    %97 = vector.shape_cast %96 : vector<16x24x128xf32> to vector<384x128xf32>
    %c1_104 = arith.constant 1 : index
    %c2_105 = arith.constant 2 : index
    %c0_106 = arith.constant 0 : index
    %c0_107 = arith.constant 0 : index
    %98 = vector.load %arg4[%c1_104, %c2_105, %c0_106, %c0_107] : memref<3x3x128x128xf32, #tpu.memory_space<vmem>>, vector<1x1x128x128xf32>
    %99 = vector.shape_cast %98 : vector<1x1x128x128xf32> to vector<128x128xf32>
    %cst_108 = arith.constant dense<0.000000e+00> : vector<384x128xf32>
    %100 = tpu.matmul %97, %99, %cst_108 {dimension_numbers = #tpu.dot_dimension_numbers<[1], [0], [0], [1], [0, 0, 1, 1], [], []>} : vector<384x128xf32>, vector<128x128xf32>, vector<384x128xf32> -> vector<384x128xf32>
    %101 = arith.addf %95, %100 : vector<384x128xf32>
    %c2_109 = arith.constant 2 : index
    %c0_110 = arith.constant 0 : index
    %c0_111 = arith.constant 0 : index
    %102 = vector.load %arg15[%c2_109, %c0_110, %c0_111] : memref<18x24x128xf32, #tpu.memory_space<vmem>>, vector<16x24x128xf32>
    %103 = vector.shape_cast %102 : vector<16x24x128xf32> to vector<384x128xf32>
    %c2_112 = arith.constant 2 : index
    %c2_113 = arith.constant 2 : index
    %c0_114 = arith.constant 0 : index
    %c0_115 = arith.constant 0 : index
    %104 = vector.load %arg4[%c2_112, %c2_113, %c0_114, %c0_115] : memref<3x3x128x128xf32, #tpu.memory_space<vmem>>, vector<1x1x128x128xf32>
    %105 = vector.shape_cast %104 : vector<1x1x128x128xf32> to vector<128x128xf32>
    %cst_116 = arith.constant dense<0.000000e+00> : vector<384x128xf32>
    %106 = tpu.matmul %103, %105, %cst_116 {dimension_numbers = #tpu.dot_dimension_numbers<[1], [0], [0], [1], [0, 0, 1, 1], [], []>} : vector<384x128xf32>, vector<128x128xf32>, vector<384x128xf32> -> vector<384x128xf32>
    %107 = arith.addf %101, %106 : vector<384x128xf32>
    %108 = vector.shape_cast %107 : vector<384x128xf32> to vector<16x24x128xf32>
    %109 = vector.extract_strided_slice %108 {offsets = [0, 0, 0], sizes = [16, 16, 128], strides = [1, 1, 1]} : vector<16x24x128xf32> to vector<16x16x128xf32>
    %110 = vector.shape_cast %109 : vector<16x16x128xf32> to vector<256x128xf32>
    %c0_117 = arith.constant 0 : index
    %c0_118 = arith.constant 0 : index
    %111 = vector.load %arg5[%c0_117, %c0_118] : memref<1x128xf32, #tpu.memory_space<vmem>>, vector<1x128xf32>
    %112 = vector.broadcast %111 : vector<1x128xf32> to vector<256x128xf32>
    %113 = arith.addf %110, %112 : vector<256x128xf32>
    %114 = arith.negf %113 : vector<256x128xf32>
    %115 = math.exp %114 : vector<256x128xf32>
    %cst_119 = arith.constant 1.000000e+00 : f32
    %116 = vector.broadcast %cst_119 : f32 to vector<256x128xf32>
    %117 = arith.addf %116, %115 : vector<256x128xf32>
    %118 = arith.divf %116, %117 : vector<256x128xf32>
    %119 = arith.mulf %113, %118 : vector<256x128xf32>
    %c0_120 = arith.constant 0 : index
    %c0_121 = arith.constant 0 : index
    %120 = vector.load %arg10[%c0_120, %c0_121] : memref<1x128xf32, #tpu.memory_space<vmem>>, vector<1x128xf32>
    %121 = vector.broadcast %120 : vector<1x128xf32> to vector<256x128xf32>
    %122 = arith.addf %119, %121 : vector<256x128xf32>
    %c0_122 = arith.constant 0 : index
    %c0_123 = arith.constant 0 : index
    %123 = vector.load %arg6[%c0_122, %c0_123] : memref<128x4xf32, #tpu.memory_space<vmem>>, vector<128x4xf32>
    %cst_124 = arith.constant dense<0.000000e+00> : vector<256x4xf32>
    %124 = tpu.matmul %122, %123, %cst_124 {dimension_numbers = #tpu.dot_dimension_numbers<[1], [0], [0], [1], [0, 0, 1, 1], [], []>} : vector<256x128xf32>, vector<128x4xf32>, vector<256x4xf32> -> vector<256x4xf32>
    %c0_125 = arith.constant 0 : index
    %c0_126 = arith.constant 0 : index
    %125 = vector.load %arg11[%c0_125, %c0_126] : memref<1x4xf32, #tpu.memory_space<vmem>>, vector<1x4xf32>
    %126 = vector.broadcast %125 : vector<1x4xf32> to vector<256x4xf32>
    %127 = arith.mulf %1, %126 : vector<256x4xf32>
    %128 = arith.addf %127, %124 : vector<256x4xf32>
    %c0_127 = arith.constant 0 : index
    %c0_128 = arith.constant 0 : index
    %c0_129 = arith.constant 0 : index
    %129 = vector.load %arg12[%c0_127, %c0_128, %c0_129] : memref<1x256x4xf32, #tpu.memory_space<vmem>>, vector<1x256x4xf32>
    %130 = vector.shape_cast %129 : vector<1x256x4xf32> to vector<256x4xf32>
    %131 = vector.shape_cast %128 : vector<256x4xf32> to vector<1x256x4xf32>
    tpu.vector_store %arg12[%c0_127, %c0_128, %c0_129], %131 {strides = array<i32>} : memref<1x256x4xf32, #tpu.memory_space<vmem>>, vector<1x256x4xf32>,
    return
  }
  func.func @transform_0(%arg0: i32) -> (i32, i32, i32) {
    %c0_i32 = arith.constant 0 : i32
    %c0_i32_0 = arith.constant 0 : i32
    %c0_i32_1 = arith.constant 0 : i32
    return %arg0, %c0_i32, %c0_i32_0 : i32, i32, i32
  }
  func.func @transform_1(%arg0: i32) -> (i32, i32) {
    %c0_i32 = arith.constant 0 : i32
    %c0_i32_0 = arith.constant 0 : i32
    %c0_i32_1 = arith.constant 0 : i32
    return %c0_i32, %c0_i32_0 : i32, i32
  }
  func.func @transform_2(%arg0: i32) -> (i32, i32) {
    %c0_i32 = arith.constant 0 : i32
    %c0_i32_0 = arith.constant 0 : i32
    %c0_i32_1 = arith.constant 0 : i32
    return %c0_i32, %c0_i32_0 : i32, i32
  }
  func.func @transform_3(%arg0: i32) -> (i32, i32, i32, i32) {
    %c0_i32 = arith.constant 0 : i32
    %c0_i32_0 = arith.constant 0 : i32
    %c0_i32_1 = arith.constant 0 : i32
    %c0_i32_2 = arith.constant 0 : i32
    %c0_i32_3 = arith.constant 0 : i32
    return %c0_i32, %c0_i32_0, %c0_i32_1, %c0_i32_2 : i32, i32, i32, i32
  }
  func.func @transform_4(%arg0: i32) -> (i32, i32) {
    %c0_i32 = arith.constant 0 : i32
    %c0_i32_0 = arith.constant 0 : i32
    %c0_i32_1 = arith.constant 0 : i32
    return %c0_i32, %c0_i32_0 : i32, i32
  }
  func.func @transform_5(%arg0: i32) -> (i32, i32) {
    %c0_i32 = arith.constant 0 : i32
    %c0_i32_0 = arith.constant 0 : i32
    %c0_i32_1 = arith.constant 0 : i32
    return %c0_i32, %c0_i32_0 : i32, i32
  }
  func.func @transform_6(%arg0: i32) -> (i32, i32) {
    %c0_i32 = arith.constant 0 : i32
    %c0_i32_0 = arith.constant 0 : i32
    %c0_i32_1 = arith.constant 0 : i32
    return %c0_i32, %c0_i32_0 : i32, i32
  }
  func.func @transform_7(%arg0: i32) -> (i32, i32) {
    %c0_i32 = arith.constant 0 : i32
    %c0_i32_0 = arith.constant 0 : i32
    %c0_i32_1 = arith.constant 0 : i32
    return %c0_i32, %c0_i32_0 : i32, i32
  }
  func.func @transform_8(%arg0: i32) -> (i32, i32) {
    %c0_i32 = arith.constant 0 : i32
    %c0_i32_0 = arith.constant 0 : i32
    %c0_i32_1 = arith.constant 0 : i32
    return %c0_i32, %c0_i32_0 : i32, i32
  }
  func.func @transform_9(%arg0: i32) -> (i32, i32) {
    %c0_i32 = arith.constant 0 : i32
    %c0_i32_0 = arith.constant 0 : i32
    %c0_i32_1 = arith.constant 0 : i32
    return %c0_i32, %c0_i32_0 : i32, i32
  }
  func.func @transform_10(%arg0: i32) -> (i32, i32) {
    %c0_i32 = arith.constant 0 : i32
    %c0_i32_0 = arith.constant 0 : i32
    %c0_i32_1 = arith.constant 0 : i32
    return %c0_i32, %c0_i32_0 : i32, i32
  }
  func.func @transform_11(%arg0: i32) -> (i32, i32, i32) {
    %c0_i32 = arith.constant 0 : i32
    %c0_i32_0 = arith.constant 0 : i32
    %c0_i32_1 = arith.constant 0 : i32
    return %arg0, %c0_i32, %c0_i32_0 : i32, i32, i32
  }
}

</mosaic_0001>

<bundles_post_ra>
// kernel: bresblock_forward.1
= control target key start
LH: loop header
LB: loop body
LE: loop exit
PB: predicated region body
PF: predicated region fallthrough
CT: control target
= control target key end

     0   :  { %s8531_s17 = smov 0   ;;  %s10919_s0 = inlined_call_operand.vmem [shape: f32[2,256,4], index: 0, kind: input, shape index: {}]   ;;  %s10920_s1 = inlined_call_operand.vmem [shape: f32[4,128], index: 1, kind: input, shape index: {}]   ;;  %s10921_s2 = inlined_call_operand.vmem [shape: f32[1,128], index: 2, kind: input, shape index: {}]   ;;  %s10922_s3 = inlined_call_operand.vmem [shape: f32[3,3,128,128], index: 3, kind: input, shape index: {}]   ;;  %s10923_s4 = inlined_call_operand.vmem [shape: f32[1,128], index: 4, kind: input, shape index: {}]   ;;  %s10924_s5 = inlined_call_operand.vmem [shape: f32[128,4], index: 5, kind: input, shape index: {}]   ;;  %s10925_s6 = inlined_call_operand.vmem [shape: f32[1,4], index: 6, kind: input, shape index: {}]   ;;  %s10926_s7 = inlined_call_operand.vmem [shape: f32[1,4], index: 7, kind: input, shape index: {}]   ;;  %s10927_s8 = inlined_call_operand.vmem [shape: f32[1,128], index: 8, kind: input, shape index: {}]   ;;  %s10928_s9 = inlined_call_operand.vmem [shape: f32[1,128], index: 9, kind: input, shape index: {}]   ;;  %s10929_s10 = inlined_call_operand.vmem [shape: f32[1,4], index: 10, kind: input, shape index: {}]   ;;  %s10930_s11 = inlined_call_operand.vmem [shape: f32[2,256,4], index: 11, kind: output, shape index: {}]  }
   0x1 LB: > { %s5583_s18 = sadd.s32 4294967295, %s8468_s17   ;;  %p5587_p0 = scmp.ge.s32.totalorder %s8468_s17, 1  ;;  %s8468_s17 = sphi %s8531_s17, %s21_s17  }
   0x2   : > { %p337_p1 = scmp.lt.s32.totalorder %s8468_s17, 3 }
   0x4   : > { %p338_p2 = pnand %p5587_p0, %p337_p1 }
   0x6   : > { %341 = sbr.rel (%p338_p2) target bundleno = 1239 (0x4d7), region = 64 }
   0xd   : > { %v721_v0 = vld [vmem:[%s10920_s1] sm:$0xf]  ;;  %vm826_vm0 = vcmask 1043456   ;;  %p377_p3 = scmp.lt.s32.totalorder %s5583_s18, 1  ;;  %vm729_vm1 = vcmask 31744  }
   0xe   : > { %6517 = vmatprep.subr.msk.mxu0 %vm826_vm0, %v721_v0  ;;  %v8548_v1 = vld [vmem:[%s10925_s6] ss:$0 sm:$0xff] }
   0xf   : > { %6518 = vmatpush3.msk.msra.mxu0 %vm826_vm0, %v721_v0  ;;  %s11031_s18 = smov (!%p377_p3, %s5583_s18), 1 }
  0x10   : > { %s5858_s21 = sshll.u32 %s11031_s18, 8 }
  0x11   : > { %s8555_s26 = scalar_lea.vmem %s10919_s0, %s5858_s21  ;;  %s10790_s14 = scalar_lea.vmem %s10930_s11, %s5858_s21 }
  0x12   : > { %v387_v2 = vld [vmem:[%s8555_s26] sm:$0xff]  ;;  %v388_v3 = vld [vmem:[%s8555_s26 + $0x8] sm:$0xff]  ;;  %v389_v4 = vld [vmem:[%s8555_s26 + $0x10] sm:$0xff] }
  0x13   : > { %v8561_v5 = vadd.f32 %v8548_v1, %v387_v2  ;;  %v8564_v6 = vadd.f32 %v8548_v1, %v388_v3  ;;  %v8567_v7 = vadd.f32 %v8548_v1, %v389_v4  ;;  %v390_v8 = vld [vmem:[%s8555_s26 + $0x18] sm:$0xff]  ;;  %v391_v9 = vld [vmem:[%s8555_s26 + $0x20] sm:$0xff]  ;;  %v392_v10 = vld [vmem:[%s8555_s26 + $0x28] sm:$0xff] }
  0x14   : > { %v8573_v11 = vadd.f32 %v8548_v1, %v390_v8  ;;  %v8576_v12 = vadd.f32 %v8548_v1, %v391_v9  ;;  %v8579_v13 = vadd.f32 %v8548_v1, %v392_v10  ;;  %v393_v14 = vld [vmem:[%s8555_s26 + $0x30] sm:$0xff]  ;;  %v394_v15 = vld [vmem:[%s8555_s26 + $0x38] sm:$0xff]  ;;  %v395_v16 = vld [vmem:[%s8555_s26 + $0x40] sm:$0xff] }
  0x15   : > { %v5593_v17 = vmul.f32 -1.442695, %v8561_v5  ;;  %v5594_v18 = vmul.f32 -1.442695, %v8564_v6  ;;  %v5595_v19 = vmul.f32 -1.442695, %v8567_v7  ;;  %v8588_v20 = vadd.f32 %v8548_v1, %v393_v14 }
  0x16   : > { %v5596_v21 = vmul.f32 -1.442695, %v8573_v11  ;;  %v8592_v22 = vadd.f32 %v8548_v1, %v394_v15  ;;  %v5597_v23 = vmul.f32 -1.442695, %v8576_v12  ;;  %v8596_v24 = vadd.f32 %v8548_v1, %v395_v16  ;;  %v396_v25 = vld [vmem:[%s8555_s26 + $0x48] sm:$0xff]  ;;  %v397_v26 = vld [vmem:[%s8555_s26 + $0x50] sm:$0xff] }
  0x17   : > { %8040 = vpow2.f32 %v5593_v17  ;;  %v398_v27 = vld [vmem:[%s8555_s26 + $0x58] sm:$0xff]  ;;  %v5598_v28 = vmul.f32 -1.442695, %v8579_v13  ;;  %v8603_v29 = vadd.f32 %v8548_v1, %v396_v25  ;;  %v399_v30 = vld [vmem:[%s8555_s26 + $0x60] sm:$0xff]  ;;  %v5599_v31 = vmul.f32 -1.442695, %v8588_v20 }
  0x18   : > { %8042 = vpow2.f32 %v5594_v18  ;;  %v8608_v32 = vadd.f32 %v8548_v1, %v397_v26  ;;  %v5600_v33 = vmul.f32 -1.442695, %v8592_v22  ;;  %v8612_v34 = vadd.f32 %v8548_v1, %v398_v27  ;;  %v400_v50 = vld [vmem:[%s8555_s26 + $0x68] sm:$0xff]  ;;  %v401_v51 = vld [vmem:[%s8555_s26 + $0x70] sm:$0xff]  ;;  %v402_v54 = vld [vmem:[%s8555_s26 + $0x78] sm:$0xff] }
  0x19   : > { %8044 = vpow2.f32 %v5595_v19  ;;  %v5601_v35 = vmul.f32 -1.442695, %v8596_v24  ;;  %v8616_v36 = vadd.f32 %v8548_v1, %v399_v30  ;;  %v5602_v37 = vmul.f32 -1.442695, %v8603_v29  ;;  %v403_v57 = vld [vmem:[%s8555_s26 + $0x80] sm:$0xff]  ;;  %v404_v58 = vld [vmem:[%s8555_s26 + $0x88] sm:$0xff] }
  0x1a   : > { %8046 = vpow2.f32 %v5596_v21  ;;  %v5603_v38 = vmul.f32 -1.442695, %v8608_v32  ;;  %v5604_v39 = vmul.f32 -1.442695, %v8612_v34  ;;  %v8628_v61 = vadd.f32 %v8548_v1, %v400_v50  ;;  %v405_v63 = vld [vmem:[%s8555_s26 + $0x90] sm:$0xff]  ;;  %v406_v0 = vld [vmem:[%s8555_s26 + $0x98] sm:$0xff] }
  0x1b   : > { %8048 = vpow2.f32 %v5597_v23  ;;  %v5605_v40 = vmul.f32 -1.442695, %v8616_v36  ;;  %v8631_v62 = vadd.f32 %v8548_v1, %v401_v51  ;;  %v8636_v4 = vadd.f32 %v8548_v1, %v402_v54  ;;  %v407_v15 = vld [vmem:[%s8555_s26 + $0xa0] sm:$0xff] }
  0x1c   : > { %8050 = vpow2.f32 %v5598_v28  ;;  %v8639_v10 = vadd.f32 %v8548_v1, %v403_v57  ;;  %v8642_v14 = vadd.f32 %v8548_v1, %v404_v58  ;;  %v8646_v18 = vadd.f32 %v8548_v1, %v405_v63  ;;  %v8654_v23 = vld [vmem:[%s10926_s7] ss:$0 sm:$0xff]  ;;  %v412_v58 = vld [vmem:[%s8555_s26 + $0xc8] sm:$0xff] }
  0x1d   : > { %8052 = vpow2.f32 %v5599_v31  ;;  %v8649_v19 = vadd.f32 %v8548_v1, %v406_v0  ;;  %v5606_v26 = vmul.f32 -1.442695, %v8628_v61  ;;  %v5607_v27 = vmul.f32 -1.442695, %v8631_v62  ;;  %v411_v51 = vld [vmem:[%s8555_s26 + $0xc0] sm:$0xff] }
  0x1e   : > { %8054 = vpow2.f32 %v5600_v33  ;;  %v5608_v31 = vmul.f32 -1.442695, %v8636_v4  ;;  %v8660_v33 = vadd.f32 %v8548_v1, %v407_v15  ;;  %v8691_v63 = vadd.f32 %v8548_v1, %v411_v51 }
  0x1f   : > { %8056 = vpow2.f32 %v5601_v35  ;;  %v408_v35 = vld [vmem:[%s8555_s26 + $0xa8] sm:$0xff]  ;;  %v8701_v15 = vadd.f32 %v8548_v1, %v412_v58 }
  0x20   : > { %8058 = vpow2.f32 %v5602_v37  ;;  %v409_v37 = vld [vmem:[%s8555_s26 + $0xb0] sm:$0xff]  ;;  %v5613_v54 = vmul.f32 -1.442695, %v8660_v33 }
  0x21   : > { %v8041_v41 = vpop.eup %8040  ;;  %8060 = vpow2.f32 %v5603_v38  ;;  %v8675_v50 = vadd.f32 %v8548_v1, %v409_v37 }
  0x22   : > { %v8043_v42 = vpop.eup %8042  ;;  %v554_v43 = vadd.f32 1.0, %v8041_v41  ;;  %8062 = vpow2.f32 %v5604_v39  ;;  %v5610_v41 = vmul.f32 -1.442695, %v8642_v14 }
  0x23   : > { %v8045_v44 = vpop.eup %8044  ;;  %v555_v45 = vadd.f32 1.0, %v8043_v42  ;;  %8064 = vpow2.f32 %v5605_v40  ;;  %v5609_v40 = vmul.f32 -1.442695, %v8639_v10 }
  0x24   : > { %v8047_v46 = vpop.eup %8046  ;;  %8066 = vrcp.f32 %v554_v43  ;;  %v556_v47 = vadd.f32 1.0, %v8045_v44  ;;  %v5611_v44 = vmul.f32 -1.442695, %v8646_v18 }
  0x25   : > { %v8049_v48 = vpop.eup %8048  ;;  %8068 = vrcp.f32 %v555_v45  ;;  %v557_v49 = vadd.f32 1.0, %v8047_v46  ;;  %v5612_v45 = vmul.f32 -1.442695, %v8649_v19  ;;  %v410_v46 = vld [vmem:[%s8555_s26 + $0xb8] sm:$0xff] }
  0x26   : > { %v8051_v52 = vpop.eup %8050  ;;  %8070 = vrcp.f32 %v556_v47  ;;  %v558_v53 = vadd.f32 1.0, %v8049_v48  ;;  %v8684_v57 = vadd.f32 %v8548_v1, %v410_v46 }
  0x27   : > { %v8053_v55 = vpop.eup %8052  ;;  %8072 = vrcp.f32 %v557_v49  ;;  %v559_v56 = vadd.f32 1.0, %v8051_v52  ;;  %v8672_v49 = vadd.f32 %v8548_v1, %v408_v35  ;;  %v5618_v35 = vmul.f32 -1.442695, %v8701_v15 }
  0x28   : > { %v8055_v59 = vpop.eup %8054  ;;  %8074 = vrcp.f32 %v558_v53  ;;  %v560_v60 = vadd.f32 1.0, %v8053_v55 }
  0x29   : > { %v8057_v2 = vpop.eup %8056  ;;  %8076 = vrcp.f32 %v559_v56  ;;  %v561_v3 = vadd.f32 1.0, %v8055_v59 }
  0x2a   : > { %v8059_v8 = vpop.eup %8058  ;;  %8078 = vrcp.f32 %v560_v60  ;;  %v562_v9 = vadd.f32 1.0, %v8057_v2 }
  0x2b   : > { %v8061_v16 = vpop.eup %8060  ;;  %8080 = vrcp.f32 %v561_v3  ;;  %v563_v17 = vadd.f32 1.0, %v8059_v8  ;;  %v5614_v3 = vmul.f32 -1.442695, %v8672_v49 }
  0x2c   : > { %v8063_v21 = vpop.eup %8062  ;;  %8082 = vrcp.f32 %v562_v9  ;;  %v564_v25 = vadd.f32 1.0, %v8061_v16 }
  0x2d   : > { %v8065_v28 = vpop.eup %8064  ;;  %8084 = vrcp.f32 %v563_v17  ;;  %v565_v30 = vadd.f32 1.0, %v8063_v21  ;;  %v5615_v17 = vmul.f32 -1.442695, %v8675_v50 }
  0x2e   : > { %v8067_v38 = vpop.eup %8066  ;;  %8086 = vrcp.f32 %v564_v25  ;;  %v566_v39 = vadd.f32 1.0, %v8065_v28 }
  0x2f   : > { %v8069_v42 = vpop.eup %8068  ;;  %v650_v43 = vmul.f32 %v8067_v38, %v8561_v5  ;;  %8088 = vrcp.f32 %v565_v30 }
  0x30   : > { %v8071_v47 = vpop.eup %8070  ;;  %v651_v48 = vmul.f32 %v8069_v42, %v8564_v6  ;;  %8090 = vrcp.f32 %v566_v39 }
  0x31   : > { %v8073_v52 = vpop.eup %8072  ;;  %v689_v5 = vadd.f32 %v8654_v23, %v650_v43  ;;  %v652_v53 = vmul.f32 %v8071_v47, %v8567_v7  ;;  %8092 = vpow2.f32 %v5606_v26 }
  0x32   : > { %v8075_v55 = vpop.eup %8074  ;;  %v690_v56 = vadd.f32 %v8654_v23, %v651_v48  ;;  %v653_v6 = vmul.f32 %v8073_v52, %v8573_v11  ;;  %8094 = vpow2.f32 %v5607_v27 }
  0x33   : > { %v8077_v59 = vpop.eup %8076  ;;  %6519 = vmatprep.mubr.msk.f32.mxu0 %vm729_vm1, %v689_v5  ;;  %v691_v60 = vadd.f32 %v8654_v23, %v652_v53  ;;  %v654_v7 = vmul.f32 %v8075_v55, %v8576_v12  ;;  %8096 = vpow2.f32 %v5608_v31 }
  0x34   : > { %v8079_v0 = vpop.eup %8078  ;;  %6520 = vmatmul.mubr.msk.f32.vlgmr.msra.gmra.mrb[0].mxu0 %vm729_vm1, %v690_v56  ;;  %v692_v11 = vadd.f32 %v8654_v23, %v653_v6  ;;  %v655_v2 = vmul.f32 %v8077_v59, %v8579_v13  ;;  %8098 = vpow2.f32 %v5609_v40  ;;  %v5616_v13 = vmul.f32 -1.442695, %v8684_v57  ;;  %v414_v6 = vld [vmem:[%s8555_s26 + $0xd8] sm:$0xff] }
  0x35   : > { %v8081_v8 = vpop.eup %8080  ;;  %6522 = vmatprep.mubr.msk.f32.mxu0 %vm729_vm1, %v691_v60  ;;  %v693_v9 = vadd.f32 %v8654_v23, %v654_v7  ;;  %v656_v12 = vmul.f32 %v8079_v0, %v8588_v20  ;;  %8100 = vpow2.f32 %v5610_v41  ;;  %v5617_v20 = vmul.f32 -1.442695, %v8691_v63  ;;  %v415_v60 = vld [vmem:[%s8555_s26 + $0xe0] sm:$0xff] }
  0x36   : > { %v8083_v16 = vpop.eup %8082  ;;  %8102 = vpow2.f32 %v5611_v44  ;;  %v694_v26 = vadd.f32 %v8654_v23, %v655_v2  ;;  %v657_v27 = vmul.f32 %v8081_v8, %v8592_v22  ;;  %v8735_v8 = vadd.f32 %v8548_v1, %v414_v6 }
  0x37   : > { %v8085_v21 = vpop.eup %8084  ;;  %8104 = vpow2.f32 %v5612_v45  ;;  %v695_v30 = vadd.f32 %v8654_v23, %v656_v12  ;;  %v658_v31 = vmul.f32 %v8083_v16, %v8596_v24 }
  0x38   : > { %v8087_v25 = vpop.eup %8086  ;;  %6523 = vmatmul.mubr.msk.f32.gmra.mrb[2].mxu0 %vm729_vm1, %v692_v11  ;;  %8106 = vpow2.f32 %v5613_v54  ;;  %v696_v22 = vadd.f32 %v8654_v23, %v657_v27  ;;  %v659_v40 = vmul.f32 %v8085_v21, %v8603_v29  ;;  %v416_v11 = vld [vmem:[%s8555_s26 + $0xe8] sm:$0xff]  ;;  %v8741_v21 = vadd.f32 %v8548_v1, %v415_v60 }
  0x39   : > { %v8089_v28 = vpop.eup %8088  ;;  %6525 = vmatprep.mubr.msk.f32.mxu0 %vm729_vm1, %v693_v9  ;;  %8108 = vpow2.f32 %v5614_v3  ;;  %v697_v24 = vadd.f32 %v8654_v23, %v658_v31  ;;  %v660_v43 = vmul.f32 %v8087_v25, %v8608_v32  ;;  %v413_v32 = vld [vmem:[%s8555_s26 + $0xd0] sm:$0xff]  ;;  %v8745_v27 = vadd.f32 %v8548_v1, %v416_v11 }
  0x3a   : > { %v8091_v37 = vpop.eup %8090  ;;  %8110 = vpow2.f32 %v5615_v17  ;;  %v698_v51 = vadd.f32 %v8654_v23, %v659_v40  ;;  %v661_v52 = vmul.f32 %v8089_v28, %v8612_v34  ;;  %v8729_v0 = vadd.f32 %v8548_v1, %v413_v32  ;;  %v417_v9 = vld [vmem:[%s8555_s26 + $0xf0] sm:$0xff] }
  0x3b   : > { %v8093_v38 = vpop.eup %8092  ;;  %8112 = vpow2.f32 %v5616_v13  ;;  %v699_v54 = vadd.f32 %v8654_v23, %v660_v43  ;;  %v662_v55 = vmul.f32 %v8091_v37, %v8616_v36  ;;  %v418_v13 = vld [vmem:[%s8555_s26 + $0xf8] sm:$0xff]  ;;  %v8749_v31 = vadd.f32 %v8548_v1, %v417_v9 }
  0x3c   : > { %v8095_v39 = vpop.eup %8094  ;;  %6526 = vmatmul.mubr.msk.f32.gmra.mrb[4].mxu0 %vm729_vm1, %v694_v26  ;;  %v567_v41 = vadd.f32 1.0, %v8093_v38  ;;  %8114 = vpow2.f32 %v5617_v20  ;;  %v700_v36 = vadd.f32 %v8654_v23, %v661_v52  ;;  %v5620_v38 = vmul.f32 -1.442695, %v8735_v8 }
  0x3d   : > { %v8097_v42 = vpop.eup %8096  ;;  %6528 = vmatprep.mubr.msk.f32.mxu0 %vm729_vm1, %v695_v30  ;;  %v568_v44 = vadd.f32 1.0, %v8095_v39  ;;  %8116 = vpow2.f32 %v5618_v35  ;;  %v701_v16 = vadd.f32 %v8654_v23, %v662_v55  ;;  %v5619_v30 = vmul.f32 -1.442695, %v8729_v0 }
  0x3e   : > { %v8099_v45 = vpop.eup %8098  ;;  %8118 = vrcp.f32 %v567_v41  ;;  %v569_v46 = vadd.f32 1.0, %v8097_v42  ;;  %v8754_v39 = vadd.f32 %v8548_v1, %v418_v13  ;;  %v5621_v41 = vmul.f32 -1.442695, %v8741_v21 }
  0x3f   : > { %v8101_v47 = vpop.eup %8100  ;;  %8120 = vrcp.f32 %v568_v44  ;;  %v570_v48 = vadd.f32 1.0, %v8099_v45  ;;  %v5622_v43 = vmul.f32 -1.442695, %v8745_v27 }
  0x40   : > { %v8103_v29 = vpop.eup %8102  ;;  %6529 = vmatmul.mubr.msk.f32.gmra.mrb[6].mxu0 %vm729_vm1, %v696_v22  ;;  %8122 = vrcp.f32 %v569_v46  ;;  %v571_v5 = vadd.f32 1.0, %v8101_v47  ;;  %v5623_v46 = vmul.f32 -1.442695, %v8749_v31 }
  0x41   : > { %v8105_v53 = vpop.eup %8104  ;;  %6531 = vmatprep.mubr.msk.f32.mxu0 %vm729_vm1, %v697_v24  ;;  %8124 = vrcp.f32 %v570_v48  ;;  %v572_v56 = vadd.f32 1.0, %v8103_v29  ;;  %v5624_v29 = vmul.f32 -1.442695, %v8754_v39 }
  0x42   : > { %v8107_v58 = vpop.eup %8106  ;;  %8126 = vrcp.f32 %v571_v5  ;;  %v573_v59 = vadd.f32 1.0, %v8105_v53 }
  0x43   : > { %v8109_v34 = vpop.eup %8108  ;;  %8128 = vrcp.f32 %v572_v56  ;;  %v574_v7 = vadd.f32 1.0, %v8107_v58 }
  0x44   : > { %v8111_v2 = vpop.eup %8110  ;;  %6532 = vmatmul.mubr.msk.f32.gmra.mrb[8].mxu0 %vm729_vm1, %v698_v51  ;;  %8130 = vrcp.f32 %v573_v59  ;;  %v575_v3 = vadd.f32 1.0, %v8109_v34 }
  0x45   : > { %v8113_v12 = vpop.eup %8112  ;;  %6534 = vmatprep.mubr.msk.f32.mxu0 %vm729_vm1, %v699_v54  ;;  %8132 = vrcp.f32 %v574_v7  ;;  %v576_v17 = vadd.f32 1.0, %v8111_v2 }
  0x46   : > { %v8115_v25 = vpop.eup %8114  ;;  %8134 = vrcp.f32 %v575_v3  ;;  %v577_v26 = vadd.f32 1.0, %v8113_v12 }
  0x47   : > { %v8117_v20 = vpop.eup %8116  ;;  %8136 = vrcp.f32 %v576_v17  ;;  %v578_v28 = vadd.f32 1.0, %v8115_v25 }
  0x48   : > { %v8119_v35 = vpop.eup %8118  ;;  %6535 = vmatmul.mubr.msk.f32.gmra.mrb[10].mxu0 %vm729_vm1, %v700_v36  ;;  %8138 = vrcp.f32 %v577_v26  ;;  %v579_v37 = vadd.f32 1.0, %v8117_v20 }
  0x49   : > { %v8121_v22 = vpop.eup %8120  ;;  %6537 = vmatprep.mubr.msk.f32.mxu0 %vm729_vm1, %v701_v16  ;;  %v663_v40 = vmul.f32 %v8119_v35, %v8628_v61  ;;  %8140 = vrcp.f32 %v578_v28 }
  0x4a   : > { %v8123_v42 = vpop.eup %8122  ;;  %v664_v24 = vmul.f32 %v8121_v22, %v8631_v62  ;;  %8142 = vrcp.f32 %v579_v37 }
  0x4b   : > { %v8125_v44 = vpop.eup %8124  ;;  %v702_v45 = vadd.f32 %v8654_v23, %v663_v40  ;;  %v665_v1 = vmul.f32 %v8123_v42, %v8636_v4  ;;  %8144 = vpow2.f32 %v5619_v30 }
  0x4c   : > { %v8127_v47 = vpop.eup %8126  ;;  %v703_v61 = vadd.f32 %v8654_v23, %v664_v24  ;;  %v666_v48 = vmul.f32 %v8125_v44, %v8639_v10  ;;  %8146 = vpow2.f32 %v5620_v38 }
  0x4d   : > { %v8129_v62 = vpop.eup %8128  ;;  %6538 = vmatmul.mubr.msk.f32.gmra.mrb[12].mxu0 %vm729_vm1, %v702_v45  ;;  %v704_v51 = vadd.f32 %v8654_v23, %v665_v1  ;;  %v667_v52 = vmul.f32 %v8127_v47, %v8642_v14  ;;  %8148 = vpow2.f32 %v5621_v41 }
  0x4e   : > { %v8131_v4 = vpop.eup %8130  ;;  %6540 = vmatprep.mubr.msk.f32.mxu0 %vm729_vm1, %v703_v61  ;;  %v705_v5 = vadd.f32 %v8654_v23, %v666_v48  ;;  %v668_v32 = vmul.f32 %v8129_v62, %v8646_v18  ;;  %8150 = vpow2.f32 %v5622_v43  ;;  %v5743_v48 = vld [vmem:[%s10922_s3 + $0x210] sm:$0xff]  ;;  %v5693_v62 = vld [vmem:[%s10922_s3 + $0x180] sm:$0xff] }
  0x4f   : > { %v8133_v10 = vpop.eup %8132  ;;  %8152 = vpow2.f32 %v5623_v46  ;;  %v706_v55 = vadd.f32 %v8654_v23, %v667_v52  ;;  %v669_v14 = vmul.f32 %v8131_v4, %v8649_v19  ;;  %v5745_v4 = vld [vmem:[%s10922_s3 + $0x220] sm:$0xff] }
  0x50   : > { %v8135_v53 = vpop.eup %8134  ;;  %8154 = vpow2.f32 %v5624_v29  ;;  %v707_v6 = vadd.f32 %v8654_v23, %v668_v32  ;;  %v670_v58 = vmul.f32 %v8133_v10, %v8660_v33  ;;  %v5695_v10 = vld [vmem:[%s10922_s3 + $0x190] sm:$0xff] }
  0x51   : > { %v8137_v54 = vpop.eup %8136  ;;  %6541 = vmatmul.mubr.msk.f32.gmra.mrb[14].mxu0 %vm729_vm1, %v704_v51  ;;  %v708_v34 = vadd.f32 %v8654_v23, %v669_v14  ;;  %v671_v7 = vmul.f32 %v8135_v53, %v8672_v49  ;;  %v5694_v51 = vld [vmem:[%s10922_s3 + $0x188] sm:$0xff]  ;;  %v5696_v53 = vld [vmem:[%s10922_s3 + $0x198] sm:$0xff] }
  0x52   : > { %v8139_v56 = vpop.eup %8138  ;;  %6543 = vmatprep.mubr.msk.f32.mxu0 %vm729_vm1, %v705_v5  ;;  %v709_v19 = vadd.f32 %v8654_v23, %v670_v58  ;;  %v672_v2 = vmul.f32 %v8137_v54, %v8675_v50  ;;  %v7583_v52 = vpack.c.bf16 %v5694_v51, %v5693_v62  ;;  %v5746_v5 = vld [vmem:[%s10922_s3 + $0x228] sm:$0xff]  ;;  %v5747_v54 = vld [vmem:[%s10922_s3 + $0x230] sm:$0xff]  ;;  %v5748_v14 = vld [vmem:[%s10922_s3 + $0x238] sm:$0xff] }
  0x53   : > { %v8141_v18 = vpop.eup %8140  ;;  %v710_v17 = vadd.f32 %v8654_v23, %v671_v7  ;;  %v673_v49 = vmul.f32 %v8139_v56, %v8684_v57  ;;  %v7719_v32 = vpack.c.bf16 %v5746_v5, %v5745_v4  ;;  %v7723_v56 = vpack.c.bf16 %v5748_v14, %v5747_v54  ;;  %v5698_v58 = vld [vmem:[%s10922_s3 + $0x1a8] sm:$0xff]  ;;  %v5699_v7 = vld [vmem:[%s10922_s3 + $0x1b0] sm:$0xff] }
  0x54   : > { %v8143_v59 = vpop.eup %8142  ;;  %v711_v50 = vadd.f32 %v8654_v23, %v672_v2  ;;  %v674_v26 = vmul.f32 %v8141_v18, %v8691_v63  ;;  %7584 = vmatprep.subr.bf16.mxu0 %v7583_v52  ;;  %v5749_v18 = vld [vmem:[%s10922_s3 + $0x240] sm:$0xff] }
  0x55   : > { %v8145_v60 = vpop.eup %8144  ;;  %6544 = vmatmul.mubr.msk.f32.gmra.mrb[16].mxu0 %vm729_vm1, %v706_v55  ;;  %v712_v30 = vadd.f32 %v8654_v23, %v673_v49  ;;  %v675_v57 = vmul.f32 %v8143_v59, %v8701_v15  ;;  %v7587_v55 = vpack.c.bf16 %v5696_v53, %v5695_v10 }
  0x56   : > { %v8147_v11 = vpop.eup %8146  ;;  %6546 = vmatprep.mubr.msk.f32.mxu0 %vm729_vm1, %v707_v6  ;;  %v580_v36 = vadd.f32 1.0, %v8145_v60  ;;  %v713_v35 = vadd.f32 %v8654_v23, %v674_v26  ;;  %7586 = vmatpush3.bf16.msra.mxu0 %v7583_v52  ;;  %v5697_v6 = vld [vmem:[%s10922_s3 + $0x1a0] sm:$0xff]  ;;  %v5750_v60 = vld [vmem:[%s10922_s3 + $0x248] sm:$0xff] }
  0x57   : > { %v8149_v3 = vpop.eup %8148  ;;  %v581_v9 = vadd.f32 1.0, %v8147_v11  ;;  %v714_v63 = vadd.f32 %v8654_v23, %v675_v57  ;;  %7588 = vmatprep.subr.bf16.mxu0 %v7587_v55  ;;  %v7591_v59 = vpack.c.bf16 %v5698_v58, %v5697_v6  ;;  %v5700_v11 = vld [vmem:[%s10922_s3 + $0x1b8] sm:$0xff]  ;;  %v5706_v57 = vld [vmem:[%s10922_s3 + $0x1e8] sm:$0xff] }
  0x58   : > { %v8151_v33 = vpop.eup %8150  ;;  %8156 = vrcp.f32 %v580_v36  ;;  %v582_v12 = vadd.f32 1.0, %v8149_v3  ;;  %v7595_v2 = vpack.c.bf16 %v5700_v11, %v5699_v7  ;;  %v5752_v36 = vld [vmem:[%s10922_s3 + $0x258] sm:$0xff] }
  0x59   : > { %v8153_v16 = vpop.eup %8152  ;;  %6547 = vmatmul.mubr.msk.f32.gmra.mrb[18].mxu0 %vm729_vm1, %v708_v34  ;;  %8158 = vrcp.f32 %v581_v9  ;;  %v583_v13 = vadd.f32 1.0, %v8151_v33  ;;  %v7727_v34 = vpack.c.bf16 %v5750_v60, %v5749_v18  ;;  %v5701_v9 = vld [vmem:[%s10922_s3 + $0x1c0] sm:$0xff]  ;;  %v5702_v33 = vld [vmem:[%s10922_s3 + $0x1c8] sm:$0xff] }
  0x5a   : > { %v8155_v25 = vpop.eup %8154  ;;  %6549 = vmatprep.mubr.msk.f32.mxu0 %vm729_vm1, %v709_v19  ;;  %8160 = vrcp.f32 %v582_v12  ;;  %v584_v20 = vadd.f32 1.0, %v8153_v16  ;;  %7590 = vmatpush3.bf16.msra.mxu0 %v7587_v55  ;;  %v5751_v19 = vld [vmem:[%s10922_s3 + $0x250] sm:$0xff]  ;;  %v5753_v12 = vld [vmem:[%s10922_s3 + $0x260] sm:$0xff]  ;;  %v7599_v16 = vpack.c.bf16 %v5702_v33, %v5701_v9 }
  0x5b   : > { %8162 = vrcp.f32 %v583_v13  ;;  %v585_v28 = vadd.f32 1.0, %v8155_v25  ;;  %7592 = vmatprep.subr.bf16.mxu0 %v7591_v59  ;;  %v7731_v3 = vpack.c.bf16 %v5752_v36, %v5751_v19  ;;  %v5703_v13 = vld [vmem:[%s10922_s3 + $0x1d0] sm:$0xff]  ;;  %v5704_v25 = vld [vmem:[%s10922_s3 + $0x1d8] sm:$0xff] }
  0x5c   : > { %8164 = vrcp.f32 %v584_v20  ;;  %v7603_v26 = vpack.c.bf16 %v5704_v25, %v5703_v13  ;;  %v5756_v20 = vld [vmem:[%s10922_s3 + $0x278] sm:$0xff] }
  0x5d   : > { %6550 = vmatmul.mubr.msk.f32.gmra.mrb[20].mxu0 %vm729_vm1, %v710_v17  ;;  %8166 = vrcp.f32 %v585_v28  ;;  %v5754_v17 = vld [vmem:[%s10922_s3 + $0x268] sm:$0xff] }
  0x5e   : > { %6552 = vmatprep.mubr.msk.f32.mxu0 %vm729_vm1, %v711_v50  ;;  %7594 = vmatpush3.bf16.msra.mxu0 %v7591_v59  ;;  %v7735_v49 = vpack.c.bf16 %v5754_v17, %v5753_v12  ;;  %v5755_v50 = vld [vmem:[%s10922_s3 + $0x270] sm:$0xff] }
  0x5f   : > { %7596 = vmatprep.subr.bf16.mxu0 %v7595_v2  ;;  %v7739_v28 = vpack.c.bf16 %v5756_v20, %v5755_v50 }
  0x61   : > { %6553 = vmatmul.mubr.msk.f32.gmra.mrb[22].mxu0 %vm729_vm1, %v712_v30  ;;  %v5705_v30 = vld [vmem:[%s10922_s3 + $0x1e0] sm:$0xff] }
  0x62   : > { %v8157_v37 = vpop.eup %8156  ;;  %6555 = vmatprep.mubr.msk.f32.mxu0 %vm729_vm1, %v713_v35  ;;  %7598 = vmatpush3.bf16.msra.mxu0 %v7595_v2  ;;  %v7607_v35 = vpack.c.bf16 %v5706_v57, %v5705_v30 }
  0x63   : > { %v8159_v38 = vpop.eup %8158  ;;  %v676_v22 = vmul.f32 %v8157_v37, %v8729_v0  ;;  %7600 = vmatprep.subr.bf16.mxu0 %v7599_v16  ;;  %v5707_v37 = vld [vmem:[%s10922_s3 + $0x1f0] sm:$0xff] }
  0x64   : > { %v8161_v40 = vpop.eup %8160  ;;  %v677_v41 = vmul.f32 %v8159_v38, %v8735_v8  ;;  %v5708_v38 = vld [vmem:[%s10922_s3 + $0x1f8] sm:$0xff] }
  0x65   : > { %v8163_v42 = vpop.eup %8162  ;;  %6556 = vmatmul.mubr.msk.f32.gmra.mrb[24].mxu0 %vm729_vm1, %v714_v63  ;;  %v715_v15 = vadd.f32 %v8654_v23, %v676_v22  ;;  %v678_v24 = vmul.f32 %v8161_v40, %v8741_v21  ;;  %v8470_v63 = vmov 0.0   ;;  %v7611_v22 = vpack.c.bf16 %v5708_v38, %v5707_v37  ;;  %v5757_v40 = vld [vmem:[%s10922_s3 + $0x380] sm:$0xff] }
  0x66   : > { %v8165_v43 = vpop.eup %8164  ;;  %v716_v44 = vadd.f32 %v8654_v23, %v677_v41  ;;  %v679_v45 = vmul.f32 %v8163_v42, %v8745_v27  ;;  %7602 = vmatpush3.bf16.msra.mxu0 %v7599_v16  ;;  %1340 = vst [vmem:[#allocation2 + $0x18] sm:$0x1] %v8470_v63  ;;  %1318 = vst [vmem:[#allocation2] sm:$0xff] %v8470_v63  ;;  %v5758_v41 = vld [vmem:[%s10922_s3 + $0x388] sm:$0xff]  ;;  %v8994_v37 = vld [vmem:[%s10927_s8] ss:$0 sm:$0xff] }
  0x67   : > { %v8167_v1 = vpop.eup %8166  ;;  %6558 = vmatprep.mubr.msk.f32.mxu0 %vm729_vm1, %v715_v15  ;;  %v717_v0 = vadd.f32 %v8654_v23, %v678_v24  ;;  %v680_v46 = vmul.f32 %v8165_v43, %v8749_v31  ;;  %v5741_v31 = vld [vmem:[%s10922_s3 + $0x200] sm:$0xff]  ;;  %7604 = vmatprep.subr.bf16.mxu0 %v7603_v26  ;;  %1341 = vst [vmem:[#allocation2 + $0x30] sm:$0x1] %v8470_v63  ;;  %1342 = vst [vmem:[#allocation2 + $0x48] sm:$0x1] %v8470_v63  ;;  %v1519_v24 = vld [vmem:[%s10922_s3 + $0x8] sm:$0xff] }
  0x68   : > { %v718_v8 = vadd.f32 %v8654_v23, %v679_v45  ;;  %v681_v47 = vmul.f32 %v8167_v1, %v8754_v39  ;;  %v5742_v39 = vld [vmem:[%s10922_s3 + $0x208] sm:$0xff]  ;;  %1343 = vst [vmem:[#allocation2 + $0x60] sm:$0x1] %v8470_v63  ;;  %1344 = vst [vmem:[#allocation2 + $0x78] sm:$0x1] %v8470_v63  ;;  %v8920_v42 = vpack.c.bf16 %v5758_v41, %v5757_v40  ;;  %v1518_v15 = vld [vmem:[%s10922_s3] sm:$0xff] }
  0x69   : > { %6559 = vmatmul.mubr.msk.f32.gmra.mrb[26].mxu0 %vm729_vm1, %v716_v44  ;;  %v719_v21 = vadd.f32 %v8654_v23, %v680_v46  ;;  %v7711_v61 = vpack.c.bf16 %v5742_v39, %v5741_v31  ;;  %1345 = vst [vmem:[#allocation2 + $0x90] sm:$0x1] %v8470_v63  ;;  %1346 = vst [vmem:[#allocation2 + $0xa8] sm:$0x1] %v8470_v63  ;;  %v8929_v43 = vpack.c.bf16 %v1519_v24, %v1518_v15  ;;  %v8935_v44 = vld [vmem:[%s10921_s2] ss:$0 sm:$0xff] }
  0x6a   : > { %6561 = vmatprep.mubr.msk.f32.mxu0 %vm729_vm1, %v717_v0  ;;  %v720_v27 = vadd.f32 %v8654_v23, %v681_v47  ;;  %v5744_v23 = vld [vmem:[%s10922_s3 + $0x218] sm:$0xff]  ;;  %7606 = vmatpush3.bf16.msra.mxu0 %v7603_v26  ;;  %1347 = vst [vmem:[#allocation2 + $0xc0] sm:$0x1] %v8470_v63  ;;  %1348 = vst [vmem:[#allocation2 + $0xd8] sm:$0x1] %v8470_v63 }
  0x6b   : > { %7712 = vmatprep.subr.bf16.mxu1 %v7711_v61  ;;  %v7715_v29 = vpack.c.bf16 %v5744_v23, %v5743_v48  ;;  %1349 = vst [vmem:[#allocation2 + $0xf0] sm:$0x1] %v8470_v63  ;;  %1350 = vst [vmem:[#allocation2 + $0x108] sm:$0x1] %v8470_v63  ;;  %7608 = vmatprep.subr.bf16.mxu0 %v7607_v35 }
  0x6c   : > { %7714 = vmatpush3.bf16.msra.mxu1 %v7711_v61  ;;  %1351 = vst [vmem:[#allocation2 + $0x120] sm:$0x1] %v8470_v63  ;;  %1352 = vst [vmem:[#allocation2 + $0x138] sm:$0x1] %v8470_v63 }
  0x6d   : > { %6562 = vmatmul.mubr.msk.f32.gmra.mrb[28].mxu0 %vm729_vm1, %v718_v8  ;;  %7716 = vmatprep.subr.bf16.mxu1 %v7715_v29  ;;  %1353 = vst [vmem:[#allocation2 + $0x150] sm:$0x1] %v8470_v63  ;;  %1354 = vst [vmem:[#allocation2 + $0x168] sm:$0x1] %v8470_v63 }
  0x6e   : > { %6564 = vmatprep.mubr.msk.f32.mxu0 %vm729_vm1, %v719_v21  ;;  %1355 = vst [vmem:[#allocation2 + $0x180] sm:$0x1] %v8470_v63  ;;  %1454 = vst [vmem:[#allocation4 + $0x27] sm:$0x1] %v8470_v63  ;;  %7610 = vmatpush3.bf16.msra.mxu0 %v7607_v35 }
  0x6f   : > { %1455 = vst [vmem:[#allocation4 + $0x3f] sm:$0x1] %v8470_v63  ;;  %1456 = vst [vmem:[#allocation4 + $0x57] sm:$0x1] %v8470_v63  ;;  %7612 = vmatprep.subr.bf16.mxu0 %v7611_v22 }
  0x70   : > { %7718 = vmatpush3.bf16.msra.mxu1 %v7715_v29  ;;  %1457 = vst [vmem:[#allocation4 + $0x6f] sm:$0x1] %v8470_v63  ;;  %1458 = vst [vmem:[#allocation4 + $0x87] sm:$0x1] %v8470_v63 }
  0x71   : > { %6565 = vmatmul.mubr.msk.f32.gmra.mrb[30].mxu0 %vm729_vm1, %v720_v27  ;;  %7720 = vmatprep.subr.bf16.mxu1 %v7719_v32  ;;  %1459 = vst [vmem:[#allocation4 + $0x9f] sm:$0x1] %v8470_v63  ;;  %1460 = vst [vmem:[#allocation4 + $0xb7] sm:$0x1] %v8470_v63 }
  0x72   : > { %1461 = vst [vmem:[#allocation4 + $0xcf] sm:$0x1] %v8470_v63  ;;  %1462 = vst [vmem:[#allocation4 + $0xe7] sm:$0x1] %v8470_v63  ;;  %7614 = vmatpush3.bf16.msra.mxu0 %v7611_v22 }
  0x73   : > { %1463 = vst [vmem:[#allocation4 + $0xff] sm:$0x1] %v8470_v63  ;;  %1464 = vst [vmem:[#allocation4 + $0x117] sm:$0x1] %v8470_v63  ;;  %7616 = vmatprep.subr.bf16.mxu0 %v8929_v43 }
  0x74   : > { %7722 = vmatpush3.bf16.msra.mxu1 %v7719_v32  ;;  %1465 = vst [vmem:[#allocation4 + $0x12f] sm:$0x1] %v8470_v63  ;;  %1466 = vst [vmem:[#allocation4 + $0x147] sm:$0x1] %v8470_v63 }
  0x75   : > { %7724 = vmatprep.subr.bf16.mxu1 %v7723_v56  ;;  %1467 = vst [vmem:[#allocation4 + $0x15f] sm:$0x1] %v8470_v63  ;;  %1468 = vst [vmem:[#allocation4 + $0x177] sm:$0x1] %v8470_v63 }
  0x76   : > { %1469 = vst [vmem:[#allocation4 + $0x18f] sm:$0x1] %v8470_v63 }
  0x78   : > { %7726 = vmatpush3.bf16.msra.mxu1 %v7723_v56 }
  0x79   : > { %7728 = vmatprep.subr.bf16.mxu1 %v7727_v34 }
  0x7c   : > { %7730 = vmatpush3.bf16.msra.mxu1 %v7727_v34 }
  0x7d   : > { %7732 = vmatprep.subr.bf16.mxu1 %v7731_v3 }
  0x80   : > { %7734 = vmatpush3.bf16.msra.mxu1 %v7731_v3 }
  0x81   : > { %7736 = vmatprep.subr.bf16.mxu1 %v7735_v49 }
  0x84   : > { %7738 = vmatpush3.bf16.msra.mxu1 %v7735_v49 }
  0x85   : > { %7740 = vmatprep.subr.bf16.mxu1 %v7739_v28 }
  0x88   : > { %7742 = vmatpush3.bf16.msra.mxu1 %v7739_v28 }
  0x89   : > { %7744 = vmatprep.subr.bf16.mxu1 %v8920_v42 }
 0x107   : > { %v6521_v45 = vpop.f32.mrb[0].mxu0 }
 0x108   : > { %v8938_v1 = vadd.f32 %v6521_v45, %v8935_v44  ;;  %v896_v0 = vpop.f32.mrb[1].mxu0 }
 0x109   : > { %v8941_v46 = vadd.f32 %v8935_v44, %v896_v0 }
 0x10a   : > { %v5661_v8 = vmul.f32 -1.442695, %v8938_v1 }
 0x10b   : > { %v5660_v47 = vmul.f32 -1.442695, %v8941_v46  ;;  %v6524_v21 = vpop.f32.mrb[2].mxu0 }
 0x10c   : > { %8168 = vpow2.f32 %v5661_v8  ;;  %v8946_v27 = vadd.f32 %v6524_v21, %v8935_v44  ;;  %v906_v31 = vpop.f32.mrb[3].mxu0  ;;  %v5759_v21 = vld [vmem:[%s10922_s3 + $0x390] sm:$0xff] }
 0x10d   : > { %8170 = vpow2.f32 %v5660_v47  ;;  %v8949_v39 = vadd.f32 %v8935_v44, %v906_v31  ;;  %v5760_v31 = vld [vmem:[%s10922_s3 + $0x398] sm:$0xff] }
 0x10e   : > { %v5663_v61 = vmul.f32 -1.442695, %v8946_v27 }
 0x10f   : > { %v5662_v48 = vmul.f32 -1.442695, %v8949_v39  ;;  %v6527_v23 = vpop.f32.mrb[4].mxu0 }
 0x110   : > { %8172 = vpow2.f32 %v5663_v61  ;;  %v8954_v29 = vadd.f32 %v6527_v23, %v8935_v44  ;;  %v916_v62 = vpop.f32.mrb[5].mxu0 }
 0x111   : > { %8174 = vpow2.f32 %v5662_v48  ;;  %v8957_v51 = vadd.f32 %v8935_v44, %v916_v62 }
 0x112   : > { %v5665_v52 = vmul.f32 -1.442695, %v8954_v29 }
 0x113   : > { %v5664_v4 = vmul.f32 -1.442695, %v8957_v51  ;;  %v6530_v5 = vpop.f32.mrb[6].mxu0 }
 0x114   : > { %8176 = vpow2.f32 %v5665_v52  ;;  %v8962_v32 = vadd.f32 %v6530_v5, %v8935_v44  ;;  %v926_v10 = vpop.f32.mrb[7].mxu0 }
 0x115   : > { %8178 = vpow2.f32 %v5664_v4  ;;  %v8965_v53 = vadd.f32 %v8935_v44, %v926_v10 }
 0x116   : > { %v8169_v54 = vpop.eup %8168  ;;  %v5667_v55 = vmul.f32 -1.442695, %v8962_v32 }
 0x117   : > { %v8171_v14 = vpop.eup %8170  ;;  %v1152_v56 = vadd.f32 1.0, %v8169_v54  ;;  %v5666_v6 = vmul.f32 -1.442695, %v8965_v53  ;;  %v6533_v58 = vpop.f32.mrb[8].mxu0 }
 0x118   : > { %v1151_v18 = vadd.f32 1.0, %v8171_v14  ;;  %8180 = vpow2.f32 %v5667_v55  ;;  %v8970_v59 = vadd.f32 %v6533_v58, %v8935_v44  ;;  %v936_v60 = vpop.f32.mrb[9].mxu0  ;;  %v2952_v14 = vld [vmem:[#allocation3 + $0x28] sm:$0xff] }
 0x119   : > { %8182 = vrcp.f32 %v1152_v56  ;;  %v8973_v34 = vadd.f32 %v8935_v44, %v936_v60  ;;  %v7747_v56 = vpack.c.bf16 %v5760_v31, %v5759_v21 }
 0x11a   : > { %v8173_v7 = vpop.eup %8172  ;;  %8184 = vrcp.f32 %v1151_v18  ;;  %v5669_v11 = vmul.f32 -1.442695, %v8970_v59 }
 0x11b   : > { %v8175_v19 = vpop.eup %8174  ;;  %v1154_v2 = vadd.f32 1.0, %v8173_v7  ;;  %8186 = vpow2.f32 %v5666_v6  ;;  %v5668_v36 = vmul.f32 -1.442695, %v8973_v34  ;;  %v6536_v3 = vpop.f32.mrb[10].mxu0  ;;  %v5762_v7 = vld [vmem:[%s10922_s3 + $0x3a8] sm:$0xff] }
 0x11c   : > { %v1153_v9 = vadd.f32 1.0, %v8175_v19  ;;  %8188 = vpow2.f32 %v5669_v11  ;;  %v8978_v33 = vadd.f32 %v6536_v3, %v8935_v44  ;;  %v946_v12 = vpop.f32.mrb[11].mxu0 }
 0x11d   : > { %8190 = vrcp.f32 %v1154_v2  ;;  %v8981_v16 = vadd.f32 %v8935_v44, %v946_v12 }
 0x11e   : > { %v8177_v17 = vpop.eup %8176  ;;  %8192 = vrcp.f32 %v1153_v9  ;;  %v5671_v49 = vmul.f32 -1.442695, %v8978_v33 }
 0x11f   : > { %v8179_v13 = vpop.eup %8178  ;;  %v1156_v25 = vadd.f32 1.0, %v8177_v17  ;;  %8194 = vpow2.f32 %v5668_v36  ;;  %v5670_v50 = vmul.f32 -1.442695, %v8981_v16 }
 0x120   : > { %v1155_v26 = vadd.f32 1.0, %v8179_v13  ;;  %8196 = vpow2.f32 %v5671_v49  ;;  %v6539_v20 = vpop.f32.mrb[12].mxu0 }
 0x121   : > { %8198 = vrcp.f32 %v1156_v25  ;;  %v8986_v28 = vadd.f32 %v6539_v20, %v8935_v44  ;;  %v956_v30 = vpop.f32.mrb[13].mxu0 }
 0x122   : > { %v8181_v57 = vpop.eup %8180  ;;  %8200 = vrcp.f32 %v1155_v26  ;;  %v8989_v35 = vadd.f32 %v8935_v44, %v956_v30 }
 0x123   : > { %v8183_v63 = vpop.eup %8182  ;;  %v1158_v38 = vadd.f32 1.0, %v8181_v57  ;;  %8202 = vpow2.f32 %v5670_v50  ;;  %v5673_v22 = vmul.f32 -1.442695, %v8986_v28  ;;  %v5764_v57 = vld [vmem:[%s10922_s3 + $0x3b8] sm:$0xff] }
 0x124   : > { %v8185_v40 = vpop.eup %8184  ;;  %v1248_v41 = vmul.f32 %v8183_v63, %v8938_v1  ;;  %v5672_v15 = vmul.f32 -1.442695, %v8989_v35  ;;  %v6542_v24 = vpop.f32.mrb[14].mxu0 }
 0x125   : > { %v8187_v45 = vpop.eup %8186  ;;  %v1247_v0 = vmul.f32 %v8185_v40, %v8941_v46  ;;  %8204 = vrcp.f32 %v1158_v38  ;;  %v9001_v8 = vadd.f32 %v6542_v24, %v8935_v44  ;;  %v966_v47 = vpop.f32.mrb[15].mxu0  ;;  %v1521_v40 = vld [vmem:[%s10922_s3 + $0x18] sm:$0xff] }
 0x126   : > { %v8189_v1 = vpop.eup %8188  ;;  %v1287_v61 = vadd.f32 %v8994_v37, %v1248_v41  ;;  %v1157_v48 = vadd.f32 1.0, %v8187_v45  ;;  %8206 = vpow2.f32 %v5673_v22  ;;  %v9011_v46 = vadd.f32 %v8935_v44, %v966_v47  ;;  %v1520_v22 = vld [vmem:[%s10922_s3 + $0x10] sm:$0xff] }
 0x127   : > { %v8191_v23 = vpop.eup %8190  ;;  %v1286_v62 = vadd.f32 %v8994_v37, %v1247_v0  ;;  %v1160_v52 = vadd.f32 1.0, %v8189_v1  ;;  %8208 = vpow2.f32 %v5672_v15  ;;  %v5675_v4 = vmul.f32 -1.442695, %v9001_v8  ;;  %v9062_v45 = vld [vmem:[#allocation3 + $0x40] sm:$0xff]  ;;  %v5765_v0 = vld [vmem:[%s10922_s3 + $0x3c0] sm:$0xff] }
 0x128   : > { %v8193_v5 = vpop.eup %8192  ;;  %1357 = vst [vmem:[#allocation2 + $0x21] sm:$0xff] %v1287_v61  ;;  %1390 = vst [vmem:[#allocation3 + $0x20] sm:$0xff] %v1287_v61  ;;  %v1250_v10 = vmul.f32 %v8191_v23, %v8946_v27  ;;  %8210 = vrcp.f32 %v1157_v48  ;;  %v5674_v54 = vmul.f32 -1.442695, %v9011_v46  ;;  %v6545_v55 = vpop.f32.mrb[16].mxu0  ;;  %v5761_v27 = vld [vmem:[%s10922_s3 + $0x3a0] sm:$0xff] }
 0x129   : > { %1423 = vst [vmem:[#allocation4 + $0x1f] sm:$0xff] %v1287_v61  ;;  %v8195_v6 = vpop.eup %8194  ;;  %1356 = vst [vmem:[#allocation2 + $0x19] sm:$0xff] %v1286_v62  ;;  %v1249_v58 = vmul.f32 %v8193_v5, %v8949_v39  ;;  %8212 = vrcp.f32 %v1160_v52  ;;  %v9019_v18 = vadd.f32 %v6545_v55, %v8935_v44  ;;  %v976_v60 = vpop.f32.mrb[17].mxu0  ;;  %7015 = vmatprep.mubr.f32.mxu1 %v1286_v62  ;;  %v1523_v55 = vld [vmem:[%s10922_s3 + $0x28] sm:$0xff] }
 0x12a   : > { %1389 = vst [vmem:[#allocation3 + $0x18] sm:$0xff] %v1286_v62  ;;  %1422 = vst [vmem:[#allocation4 + $0x17] sm:$0xfe] %v1286_v62  ;;  %v8197_v11 = vpop.eup %8196  ;;  %v1289_v19 = vadd.f32 %v8994_v37, %v1250_v10  ;;  %v1159_v2 = vadd.f32 1.0, %v8195_v6  ;;  %8214 = vpow2.f32 %v5675_v4  ;;  %v9029_v39 = vadd.f32 %v8935_v44, %v976_v60  ;;  %7016 = vmatmul.mubr.f32.vlgmr.msra.gmra.mrb[0].mxu1 %v1287_v61  ;;  %v5766_v62 = vld [vmem:[%s10922_s3 + $0x3c8] sm:$0xff] }
 0x12b   : > { %v8199_v36 = vpop.eup %8198  ;;  %v1288_v3 = vadd.f32 %v8994_v37, %v1249_v58  ;;  %v1162_v9 = vadd.f32 1.0, %v8197_v11  ;;  %8216 = vpow2.f32 %v5674_v54  ;;  %v5677_v12 = vmul.f32 -1.442695, %v9019_v18  ;;  %7746 = vmatpush3.bf16.msra.mxu1 %v8920_v42  ;;  %7018 = vmatprep.mubr.f32.mxu1 %v2952_v14  ;;  %v1522_v54 = vld [vmem:[%s10922_s3 + $0x20] sm:$0xff] }
 0x12c   : > { %v8201_v17 = vpop.eup %8200  ;;  %1359 = vst [vmem:[#allocation2 + $0x39] sm:$0xff] %v1289_v19  ;;  %1392 = vst [vmem:[#allocation3 + $0x38] sm:$0xff] %v1289_v19  ;;  %v1252_v49 = vmul.f32 %v8199_v36, %v8954_v29  ;;  %8218 = vrcp.f32 %v1159_v2  ;;  %v5676_v13 = vmul.f32 -1.442695, %v9029_v39  ;;  %v6548_v25 = vpop.f32.mrb[18].mxu0  ;;  %7748 = vmatprep.subr.bf16.mxu1 %v7747_v56  ;;  %v9036_v50 = vpack.c.bf16 %v5762_v7, %v5761_v27  ;;  %v5763_v29 = vld [vmem:[%s10922_s3 + $0x3b0] sm:$0xff] }
 0x12d   : > { %1425 = vst [vmem:[#allocation4 + $0x37] sm:$0xff] %v1289_v19  ;;  %v8203_v26 = vpop.eup %8202  ;;  %1358 = vst [vmem:[#allocation2 + $0x31] sm:$0xff] %v1288_v3  ;;  %v1251_v42 = vmul.f32 %v8201_v17, %v8957_v51  ;;  %8220 = vrcp.f32 %v1162_v9  ;;  %v9040_v20 = vadd.f32 %v6548_v25, %v8935_v44  ;;  %v986_v30 = vpop.f32.mrb[19].mxu0  ;;  %v9073_v23 = vpack.c.bf16 %v5764_v57, %v5763_v29  ;;  %v5767_v17 = vld [vmem:[%s10922_s3 + $0x3d0] sm:$0xff] }
 0x12e   : > { %1391 = vst [vmem:[#allocation3 + $0x30] sm:$0xff] %v1288_v3  ;;  %1424 = vst [vmem:[#allocation4 + $0x2f] sm:$0xfe] %v1288_v3  ;;  %v9049_v63 = vadd.f32 %v8994_v37, %v1252_v49  ;;  %v1161_v38 = vadd.f32 1.0, %v8203_v26  ;;  %8222 = vpow2.f32 %v5677_v12  ;;  %v9052_v51 = vadd.f32 %v8935_v44, %v986_v30  ;;  %7019 = vmatmul.mubr.f32.gmra.mrb[2].mxu1 %v1288_v3  ;;  %v5768_v49 = vld [vmem:[%s10922_s3 + $0x3d8] sm:$0xff]  ;;  %v1524_v30 = vld [vmem:[%s10922_s3 + $0x30] sm:$0xff] }
 0x12f   : > { %v8205_v41 = vpop.eup %8204  ;;  %v1290_v15 = vadd.f32 %v8994_v37, %v1251_v42  ;;  %8224 = vpow2.f32 %v5676_v13  ;;  %v5679_v24 = vmul.f32 -1.442695, %v9040_v20  ;;  %7021 = vmatprep.mubr.f32.mxu1 %v1289_v19  ;;  %7750 = vmatpush3.bf16.msra.mxu1 %v7747_v56  ;;  %v9081_v10 = vpack.c.bf16 %v1521_v40, %v1520_v22  ;;  %v1536_v60 = vld [vmem:[#allocation2 + $0x28] sm:$0xff] }
 0x130   : > { %v8207_v47 = vpop.eup %8206  ;;  %1361 = vst [vmem:[#allocation2 + $0x51] sm:$0xff] %v9049_v63  ;;  %1394 = vst [vmem:[#allocation3 + $0x50] sm:$0xff] %v9049_v63  ;;  %v1254_v21 = vmul.f32 %v8205_v41, %v8962_v32  ;;  %8226 = vrcp.f32 %v1161_v38  ;;  %v5678_v31 = vmul.f32 -1.442695, %v9052_v51  ;;  %v6551_v1 = vpop.f32.mrb[20].mxu0  ;;  %v1534_v61 = vld [vmem:[#allocation2 + $0x18] sm:$0xff]  ;;  %7752 = vmatprep.subr.bf16.mxu1 %v9036_v50  ;;  %v9100_v2 = vpack.c.bf16 %v5766_v62, %v5765_v0 }
 0x131   : > { %1427 = vst [vmem:[#allocation4 + $0x4f] sm:$0xff] %v9049_v63  ;;  %v1535_v48 = vld [vmem:[#allocation2 + $0x20] sm:$0xff]  ;;  %v8209_v52 = vpop.eup %8208  ;;  %1360 = vst [vmem:[#allocation2 + $0x49] sm:$0xff] %v1290_v15  ;;  %v1164_v4 = vadd.f32 1.0, %v8207_v47  ;;  %8228 = vpow2.f32 %v5679_v24  ;;  %v9079_v32 = vadd.f32 %v6551_v1, %v8935_v44  ;;  %v996_v5 = vpop.f32.mrb[21].mxu0  ;;  %6599 = vmatprep.mubr.f32.mxu0 %v1534_v61  ;;  %v9098_v19 = vld [vmem:[#allocation3 + $0x58] sm:$0xff]  ;;  %v9117_v13 = vpack.c.bf16 %v1523_v55, %v1522_v54 }
 0x132   : > { %1393 = vst [vmem:[#allocation3 + $0x48] sm:$0xff] %v1290_v15  ;;  %1426 = vst [vmem:[#allocation4 + $0x47] sm:$0xfe] %v1290_v15  ;;  %v8211_v14 = vpop.eup %8210  ;;  %v9090_v56 = vadd.f32 %v8994_v37, %v1254_v21  ;;  %v1163_v6 = vadd.f32 1.0, %v8209_v52  ;;  %8230 = vpow2.f32 %v5678_v31  ;;  %v9093_v58 = vadd.f32 %v8935_v44, %v996_v5  ;;  %6600 = vmatmul.mubr.f32.vlgmr.msra.gmra.mrb[32].mxu0 %v1535_v48  ;;  %v5769_v31 = vld [vmem:[%s10922_s3 + $0x3e0] sm:$0xff]  ;;  %v5770_v1 = vld [vmem:[%s10922_s3 + $0x3e8] sm:$0xff] }
 0x133   : > { %7022 = vmatmul.mubr.f32.gmra.mrb[4].mxu1 %v9062_v45  ;;  %v8213_v27 = vpop.eup %8212  ;;  %v1253_v7 = vmul.f32 %v8211_v14, %v8965_v53  ;;  %8232 = vrcp.f32 %v1164_v4  ;;  %v5681_v11 = vmul.f32 -1.442695, %v9079_v32  ;;  %6602 = vmatprep.mubr.f32.mxu0 %v1536_v60  ;;  %v9145_v0 = vpack.c.bf16 %v5768_v49, %v5767_v17  ;;  %v9168_v4 = vld [vmem:[#allocation2 + $0x40] sm:$0xff] }
 0x134   : > { %7024 = vmatprep.mubr.f32.mxu1 %v1290_v15  ;;  %v8215_v36 = vpop.eup %8214  ;;  %1363 = vst [vmem:[#allocation2 + $0x69] sm:$0xff] %v9090_v56  ;;  %1396 = vst [vmem:[#allocation3 + $0x68] sm:$0xff] %v9090_v56  ;;  %v1256_v3 = vmul.f32 %v8213_v27, %v8970_v59  ;;  %8234 = vrcp.f32 %v1163_v6  ;;  %v5680_v53 = vmul.f32 -1.442695, %v9093_v58  ;;  %v6554_v9 = vpop.f32.mrb[22].mxu0  ;;  %v9107_v12 = vld [vmem:[#allocation2 + $0x30] sm:$0xff]  ;;  %7754 = vmatpush3.bf16.msra.mxu1 %v9036_v50 }
 0x135   : > { %1429 = vst [vmem:[#allocation4 + $0x67] sm:$0xff] %v9090_v56  ;;  %7618 = vmatpush3.bf16.msra.mxu0 %v8929_v43  ;;  %v8217_v59 = vpop.eup %8216  ;;  %v1292_v25 = vadd.f32 %v8994_v37, %v1253_v7  ;;  %v1166_v26 = vadd.f32 1.0, %v8215_v36  ;;  %8236 = vpow2.f32 %v5681_v11  ;;  %v9121_v42 = vadd.f32 %v6554_v9, %v8935_v44  ;;  %v1006_v50 = vpop.f32.mrb[23].mxu0  ;;  %7756 = vmatprep.subr.bf16.mxu1 %v9073_v23  ;;  %v1525_v43 = vld [vmem:[%s10922_s3 + $0x38] sm:$0xff]  ;;  %v1526_v5 = vld [vmem:[%s10922_s3 + $0x40] sm:$0xff] }
 0x136   : > { %7620 = vmatprep.subr.bf16.mxu0 %v9081_v10  ;;  %v8219_v29 = vpop.eup %8218  ;;  %v9132_v57 = vadd.f32 %v8994_v37, %v1256_v3  ;;  %v1165_v38 = vadd.f32 1.0, %v8217_v59  ;;  %8238 = vpow2.f32 %v5680_v53  ;;  %v9135_v22 = vadd.f32 %v8935_v44, %v1006_v50  ;;  %6603 = vmatmul.mubr.f32.gmra.mrb[34].mxu0 %v9107_v12  ;;  %v9138_v40 = vld [vmem:[#allocation2 + $0x38] sm:$0xff]  ;;  %v9194_v36 = vld [vmem:[#allocation3 + $0x70] sm:$0xff]  ;;  %v5771_v53 = vld [vmem:[%s10922_s3 + $0x3f0] sm:$0xff] }
 0x137   : > { %7025 = vmatmul.mubr.f32.gmra.mrb[6].mxu1 %v9049_v63  ;;  %v8221_v41 = vpop.eup %8220  ;;  %1362 = vst [vmem:[#allocation2 + $0x61] sm:$0xff] %v1292_v25  ;;  %1395 = vst [vmem:[#allocation3 + $0x60] sm:$0xff] %v1292_v25  ;;  %v1255_v15 = vmul.f32 %v8219_v29, %v8973_v34  ;;  %8240 = vrcp.f32 %v1166_v26  ;;  %v5683_v24 = vmul.f32 -1.442695, %v9121_v42  ;;  %6605 = vmatprep.mubr.f32.mxu0 %v9138_v40  ;;  %v5772_v9 = vld [vmem:[%s10922_s3 + $0x3f8] sm:$0xff] }
 0x138   : > { %1428 = vst [vmem:[#allocation4 + $0x5f] sm:$0xfe] %v1292_v25  ;;  %7027 = vmatprep.mubr.f32.mxu1 %v9098_v19  ;;  %v8223_v47 = vpop.eup %8222  ;;  %1365 = vst [vmem:[#allocation2 + $0x81] sm:$0xff] %v9132_v57  ;;  %v1258_v63 = vmul.f32 %v8221_v41, %v8978_v33  ;;  %8242 = vrcp.f32 %v1165_v38  ;;  %v5682_v34 = vmul.f32 -1.442695, %v9135_v22  ;;  %v6557_v21 = vpop.f32.mrb[24].mxu0  ;;  %7758 = vmatpush3.bf16.msra.mxu1 %v9073_v23 }
 0x139   : > { %1398 = vst [vmem:[#allocation3 + $0x80] sm:$0xff] %v9132_v57  ;;  %1431 = vst [vmem:[#allocation4 + $0x7f] sm:$0xff] %v9132_v57  ;;  %7622 = vmatpush3.bf16.msra.mxu0 %v9081_v10  ;;  %v9160_v61 = vpack.c.bf16 %v1525_v43, %v1524_v30  ;;  %v8225_v48 = vpop.eup %8224  ;;  %v9163_v33 = vadd.f32 %v8994_v37, %v1255_v15  ;;  %v1168_v62 = vadd.f32 1.0, %v8223_v47  ;;  %8244 = vpow2.f32 %v5683_v24  ;;  %v1016_v52 = vpop.f32.mrb[25].mxu0  ;;  %v1527_v10 = vld [vmem:[%s10922_s3 + $0x48] sm:$0xff]  ;;  %v1529_v26 = vld [vmem:[%s10922_s3 + $0x58] sm:$0xff] }
 0x13a   : > { %v9166_v23 = vadd.f32 %v6557_v21, %v8935_v44  ;;  %7760 = vmatprep.subr.bf16.mxu1 %v9100_v2  ;;  %7624 = vmatprep.subr.bf16.mxu0 %v9117_v13  ;;  %v8227_v54 = vpop.eup %8226  ;;  %v9179_v55 = vadd.f32 %v8994_v37, %v1258_v63  ;;  %v1167_v14 = vadd.f32 1.0, %v8225_v48  ;;  %8246 = vpow2.f32 %v5682_v34  ;;  %v9185_v60 = vld [vmem:[#allocation2 + $0x48] sm:$0xff]  ;;  %v9224_v29 = vld [vmem:[#allocation2 + $0x50] sm:$0xff]  ;;  %v9233_v24 = vld [vmem:[#allocation2 + $0x58] sm:$0xff] }
 0x13b   : > { %v9182_v6 = vadd.f32 %v8935_v44, %v1016_v52  ;;  %6606 = vmatmul.mubr.f32.gmra.mrb[36].mxu0 %v9168_v4  ;;  %7028 = vmatmul.mubr.f32.gmra.mrb[8].mxu1 %v1292_v25  ;;  %v8229_v27 = vpop.eup %8228  ;;  %1364 = vst [vmem:[#allocation2 + $0x79] sm:$0xff] %v9163_v33  ;;  %1397 = vst [vmem:[#allocation3 + $0x78] sm:$0xff] %v9163_v33  ;;  %v1257_v7 = vmul.f32 %v8227_v54, %v8981_v16  ;;  %8248 = vrcp.f32 %v1168_v62  ;;  %v1528_v25 = vld [vmem:[%s10922_s3 + $0x50] sm:$0xff]  ;;  %v9245_v21 = vld [vmem:[#allocation3 + $0x88] sm:$0xff] }
 0x13c   : > { %1430 = vst [vmem:[#allocation4 + $0x77] sm:$0xfe] %v9163_v33  ;;  %v5685_v11 = vmul.f32 -1.442695, %v9166_v23  ;;  %6608 = vmatprep.mubr.f32.mxu0 %v9185_v60  ;;  %7030 = vmatprep.mubr.f32.mxu1 %v9090_v56  ;;  %v9196_v3 = vpack.c.bf16 %v5770_v1, %v5769_v31  ;;  %v8231_v16 = vpop.eup %8230  ;;  %1367 = vst [vmem:[#allocation2 + $0x99] sm:$0xff] %v9179_v55  ;;  %8250 = vrcp.f32 %v1167_v14  ;;  %v1170_v56 = vadd.f32 1.0, %v8229_v27 }
 0x13d   : > { %1400 = vst [vmem:[#allocation3 + $0x98] sm:$0xff] %v9179_v55  ;;  %1433 = vst [vmem:[#allocation4 + $0x97] sm:$0xff] %v9179_v55  ;;  %v5684_v17 = vmul.f32 -1.442695, %v9182_v6  ;;  %v6560_v49 = vpop.f32.mrb[26].mxu0  ;;  %7762 = vmatpush3.bf16.msra.mxu1 %v9100_v2  ;;  %7626 = vmatpush3.bf16.msra.mxu0 %v9117_v13  ;;  %v9210_v59 = vpack.c.bf16 %v1527_v10, %v1526_v5  ;;  %v8233_v50 = vpop.eup %8232  ;;  %v9219_v30 = vadd.f32 %v8994_v37, %v1257_v7  ;;  %v1530_v1 = vld [vmem:[%s10922_s3 + $0x60] sm:$0xff] }
 0x13e   : > { %v1169_v43 = vadd.f32 1.0, %v8231_v16  ;;  %8252 = vpow2.f32 %v5685_v11  ;;  %v9222_v2 = vadd.f32 %v6560_v49, %v8935_v44  ;;  %v1026_v13 = vpop.f32.mrb[27].mxu0  ;;  %7764 = vmatprep.subr.bf16.mxu1 %v9145_v0  ;;  %7628 = vmatprep.subr.bf16.mxu0 %v9160_v61  ;;  %v8235_v38 = vpop.eup %8234  ;;  %v1260_v41 = vmul.f32 %v8233_v50, %v8986_v28  ;;  %v1531_v48 = vld [vmem:[%s10922_s3 + $0x68] sm:$0xff]  ;;  %v5773_v10 = vld [vmem:[%s10922_s3 + $0x100] sm:$0xff] }
 0x13f   : > { %8254 = vrcp.f32 %v1170_v56  ;;  %v9230_v15 = vadd.f32 %v8935_v44, %v1026_v13  ;;  %6609 = vmatmul.mubr.f32.gmra.mrb[38].mxu0 %v9224_v29  ;;  %7031 = vmatmul.mubr.f32.gmra.mrb[10].mxu1 %v9194_v36  ;;  %v9236_v47 = vpack.c.bf16 %v5772_v9, %v5771_v53  ;;  %v8237_v63 = vpop.eup %8236  ;;  %1366 = vst [vmem:[#allocation2 + $0x91] sm:$0xff] %v9219_v30  ;;  %1399 = vst [vmem:[#allocation3 + $0x90] sm:$0xff] %v9219_v30  ;;  %v5774_v54 = vld [vmem:[%s10922_s3 + $0x108] sm:$0xff]  ;;  %v9273_v53 = vld [vmem:[#allocation2 + $0x60] sm:$0xff] }
 0x140   : > { %1432 = vst [vmem:[#allocation4 + $0x8f] sm:$0xfe] %v9219_v30  ;;  %v1259_v28 = vmul.f32 %v8235_v38, %v8989_v35  ;;  %8256 = vrcp.f32 %v1169_v43  ;;  %v5687_v34 = vmul.f32 -1.442695, %v9222_v2  ;;  %6611 = vmatprep.mubr.f32.mxu0 %v9233_v24  ;;  %7033 = vmatprep.mubr.f32.mxu1 %v9163_v33  ;;  %v9247_v31 = vpack.c.bf16 %v1529_v26, %v1528_v25  ;;  %v8239_v35 = vpop.eup %8238  ;;  %v6563_v5 = vpop.f32.mrb[28].mxu0  ;;  %v9285_v56 = vld [vmem:[#allocation2 + $0x68] sm:$0xff] }
 0x141   : > { %v9256_v62 = vadd.f32 %v8994_v37, %v1260_v41  ;;  %v1172_v52 = vadd.f32 1.0, %v8237_v63  ;;  %8258 = vpow2.f32 %v5684_v17  ;;  %v5686_v33 = vmul.f32 -1.442695, %v9230_v15  ;;  %7766 = vmatpush3.bf16.msra.mxu1 %v9145_v0  ;;  %7630 = vmatpush3.bf16.msra.mxu0 %v9160_v61  ;;  %v8241_v14 = vpop.eup %8240  ;;  %v1036_v0 = vpop.f32.mrb[29].mxu0 }
 0x142   : > { %v9268_v27 = vadd.f32 %v8994_v37, %v1259_v28  ;;  %v1171_v7 = vadd.f32 1.0, %v8239_v35  ;;  %8260 = vpow2.f32 %v5687_v34  ;;  %v9271_v11 = vadd.f32 %v6563_v5, %v8935_v44  ;;  %7768 = vmatprep.subr.bf16.mxu1 %v9196_v3  ;;  %7632 = vmatprep.subr.bf16.mxu0 %v9210_v59  ;;  %v8243_v61 = vpop.eup %8242  ;;  %v9323_v35 = vld [vmem:[#allocation2 + $0x78] sm:$0xff] }
 0x143   : > { %1369 = vst [vmem:[#allocation2 + $0xb1] sm:$0xff] %v9256_v62  ;;  %1402 = vst [vmem:[#allocation3 + $0xb0] sm:$0xff] %v9256_v62  ;;  %v1262_v9 = vmul.f32 %v8241_v14, %v9001_v8  ;;  %8262 = vrcp.f32 %v1172_v52  ;;  %v9282_v16 = vadd.f32 %v8935_v44, %v1036_v0  ;;  %6612 = vmatmul.mubr.f32.gmra.mrb[40].mxu0 %v9273_v53  ;;  %7034 = vmatmul.mubr.f32.gmra.mrb[12].mxu1 %v9132_v57  ;;  %v8245_v49 = vpop.eup %8244  ;;  %v1532_v52 = vld [vmem:[%s10922_s3 + $0x70] sm:$0xff] }
 0x144   : > { %1435 = vst [vmem:[#allocation4 + $0xaf] sm:$0xff] %v9256_v62  ;;  %v9288_v17 = vpack.c.bf16 %v1531_v48, %v1530_v1  ;;  %1368 = vst [vmem:[#allocation2 + $0xa9] sm:$0xff] %v9268_v27  ;;  %v1261_v8 = vmul.f32 %v8243_v61, %v9011_v46  ;;  %8264 = vrcp.f32 %v1171_v7  ;;  %v5689_v25 = vmul.f32 -1.442695, %v9271_v11  ;;  %6614 = vmatprep.mubr.f32.mxu0 %v9285_v56  ;;  %v8247_v57 = vpop.eup %8246  ;;  %v6566_v38 = vpop.f32.mrb[30].mxu0  ;;  %v9311_v1 = vld [vmem:[#allocation2 + $0x70] sm:$0xff] }
 0x145   : > { %1401 = vst [vmem:[#allocation3 + $0xa8] sm:$0xff] %v9268_v27  ;;  %1434 = vst [vmem:[#allocation4 + $0xa7] sm:$0xfe] %v9268_v27  ;;  %7036 = vmatprep.mubr.f32.mxu1 %v9245_v21  ;;  %v9297_v26 = vpack.c.bf16 %v5774_v54, %v5773_v10  ;;  %v9300_v50 = vadd.f32 %v8994_v37, %v1262_v9  ;;  %v1174_v43 = vadd.f32 1.0, %v8245_v49  ;;  %8266 = vpow2.f32 %v5686_v33  ;;  %v8249_v46 = vpop.eup %8248  ;;  %v1046_v34 = vpop.f32.mrb[31].mxu0  ;;  %v1533_v33 = vld [vmem:[%s10922_s3 + $0x78] sm:$0xff] }
 0x146   : > { %v5688_v13 = vmul.f32 -1.442695, %v9282_v16  ;;  %7770 = vmatpush3.bf16.msra.mxu1 %v9196_v3  ;;  %7634 = vmatpush3.bf16.msra.mxu0 %v9210_v59  ;;  %v9306_v41 = vadd.f32 %v8994_v37, %v1261_v8  ;;  %v1173_v63 = vadd.f32 1.0, %v8247_v57  ;;  %8268 = vpow2.f32 %v5689_v25  ;;  %v8251_v48 = vpop.eup %8250  ;;  %v9351_v61 = vld [vmem:[#allocation2 + $0x80] sm:$0xff] }
 0x147   : > { %v9309_v28 = vadd.f32 %v6566_v38, %v8935_v44  ;;  %7772 = vmatprep.subr.bf16.mxu1 %v9236_v47  ;;  %7636 = vmatprep.subr.bf16.mxu0 %v9247_v31  ;;  %1371 = vst [vmem:[#allocation2 + $0xc9] sm:$0xff] %v9300_v50  ;;  %1404 = vst [vmem:[#allocation3 + $0xc8] sm:$0xff] %v9300_v50  ;;  %v1264_v3 = vmul.f32 %v8249_v46, %v9019_v18  ;;  %8270 = vrcp.f32 %v1174_v43 }
 0x148   : > { %1437 = vst [vmem:[#allocation4 + $0xc7] sm:$0xff] %v9300_v50  ;;  %v9320_v59 = vadd.f32 %v8935_v44, %v1046_v34  ;;  %6615 = vmatmul.mubr.f32.gmra.mrb[42].mxu0 %v9311_v1  ;;  %7037 = vmatmul.mubr.f32.gmra.mrb[14].mxu1 %v9219_v30  ;;  %v8253_v5 = vpop.eup %8252  ;;  %1370 = vst [vmem:[#allocation2 + $0xc1] sm:$0xff] %v9306_v41  ;;  %v1263_v44 = vmul.f32 %v8251_v48, %v9029_v39  ;;  %8272 = vrcp.f32 %v1173_v63  ;;  %v9339_v30 = vld [vmem:[#allocation3 + $0xa0] sm:$0xff]  ;;  %v9388_v34 = vld [vmem:[#allocation2 + $0x98] sm:$0xff] }
 0x149   : > { %1403 = vst [vmem:[#allocation3 + $0xc0] sm:$0xff] %v9306_v41  ;;  %1436 = vst [vmem:[#allocation4 + $0xbf] sm:$0xfe] %v9306_v41  ;;  %v5691_v18 = vmul.f32 -1.442695, %v9309_v28  ;;  %6617 = vmatprep.mubr.f32.mxu0 %v9323_v35  ;;  %7039 = vmatprep.mubr.f32.mxu1 %v9179_v55  ;;  %v8255_v10 = vpop.eup %8254  ;;  %v9342_v54 = vadd.f32 %v8994_v37, %v1264_v3  ;;  %v1176_v14 = vadd.f32 1.0, %v8253_v5  ;;  %8274 = vpow2.f32 %v5688_v13 }
 0x14a   : > { %v5690_v7 = vmul.f32 -1.442695, %v9320_v59  ;;  %7774 = vmatpush3.bf16.msra.mxu1 %v9236_v47  ;;  %7638 = vmatpush3.bf16.msra.mxu0 %v9247_v31  ;;  %v8257_v39 = vpop.eup %8256  ;;  %v9348_v0 = vadd.f32 %v8994_v37, %v1263_v44  ;;  %v1266_v55 = vmul.f32 %v8255_v10, %v9040_v20  ;;  %v7643_v9 = vpack.c.bf16 %v1533_v33, %v1532_v52  ;;  %v9360_v20 = vld [vmem:[#allocation2 + $0x88] sm:$0xff]  ;;  %v9403_v44 = vld [vmem:[#allocation2 + $0xa0] sm:$0xff] }
 0x14b   : > { %8276 = vpow2.f32 %v5691_v18  ;;  %7640 = vmatprep.subr.bf16.mxu0 %v9288_v17  ;;  %7776 = vmatprep.subr.bf16.mxu1 %v9297_v26  ;;  %v8259_v49 = vpop.eup %8258  ;;  %1373 = vst [vmem:[#allocation2 + $0xe1] sm:$0xff] %v9342_v54  ;;  %1406 = vst [vmem:[#allocation3 + $0xe0] sm:$0xff] %v9342_v54  ;;  %v1265_v47 = vmul.f32 %v8257_v39, %v9052_v51  ;;  %v9374_v13 = vld [vmem:[#allocation3 + $0xb8] sm:$0xff] }
 0x14c   : > { %1439 = vst [vmem:[#allocation4 + $0xdf] sm:$0xff] %v9342_v54  ;;  %8278 = vrcp.f32 %v1176_v14  ;;  %6618 = vmatmul.mubr.f32.gmra.mrb[44].mxu0 %v9351_v61  ;;  %7040 = vmatmul.mubr.f32.gmra.mrb[16].mxu1 %v9339_v30  ;;  %v8261_v31 = vpop.eup %8260  ;;  %1372 = vst [vmem:[#allocation2 + $0xd9] sm:$0xff] %v9348_v0  ;;  %v9367_v8 = vadd.f32 %v8994_v37, %v1266_v55  ;;  %v1175_v25 = vadd.f32 1.0, %v8259_v49  ;;  %v9410_v14 = vld [vmem:[#allocation2 + $0xa8] sm:$0xff]  ;;  %v9418_v55 = vld [vmem:[#allocation3 + $0xd0] sm:$0xff] }
 0x14d   : > { %1405 = vst [vmem:[#allocation3 + $0xd8] sm:$0xff] %v9348_v0  ;;  %1438 = vst [vmem:[#allocation4 + $0xd7] sm:$0xfe] %v9348_v0  ;;  %8280 = vpow2.f32 %v5690_v7  ;;  %6620 = vmatprep.mubr.f32.mxu0 %v9360_v20  ;;  %7042 = vmatprep.mubr.f32.mxu1 %v9268_v27  ;;  %v8263_v51 = vpop.eup %8262  ;;  %v9372_v57 = vadd.f32 %v8994_v37, %v1265_v47  ;;  %v1178_v43 = vadd.f32 1.0, %v8261_v31  ;;  %v9381_v27 = vld [vmem:[#allocation2 + $0x90] sm:$0xff] }
 0x14e   : > { %7642 = vmatpush3.bf16.msra.mxu0 %v9288_v17  ;;  %v8265_v38 = vpop.eup %8264  ;;  %1375 = vst [vmem:[#allocation2 + $0xf9] sm:$0xff] %v9367_v8  ;;  %1408 = vst [vmem:[#allocation3 + $0xf8] sm:$0xff] %v9367_v8  ;;  %v1268_v46 = vmul.f32 %v8263_v51, %v9079_v32  ;;  %8282 = vrcp.f32 %v1175_v25  ;;  %v9435_v51 = vld [vmem:[#allocation2 + $0xb0] sm:$0xff] }
 0x14f   : > { %1441 = vst [vmem:[#allocation4 + $0xf7] sm:$0xff] %v9367_v8  ;;  %7644 = vmatprep.subr.bf16.mxu0 %v7643_v9  ;;  %v8267_v63 = vpop.eup %8266  ;;  %1374 = vst [vmem:[#allocation2 + $0xf1] sm:$0xff] %v9372_v57  ;;  %v1267_v17 = vmul.f32 %v8265_v38, %v9093_v58  ;;  %8284 = vrcp.f32 %v1178_v43  ;;  %v9441_v38 = vld [vmem:[#allocation2 + $0xb8] sm:$0xff] }
 0x150   : > { %1407 = vst [vmem:[#allocation3 + $0xf0] sm:$0xff] %v9372_v57  ;;  %1440 = vst [vmem:[#allocation4 + $0xef] sm:$0xfe] %v9372_v57  ;;  %6621 = vmatmul.mubr.f32.gmra.mrb[46].mxu0 %v9381_v27  ;;  %7043 = vmatmul.mubr.f32.gmra.mrb[18].mxu1 %v9256_v62  ;;  %v8269_v32 = vpop.eup %8268  ;;  %v9392_v48 = vadd.f32 %v8994_v37, %v1268_v46  ;;  %v1177_v3 = vadd.f32 1.0, %v8267_v63 }
 0x151   : > { %6623 = vmatprep.mubr.f32.mxu0 %v9388_v34  ;;  %7045 = vmatprep.mubr.f32.mxu1 %v9374_v13  ;;  %v8271_v52 = vpop.eup %8270  ;;  %v9397_v33 = vadd.f32 %v8994_v37, %v1267_v17  ;;  %v1180_v58 = vadd.f32 1.0, %v8269_v32  ;;  %v9450_v32 = vld [vmem:[#allocation3 + $0xe8] sm:$0xff] }
 0x152   : > { %7646 = vmatpush3.bf16.msra.mxu0 %v7643_v9  ;;  %v8273_v5 = vpop.eup %8272  ;;  %1377 = vst [vmem:[#allocation2 + $0x111] sm:$0xff] %v9392_v48  ;;  %1410 = vst [vmem:[#allocation3 + $0x110] sm:$0xff] %v9392_v48  ;;  %v1270_v62 = vmul.f32 %v8271_v52, %v9121_v42  ;;  %8286 = vrcp.f32 %v1177_v3  ;;  %v5710_v9 = vld [vmem:[%s10922_s3 + $0x308] sm:$0xff]  ;;  %v9457_v52 = vld [vmem:[#allocation2 + $0xc0] sm:$0xff] }
 0x153   : > { %1443 = vst [vmem:[#allocation4 + $0x10f] sm:$0xff] %v9392_v48  ;;  %v8275_v18 = vpop.eup %8274  ;;  %1376 = vst [vmem:[#allocation2 + $0x109] sm:$0xff] %v9397_v33  ;;  %v1269_v10 = vmul.f32 %v8273_v5, %v9135_v22  ;;  %8288 = vrcp.f32 %v1180_v58  ;;  %v5709_v22 = vld [vmem:[%s10922_s3 + $0x300] sm:$0xff] }
 0x154   : > { %1409 = vst [vmem:[#allocation3 + $0x108] sm:$0xff] %v9397_v33  ;;  %1442 = vst [vmem:[#allocation4 + $0x107] sm:$0xfe] %v9397_v33  ;;  %6624 = vmatmul.mubr.f32.gmra.mrb[48].mxu0 %v9403_v44  ;;  %7046 = vmatmul.mubr.f32.gmra.mrb[20].mxu1 %v9306_v41  ;;  %v9414_v7 = vadd.f32 %v8994_v37, %v1270_v62  ;;  %v1179_v39 = vadd.f32 1.0, %v8275_v18  ;;  %v9429_v31 = vpack.c.bf16 %v5710_v9, %v5709_v22  ;;  %v9479_v18 = vld [vmem:[#allocation2 + $0xd0] sm:$0xff] }
 0x155   : > { %v8277_v42 = vpop.eup %8276  ;;  %6626 = vmatprep.mubr.f32.mxu0 %v9410_v14  ;;  %7048 = vmatprep.mubr.f32.mxu1 %v9300_v50  ;;  %v9427_v49 = vadd.f32 %v8994_v37, %v1269_v10 }
 0x156   : > { %v8279_v41 = vpop.eup %8278  ;;  %v1182_v47 = vadd.f32 1.0, %v8277_v42  ;;  %1379 = vst [vmem:[#allocation2 + $0x129] sm:$0xff] %v9414_v7  ;;  %1412 = vst [vmem:[#allocation3 + $0x128] sm:$0xff] %v9414_v7  ;;  %8290 = vrcp.f32 %v1179_v39  ;;  %7648 = vmatprep.subr.bf16.mxu0 %v9429_v31  ;;  %v9485_v42 = vld [vmem:[#allocation2 + $0xd8] sm:$0xff] }
 0x157   : > { %v8281_v25 = vpop.eup %8280  ;;  %1445 = vst [vmem:[#allocation4 + $0x127] sm:$0xff] %v9414_v7  ;;  %v1272_v50 = vmul.f32 %v8279_v41, %v9166_v23  ;;  %1378 = vst [vmem:[#allocation2 + $0x121] sm:$0xff] %v9427_v49 }
 0x158   : > { %1411 = vst [vmem:[#allocation3 + $0x120] sm:$0xff] %v9427_v49  ;;  %1444 = vst [vmem:[#allocation4 + $0x11f] sm:$0xfe] %v9427_v49  ;;  %8292 = vrcp.f32 %v1182_v47  ;;  %v1181_v43 = vadd.f32 1.0, %v8281_v25  ;;  %6627 = vmatmul.mubr.f32.gmra.mrb[50].mxu0 %v9435_v51  ;;  %7049 = vmatmul.mubr.f32.gmra.mrb[22].mxu1 %v9418_v55  ;;  %v8283_v46 = vpop.eup %8282  ;;  %v9509_v25 = vld [vmem:[#allocation2 + $0xe8] sm:$0xff] }
 0x159   : > { %v9445_v23 = vadd.f32 %v8994_v37, %v1272_v50  ;;  %6629 = vmatprep.mubr.f32.mxu0 %v9441_v38  ;;  %7051 = vmatprep.mubr.f32.mxu1 %v9348_v0  ;;  %v8285_v63 = vpop.eup %8284  ;;  %v1271_v17 = vmul.f32 %v8283_v46, %v9182_v6  ;;  %v9463_v6 = vld [vmem:[#allocation2 + $0xc8] sm:$0xff]  ;;  %v9540_v46 = vld [vmem:[#allocation2 + $0x100] sm:$0xff] }
 0x15a   : > { %8294 = vrcp.f32 %v1181_v43  ;;  %v1274_v3 = vmul.f32 %v8285_v63, %v9222_v2  ;;  %v9530_v43 = vld [vmem:[#allocation2 + $0xf0] sm:$0xff]  ;;  %v9543_v63 = vld [vmem:[#allocation2 + $0x108] sm:$0xff] }
 0x15b   : > { %1381 = vst [vmem:[#allocation2 + $0x141] sm:$0xff] %v9445_v23  ;;  %1414 = vst [vmem:[#allocation3 + $0x140] sm:$0xff] %v9445_v23  ;;  %v9460_v0 = vadd.f32 %v8994_v37, %v1271_v17  ;;  %v9550_v17 = vld [vmem:[#allocation2 + $0x110] sm:$0xff] }
 0x15c   : > { %1447 = vst [vmem:[#allocation4 + $0x13f] sm:$0xff] %v9445_v23  ;;  %6630 = vmatmul.mubr.f32.gmra.mrb[52].mxu0 %v9457_v52  ;;  %7052 = vmatmul.mubr.f32.gmra.mrb[24].mxu1 %v9342_v54  ;;  %v8287_v58 = vpop.eup %8286  ;;  %v9467_v5 = vadd.f32 %v8994_v37, %v1274_v3  ;;  %v9553_v3 = vld [vmem:[#allocation2 + $0x118] sm:$0xff] }
 0x15d   : > { %6632 = vmatprep.mubr.f32.mxu0 %v9463_v6  ;;  %7054 = vmatprep.mubr.f32.mxu1 %v9450_v32  ;;  %v8289_v2 = vpop.eup %8288  ;;  %1380 = vst [vmem:[#allocation2 + $0x139] sm:$0xff] %v9460_v0  ;;  %1413 = vst [vmem:[#allocation3 + $0x138] sm:$0xff] %v9460_v0  ;;  %v1273_v62 = vmul.f32 %v8287_v58, %v9230_v15  ;;  %v9558_v58 = vld [vmem:[#allocation3 + $0x148] sm:$0xff] }
 0x15e   : > { %1446 = vst [vmem:[#allocation4 + $0x137] sm:$0xfe] %v9460_v0  ;;  %1383 = vst [vmem:[#allocation2 + $0x159] sm:$0xff] %v9467_v5  ;;  %v1276_v54 = vmul.f32 %v8289_v2, %v9271_v11  ;;  %v9493_v11 = vld [vmem:[#allocation3 + $0x100] sm:$0xff]  ;;  %v9560_v2 = vld [vmem:[#allocation2 + $0x120] sm:$0xff] }
 0x15f   : > { %1416 = vst [vmem:[#allocation3 + $0x158] sm:$0xff] %v9467_v5  ;;  %1449 = vst [vmem:[#allocation4 + $0x157] sm:$0xff] %v9467_v5  ;;  %v9482_v10 = vadd.f32 %v8994_v37, %v1273_v62  ;;  %v9568_v62 = vld [vmem:[#allocation2 + $0x130] sm:$0xff] }
 0x160   : > { %6633 = vmatmul.mubr.f32.gmra.mrb[54].mxu0 %v9479_v18  ;;  %7055 = vmatmul.mubr.f32.gmra.mrb[26].mxu1 %v9372_v57  ;;  %v8291_v15 = vpop.eup %8290  ;;  %v9489_v39 = vadd.f32 %v8994_v37, %v1276_v54  ;;  %10955 = vst [vmem:[#allocation8_spill] sm:$0xff] %v9568_v62 }
 0x161   : > { %6635 = vmatprep.mubr.f32.mxu0 %v9485_v42  ;;  %7057 = vmatprep.mubr.f32.mxu1 %v9367_v8  ;;  %1382 = vst [vmem:[#allocation2 + $0x151] sm:$0xff] %v9482_v10  ;;  %1415 = vst [vmem:[#allocation3 + $0x150] sm:$0xff] %v9482_v10  ;;  %v1275_v9 = vmul.f32 %v8291_v15, %v9282_v16  ;;  %v9503_v8 = vld [vmem:[#allocation2 + $0xe0] sm:$0xff]  ;;  %v9576_v15 = vld [vmem:[#allocation3 + $0x160] sm:$0xff] }
 0x162   : > { %v8293_v22 = vpop.eup %8292  ;;  %1448 = vst [vmem:[#allocation4 + $0x14f] sm:$0xfe] %v9482_v10  ;;  %1385 = vst [vmem:[#allocation2 + $0x171] sm:$0xff] %v9489_v39 }
 0x163   : > { %1418 = vst [vmem:[#allocation3 + $0x170] sm:$0xff] %v9489_v39  ;;  %1451 = vst [vmem:[#allocation4 + $0x16f] sm:$0xff] %v9489_v39  ;;  %v1278_v57 = vmul.f32 %v8293_v22, %v9309_v28  ;;  %v9506_v47 = vadd.f32 %v8994_v37, %v1275_v9  ;;  %v9521_v28 = vld [vmem:[#allocation3 + $0x118] sm:$0xff] }
 0x164   : > { %v8295_v41 = vpop.eup %8294  ;;  %6636 = vmatmul.mubr.f32.gmra.mrb[56].mxu0 %v9503_v8  ;;  %7058 = vmatmul.mubr.f32.gmra.mrb[28].mxu1 %v9493_v11  ;;  %v9571_v54 = vld [vmem:[#allocation2 + $0x138] sm:$0xff]  ;;  %v9578_v22 = vld [vmem:[#allocation2 + $0x140] sm:$0xff]  ;;  %v9581_v9 = vld [vmem:[#allocation2 + $0x148] sm:$0xff] }
 0x165   : > { %v9513_v16 = vadd.f32 %v8994_v37, %v1278_v57  ;;  %v1277_v50 = vmul.f32 %v8295_v41, %v9320_v59  ;;  %6638 = vmatprep.mubr.f32.mxu0 %v9509_v25  ;;  %7060 = vmatprep.mubr.f32.mxu1 %v9397_v33  ;;  %1384 = vst [vmem:[#allocation2 + $0x169] sm:$0xff] %v9506_v47  ;;  %1417 = vst [vmem:[#allocation3 + $0x168] sm:$0xff] %v9506_v47  ;;  %v8424_v37 = vld [vmem:[%s10927_s8] ss:$0 sm:$0xff]  ;;  %v9533_v33 = vld [vmem:[#allocation2 + $0xf8] sm:$0xff] }
 0x166   : > { %1450 = vst [vmem:[#allocation4 + $0x167] sm:$0xfe] %v9506_v47  ;;  %10956 = vst [vmem:[#allocation9_spill] sm:$0xff] %v9571_v54  ;;  %v9586_v57 = vld [vmem:[#allocation3 + $0x178] sm:$0xff] }
 0x167   : > { %10952 = vst [vmem:[#allocation5_spill] sm:$0xff] %v9513_v16  ;;  %1387 = vst [vmem:[#allocation2 + $0x189] sm:$0xff] %v9513_v16  ;;  %v9528_v59 = vadd.f32 %v8424_v37, %v1277_v50  ;;  %v9596_v37 = vld [vmem:[#allocation2 + $0x160] sm:$0xff] }
 0x168   : > { %1453 = vst [vmem:[#allocation4 + $0x187] sm:$0xff] %v9513_v16  ;;  %6639 = vmatmul.mubr.f32.gmra.mrb[58].mxu0 %v9530_v43  ;;  %7061 = vmatmul.mubr.f32.gmra.mrb[30].mxu1 %v9392_v48  ;;  %v9548_v48 = vld [vmem:[#allocation3 + $0x130] sm:$0xff]  ;;  %10957 = vst [vmem:[#allocation10_spill] sm:$0xff] %v9578_v22  ;;  %v9588_v41 = vld [vmem:[#allocation2 + $0x150] sm:$0xff] }
 0x169   : > { %10953 = vst [vmem:[#allocation6_spill] sm:$0xff] %v9528_v59  ;;  %1386 = vst [vmem:[#allocation2 + $0x181] sm:$0xff] %v9528_v59  ;;  %6641 = vmatprep.mubr.f32.mxu0 %v9533_v33  ;;  %7063 = vmatprep.mubr.f32.mxu1 %v9521_v28  ;;  %v9591_v50 = vld [vmem:[#allocation2 + $0x158] sm:$0xff] }
 0x16a   : > { %1452 = vst [vmem:[#allocation4 + $0x17f] sm:$0xfe] %v9528_v59  ;;  %10958 = vst [vmem:[#allocation11_spill] sm:$0xff] %v9581_v9 }
 0x16b   : > { %10959 = vst [vmem:[#allocation12_spill] sm:$0xff] %v9586_v57  ;;  %10960 = vst [vmem:[#allocation13_spill] sm:$0xff] %v9588_v41 }
 0x16c   : > { %6642 = vmatmul.mubr.f32.gmra.mrb[60].mxu0 %v9540_v46  ;;  %7064 = vmatmul.mubr.f32.gmra.mrb[32].mxu1 %v9427_v49  ;;  %10961 = vst [vmem:[#allocation14_spill] sm:$0xff] %v9591_v50  ;;  %10962 = vst [vmem:[#allocation15_spill] sm:$0xff] %v9596_v37 }
 0x16d   : > { %6644 = vmatprep.mubr.f32.mxu0 %v9543_v63  ;;  %7066 = vmatprep.mubr.f32.mxu1 %v9414_v7  ;;  %v9563_v7 = vld [vmem:[#allocation2 + $0x128] sm:$0xff] }
 0x16e   : > { %10954 = vst [vmem:[#allocation7_spill] sm:$0xff] %v9563_v7 }
 0x170   : > { %6645 = vmatmul.mubr.f32.gmra.mrb[62].mxu0 %v9550_v17  ;;  %7067 = vmatmul.mubr.f32.gmra.mrb[34].mxu1 %v9548_v48 }
 0x171   : > { %6647 = vmatprep.mubr.f32.mxu0 %v9553_v3  ;;  %7069 = vmatprep.mubr.f32.mxu1 %v9460_v0 }
 0x174   : > { %6648 = vmatmul.mubr.f32.gmra.mrb[64].mxu0 %v9560_v2  ;;  %7070 = vmatmul.mubr.f32.gmra.mrb[36].mxu1 %v9445_v23 }
 0x175   : > { %6650 = vmatprep.mubr.f32.mxu0 %v9563_v7  ;;  %7072 = vmatprep.mubr.f32.mxu1 %v9558_v58  ;;  %v5777_v7 = vld [vmem:[%s10922_s3 + $0x120] sm:$0xff] }
 0x178   : > { %6651 = vmatmul.mubr.f32.gmra.mrb[66].mxu0 %v9568_v62  ;;  %7073 = vmatmul.mubr.f32.gmra.mrb[38].mxu1 %v9482_v10  ;;  %v3338_v62 = vld [vmem:[#allocation3 + $0x38] sm:$0xff] }
 0x179   : > { %6653 = vmatprep.mubr.f32.mxu0 %v9571_v54  ;;  %7075 = vmatprep.mubr.f32.mxu1 %v9467_v5  ;;  %v9615_v54 = vld [vmem:[#allocation2 + $0x178] sm:$0xff] }
 0x17a   : > { %10966 = vst [vmem:[#allocation19_spill] sm:$0xff] %v9615_v54 }
 0x17c   : > { %6654 = vmatmul.mubr.f32.gmra.mrb[68].mxu0 %v9578_v22  ;;  %7076 = vmatmul.mubr.f32.gmra.mrb[40].mxu1 %v9576_v15  ;;  %v9606_v22 = vld [vmem:[#allocation2 + $0x170] sm:$0xff] }
 0x17d   : > { %6656 = vmatprep.mubr.f32.mxu0 %v9581_v9  ;;  %7078 = vmatprep.mubr.f32.mxu1 %v9506_v47  ;;  %v9599_v9 = vld [vmem:[#allocation2 + $0x168] sm:$0xff]  ;;  %10965 = vst [vmem:[#allocation18_spill] sm:$0xff] %v9606_v22 }
 0x17e   : > { %10963 = vst [vmem:[#allocation16_spill] sm:$0xff] %v9599_v9 }
 0x180   : > { %6657 = vmatmul.mubr.f32.gmra.mrb[70].mxu0 %v9588_v41  ;;  %7079 = vmatmul.mubr.f32.gmra.mrb[42].mxu1 %v9489_v39  ;;  %v9604_v41 = vld [vmem:[#allocation3 + $0x190] sm:$0xff] }
 0x181   : > { %6659 = vmatprep.mubr.f32.mxu0 %v9591_v50  ;;  %7081 = vmatprep.mubr.f32.mxu1 %v9586_v57  ;;  %10964 = vst [vmem:[#allocation17_spill] sm:$0xff] %v9604_v41  ;;  %v5775_v50 = vld [vmem:[%s10922_s3 + $0x110] sm:$0xff]  ;;  %v1580_v57 = vld [vmem:[#allocation2 + $0x188] sm:$0xff] }
 0x184   : > { %6660 = vmatmul.mubr.f32.gmra.mrb[72].mxu0 %v9596_v37  ;;  %7082 = vmatmul.mubr.f32.gmra.mrb[44].mxu1 %v9528_v59  ;;  %v5776_v37 = vld [vmem:[%s10922_s3 + $0x118] sm:$0xff]  ;;  %v1579_v59 = vld [vmem:[#allocation2 + $0x180] sm:$0xff] }
 0x185   : > { %6662 = vmatprep.mubr.f32.mxu0 %v9599_v9  ;;  %7084 = vmatprep.mubr.f32.mxu1 %v9513_v16  ;;  %v3337_v9 = vld [vmem:[#allocation3 + $0x30] sm:$0xff]  ;;  %v7779_v16 = vpack.c.bf16 %v5776_v37, %v5775_v50  ;;  %v5780_v37 = vld [vmem:[%s10922_s3 + $0x138] sm:$0xff] }
 0x188   : > { %6663 = vmatmul.mubr.f32.gmra.mrb[74].mxu0 %v9606_v22  ;;  %7085 = vmatmul.mubr.f32.gmra.mrb[46].mxu1 %v9604_v41  ;;  %v5778_v22 = vld [vmem:[%s10922_s3 + $0x128] sm:$0xff] }
 0x189   : > { %6665 = vmatprep.mubr.f32.mxu0 %v9615_v54  ;;  %7119 = vmatprep.mubr.f32.mxu1 %v3337_v9  ;;  %v1581_v9 = vld [vmem:[#allocation2 + $0x190] sm:$0xff]  ;;  %v7783_v50 = vpack.c.bf16 %v5778_v22, %v5777_v7  ;;  %v3341_v54 = vld [vmem:[#allocation3 + $0x50] sm:$0xff]  ;;  %v5782_v41 = vld [vmem:[%s10922_s3 + $0x148] sm:$0xff] }
 0x18a   : > { %v3343_v7 = vld [vmem:[#allocation3 + $0x60] sm:$0xff] }
 0x18c   : > { %6666 = vmatmul.mubr.f32.gmra.mrb[76].mxu0 %v1579_v59  ;;  %7120 = vmatmul.mubr.f32.vlgmr.msra.gmra.mrb[0].mxu1 %v3338_v62  ;;  %v5779_v59 = vld [vmem:[%s10922_s3 + $0x130] sm:$0xff]  ;;  %v3340_v62 = vld [vmem:[#allocation3 + $0x48] sm:$0xff] }
 0x18d   : > { %6668 = vmatprep.mubr.f32.mxu0 %v1580_v57  ;;  %7778 = vmatpush3.bf16.msra.mxu1 %v9297_v26  ;;  %v5711_v26 = vld [vmem:[%s10922_s3 + $0x310] sm:$0xff]  ;;  %v9639_v57 = vld [vmem:[#allocation2] sm:$0xff]  ;;  %v7787_v22 = vpack.c.bf16 %v5780_v37, %v5779_v59  ;;  %v3344_v59 = vld [vmem:[#allocation3 + $0x68] sm:$0xff] }
 0x18e   : > { %7122 = vmatprep.mubr.f32.mxu1 %v9062_v45  ;;  %7780 = vmatprep.subr.bf16.mxu1 %v7779_v16  ;;  %v5712_v45 = vld [vmem:[%s10922_s3 + $0x318] sm:$0xff]  ;;  %10967 = vst [vmem:[#allocation20_spill] sm:$0xff] %v9639_v57  ;;  %v5783_v37 = vld [vmem:[%s10922_s3 + $0x150] sm:$0xff] }
 0x190   : > { %6669 = vmatmul.mubr.f32.gmra.mrb[78].mxu0 %v1581_v9  ;;  %7123 = vmatmul.mubr.f32.gmra.mrb[48].mxu1 %v3340_v62  ;;  %v5781_v9 = vld [vmem:[%s10922_s3 + $0x140] sm:$0xff]  ;;  %v7651_v62 = vpack.c.bf16 %v5712_v45, %v5711_v26  ;;  %v8426_v45 = vld [vmem:[#allocation2 + $0x18] sm:$0xff] }
 0x191   : > { %6703 = vmatprep.mubr.f32.mxu0 %v9639_v57  ;;  %7125 = vmatprep.mubr.f32.mxu1 %v3341_v54  ;;  %v5714_v54 = vld [vmem:[%s10922_s3 + $0x328] sm:$0xff] }
 0x192   : > { %7782 = vmatpush3.bf16.msra.mxu1 %v7779_v16  ;;  %v5713_v16 = vld [vmem:[%s10922_s3 + $0x320] sm:$0xff] }
 0x193   : > { %7784 = vmatprep.subr.bf16.mxu1 %v7783_v50  ;;  %v7655_v26 = vpack.c.bf16 %v5714_v54, %v5713_v16  ;;  %v5785_v54 = vld [vmem:[%s10922_s3 + $0x160] sm:$0xff] }
 0x194   : > { %6704 = vmatmul.mubr.f32.vlgmr.msra.gmra.mrb[32].mxu0 %v9639_v57  ;;  %7126 = vmatmul.mubr.f32.gmra.mrb[50].mxu1 %v9098_v19  ;;  %v7791_v19 = vpack.c.bf16 %v5782_v41, %v5781_v9  ;;  %v5716_v41 = vld [vmem:[%s10922_s3 + $0x338] sm:$0xff]  ;;  %v3347_v9 = vld [vmem:[#allocation3 + $0x80] sm:$0xff] }
 0x195   : > { %6706 = vmatprep.mubr.f32.mxu0 %v9639_v57  ;;  %7128 = vmatprep.mubr.f32.mxu1 %v3343_v7  ;;  %v5784_v57 = vld [vmem:[%s10922_s3 + $0x158] sm:$0xff]  ;;  %v3346_v7 = vld [vmem:[#allocation3 + $0x78] sm:$0xff] }
 0x196   : > { %7786 = vmatpush3.bf16.msra.mxu1 %v7783_v50  ;;  %7650 = vmatpush3.bf16.msra.mxu0 %v9429_v31  ;;  %v5715_v31 = vld [vmem:[%s10922_s3 + $0x330] sm:$0xff]  ;;  %v8427_v50 = vld [vmem:[#allocation2 + $0x20] sm:$0xff]  ;;  %v7795_v16 = vpack.c.bf16 %v5784_v57, %v5783_v37  ;;  %v5718_v57 = vld [vmem:[%s10922_s3 + $0x348] sm:$0xff] }
 0x197   : > { %7788 = vmatprep.subr.bf16.mxu1 %v7787_v22  ;;  %7652 = vmatprep.subr.bf16.mxu0 %v7651_v62 }
 0x198   : > { %6707 = vmatmul.mubr.f32.gmra.mrb[80].mxu0 %v8426_v45  ;;  %7129 = vmatmul.mubr.f32.gmra.mrb[6].mxu1 %v3344_v59  ;;  %v7659_v59 = vpack.c.bf16 %v5716_v41, %v5715_v31  ;;  %v8428_v45 = vld [vmem:[#allocation2 + $0x28] sm:$0xff]  ;;  %v5787_v31 = vld [vmem:[%s10922_s3 + $0x170] sm:$0xff] }
 0x199   : > { %6709 = vmatprep.mubr.f32.mxu0 %v8427_v50  ;;  %7131 = vmatprep.mubr.f32.mxu1 %v9194_v36  ;;  %v5786_v50 = vld [vmem:[%s10922_s3 + $0x168] sm:$0xff]  ;;  %v5717_v36 = vld [vmem:[%s10922_s3 + $0x340] sm:$0xff] }
 0x19a   : > { %7790 = vmatpush3.bf16.msra.mxu1 %v7787_v22  ;;  %7654 = vmatpush3.bf16.msra.mxu0 %v7651_v62  ;;  %v3349_v22 = vld [vmem:[#allocation3 + $0x90] sm:$0xff]  ;;  %v7799_v62 = vpack.c.bf16 %v5786_v50, %v5785_v54  ;;  %v7663_v37 = vpack.c.bf16 %v5718_v57, %v5717_v36  ;;  %v5723_v50 = vld [vmem:[%s10922_s3 + $0x370] sm:$0xff]  ;;  %v3356_v36 = vld [vmem:[#allocation3 + $0xc8] sm:$0xff] }
 0x19b   : > { %7792 = vmatprep.subr.bf16.mxu1 %v7791_v19  ;;  %7656 = vmatprep.subr.bf16.mxu0 %v7655_v26  ;;  %v2179_v57 = vld [vmem:[#allocation2 + $0x38] sm:$0xff] }
 0x19c   : > { %6710 = vmatmul.mubr.f32.gmra.mrb[82].mxu0 %v8428_v45  ;;  %7132 = vmatmul.mubr.f32.gmra.mrb[52].mxu1 %v3346_v7  ;;  %v5721_v7 = vld [vmem:[%s10922_s3 + $0x360] sm:$0xff] }
 0x19d   : > { %6712 = vmatprep.mubr.f32.mxu0 %v9107_v12  ;;  %7134 = vmatprep.mubr.f32.mxu1 %v3347_v9  ;;  %v5788_v12 = vld [vmem:[%s10922_s3 + $0x178] sm:$0xff]  ;;  %v5722_v9 = vld [vmem:[%s10922_s3 + $0x368] sm:$0xff]  ;;  %v3353_v45 = vld [vmem:[#allocation3 + $0xb0] sm:$0xff] }
 0x19e   : > { %7794 = vmatpush3.bf16.msra.mxu1 %v7791_v19  ;;  %7658 = vmatpush3.bf16.msra.mxu0 %v7655_v26  ;;  %v5719_v19 = vld [vmem:[%s10922_s3 + $0x350] sm:$0xff]  ;;  %v5720_v26 = vld [vmem:[%s10922_s3 + $0x358] sm:$0xff]  ;;  %v7671_v54 = vpack.c.bf16 %v5722_v9, %v5721_v7  ;;  %v2181_v7 = vld [vmem:[#allocation2 + $0x48] sm:$0xff] }
 0x19f   : > { %7796 = vmatprep.subr.bf16.mxu1 %v7795_v16  ;;  %7660 = vmatprep.subr.bf16.mxu0 %v7659_v59  ;;  %v7667_v41 = vpack.c.bf16 %v5720_v26, %v5719_v19  ;;  %v5798_v19 = vld [vmem:[%s10922_s3 + $0x2c8] sm:$0xff]  ;;  %v5729_v26 = vld [vmem:[%s10922_s3 + $0xa0] sm:$0xff]  ;;  %v2182_v9 = vld [vmem:[#allocation2 + $0x50] sm:$0xff] }
 0x1a0   : > { %6713 = vmatmul.mubr.f32.gmra.mrb[38].mxu0 %v9138_v40  ;;  %7135 = vmatmul.mubr.f32.gmra.mrb[54].mxu1 %v9245_v21  ;;  %v3350_v40 = vld [vmem:[#allocation3 + $0x98] sm:$0xff]  ;;  %v7803_v21 = vpack.c.bf16 %v5788_v12, %v5787_v31  ;;  %v5797_v31 = vld [vmem:[%s10922_s3 + $0x2c0] sm:$0xff] }
 0x1a1   : > { %6715 = vmatprep.mubr.f32.mxu0 %v9168_v4  ;;  %7137 = vmatprep.mubr.f32.mxu1 %v3349_v22  ;;  %v5789_v4 = vld [vmem:[%s10922_s3 + $0x280] sm:$0xff] }
 0x1a2   : > { %7798 = vmatpush3.bf16.msra.mxu1 %v7795_v16  ;;  %7662 = vmatpush3.bf16.msra.mxu0 %v7659_v59  ;;  %v5790_v16 = vld [vmem:[%s10922_s3 + $0x288] sm:$0xff]  ;;  %v2180_v22 = vld [vmem:[#allocation2 + $0x40] sm:$0xff] }
 0x1a3   : > { %7800 = vmatprep.subr.bf16.mxu1 %v7799_v62  ;;  %7664 = vmatprep.subr.bf16.mxu0 %v7663_v37  ;;  %v9714_v59 = vpack.c.bf16 %v5790_v16, %v5789_v4  ;;  %v7823_v4 = vpack.c.bf16 %v5798_v19, %v5797_v31  ;;  %v5799_v16 = vld [vmem:[%s10922_s3 + $0x2d0] sm:$0xff]  ;;  %v2191_v31 = vld [vmem:[#allocation2 + $0x98] sm:$0xff] }
 0x1a4   : > { %6716 = vmatmul.mubr.f32.gmra.mrb[84].mxu0 %v9185_v60  ;;  %7138 = vmatmul.mubr.f32.gmra.mrb[12].mxu1 %v3350_v40  ;;  %v3352_v60 = vld [vmem:[#allocation3 + $0xa8] sm:$0xff]  ;;  %v5730_v40 = vld [vmem:[%s10922_s3 + $0xa8] sm:$0xff] }
 0x1a5   : > { %6718 = vmatprep.mubr.f32.mxu0 %v9224_v29  ;;  %7140 = vmatprep.mubr.f32.mxu1 %v9339_v30  ;;  %v5724_v29 = vld [vmem:[%s10922_s3 + $0x378] sm:$0xff] }
 0x1a6   : > { %7802 = vmatpush3.bf16.msra.mxu1 %v7799_v62  ;;  %7666 = vmatpush3.bf16.msra.mxu0 %v7663_v37  ;;  %v7675_v30 = vpack.c.bf16 %v5724_v29, %v5723_v50  ;;  %v9827_v62 = vld [vmem:[#allocation4 + $0x30] sm:$0xff]  ;;  %v2183_v50 = vld [vmem:[#allocation2 + $0x58] sm:$0xff]  ;;  %v9862_v29 = vld [vmem:[#allocation4 + $0x48] sm:$0xff] }
 0x1a7   : > { %7804 = vmatprep.subr.bf16.mxu1 %v7803_v21  ;;  %7668 = vmatprep.subr.bf16.mxu0 %v7667_v41 }
 0x1a8   : > { %6719 = vmatmul.mubr.f32.gmra.mrb[86].mxu0 %v9233_v24  ;;  %7141 = vmatmul.mubr.f32.gmra.mrb[56].mxu1 %v3352_v60  ;;  %v3355_v24 = vld [vmem:[#allocation3 + $0xc0] sm:$0xff]  ;;  %v7687_v60 = vpack.c.bf16 %v5730_v40, %v5729_v26  ;;  %v2192_v26 = vld [vmem:[#allocation2 + $0xa0] sm:$0xff] }
 0x1a9   : > { %6721 = vmatprep.mubr.f32.mxu0 %v9273_v53  ;;  %7143 = vmatprep.mubr.f32.mxu1 %v3353_v45  ;;  %v3358_v53 = vld [vmem:[#allocation3 + $0xd8] sm:$0xff]  ;;  %v5732_v45 = vld [vmem:[%s10922_s3 + $0xb8] sm:$0xff]  ;;  %v9940_v40 = vld [vmem:[#allocation4 + $0x90] sm:$0xff] }
 0x1aa   : > { %7806 = vmatpush3.bf16.msra.mxu1 %v7803_v21  ;;  %7670 = vmatpush3.bf16.msra.mxu0 %v7667_v41  ;;  %v9843_v21 = vld [vmem:[#allocation4 + $0x38] sm:$0xff]  ;;  %v9845_v41 = vld [vmem:[#allocation4 + $0x40] sm:$0xff] }
 0x1ab   : > { %7672 = vmatprep.subr.bf16.mxu0 %v7671_v54  ;;  %7808 = vmatprep.subr.bf16.mxu1 %v9714_v59 }
 0x1ac   : > { %6722 = vmatmul.mubr.f32.gmra.mrb[44].mxu0 %v9285_v56  ;;  %7144 = vmatmul.mubr.f32.gmra.mrb[58].mxu1 %v9374_v13  ;;  %v3359_v56 = vld [vmem:[#allocation3 + $0xe0] sm:$0xff]  ;;  %v5726_v13 = vld [vmem:[%s10922_s3 + $0x88] sm:$0xff] }
 0x1ad   : > { %6724 = vmatprep.mubr.f32.mxu0 %v9311_v1  ;;  %7146 = vmatprep.mubr.f32.mxu1 %v3355_v24  ;;  %v5725_v1 = vld [vmem:[%s10922_s3 + $0x80] sm:$0xff]  ;;  %v9864_v24 = vld [vmem:[#allocation4 + $0x50] sm:$0xff] }
 0x1ae   : > { %7674 = vmatpush3.bf16.msra.mxu0 %v7671_v54  ;;  %v5800_v54 = vld [vmem:[%s10922_s3 + $0x2d8] sm:$0xff] }
 0x1af   : > { %7676 = vmatprep.subr.bf16.mxu0 %v7675_v30 }
 0x1b0   : > { %6725 = vmatmul.mubr.f32.gmra.mrb[88].mxu0 %v9323_v35  ;;  %7147 = vmatmul.mubr.f32.gmra.mrb[18].mxu1 %v3356_v36  ;;  %v9739_v35 = vpack.c.bf16 %v5726_v13, %v5725_v1  ;;  %v7827_v36 = vpack.c.bf16 %v5800_v54, %v5799_v16  ;;  %v5802_v1 = vld [vmem:[%s10922_s3 + $0x2e8] sm:$0xff]  ;;  %v5733_v13 = vld [vmem:[%s10922_s3 + $0xc0] sm:$0xff] }
 0x1b1   : > { %6727 = vmatprep.mubr.f32.mxu0 %v9351_v61  ;;  %7149 = vmatprep.mubr.f32.mxu1 %v9418_v55  ;;  %v3361_v61 = vld [vmem:[#allocation3 + $0xf0] sm:$0xff] }
 0x1b2   : > { %7678 = vmatpush3.bf16.msra.mxu0 %v7675_v30  ;;  %v3365_v55 = vld [vmem:[#allocation3 + $0x110] sm:$0xff] }
 0x1b3   : > { %7680 = vmatprep.subr.bf16.mxu0 %v9739_v35  ;;  %v2184_v30 = vld [vmem:[#allocation2 + $0x60] sm:$0xff] }
 0x1b4   : > { %6728 = vmatmul.mubr.f32.gmra.mrb[90].mxu0 %v9360_v20  ;;  %7150 = vmatmul.mubr.f32.gmra.mrb[60].mxu1 %v3358_v53  ;;  %v3362_v20 = vld [vmem:[#allocation3 + $0xf8] sm:$0xff]  ;;  %v5801_v53 = vld [vmem:[%s10922_s3 + $0x2e0] sm:$0xff] }
 0x1b5   : > { %6730 = vmatprep.mubr.f32.mxu0 %v9381_v27  ;;  %7152 = vmatprep.mubr.f32.mxu1 %v3359_v56  ;;  %v3364_v27 = vld [vmem:[#allocation3 + $0x108] sm:$0xff] }
 0x1b8   : > { %6731 = vmatmul.mubr.f32.gmra.mrb[50].mxu0 %v9388_v34  ;;  %7153 = vmatmul.mubr.f32.gmra.mrb[62].mxu1 %v9450_v32  ;;  %v3368_v34 = vld [vmem:[#allocation3 + $0x128] sm:$0xff] }
 0x1b9   : > { %6733 = vmatprep.mubr.f32.mxu0 %v9403_v44  ;;  %7155 = vmatprep.mubr.f32.mxu1 %v3361_v61  ;;  %v10968_v44 = vld [vmem:[#allocation7_spill] sm:$0xff]  ;;  %v10974_v32 = vld [vmem:[#allocation10_spill] sm:$0xff] }
 0x1ba   : > { %v9880_v61 = vld [vmem:[#allocation4 + $0x58] sm:$0xff] }
 0x1bc   : > { %6734 = vmatmul.mubr.f32.gmra.mrb[92].mxu0 %v9410_v14  ;;  %7156 = vmatmul.mubr.f32.gmra.mrb[24].mxu1 %v3362_v20  ;;  %v10969_v14 = vld [vmem:[#allocation12_spill] sm:$0xff]  ;;  %v2186_v20 = vld [vmem:[#allocation2 + $0x70] sm:$0xff] }
 0x1bd   : > { %6736 = vmatprep.mubr.f32.mxu0 %v9435_v51  ;;  %7158 = vmatprep.mubr.f32.mxu1 %v9493_v11  ;;  %v10971_v51 = vld [vmem:[#allocation6_spill] sm:$0xff] }
 0x1c0   : > { %6737 = vmatmul.mubr.f32.gmra.mrb[94].mxu0 %v9441_v38  ;;  %7159 = vmatmul.mubr.f32.gmra.mrb[64].mxu1 %v3364_v27  ;;  %v10972_v38 = vld [vmem:[#allocation9_spill] sm:$0xff]  ;;  %v2185_v27 = vld [vmem:[#allocation2 + $0x68] sm:$0xff] }
 0x1c1   : > { %6739 = vmatprep.mubr.f32.mxu0 %v9457_v52  ;;  %7161 = vmatprep.mubr.f32.mxu1 %v3365_v55  ;;  %v10975_v52 = vld [vmem:[#allocation17_spill] sm:$0xff]  ;;  %v9882_v55 = vld [vmem:[#allocation4 + $0x60] sm:$0xff] }
 0x1c4   : > { %6740 = vmatmul.mubr.f32.gmra.mrb[56].mxu0 %v9463_v6  ;;  %7162 = vmatmul.mubr.f32.gmra.mrb[66].mxu1 %v9521_v28  ;;  %v10977_v6 = vld [vmem:[#allocation20_spill] sm:$0xff]  ;;  %v10982_v28 = vld [vmem:[#allocation18_spill] sm:$0xff] }
 0x1c5   : > { %6742 = vmatprep.mubr.f32.mxu0 %v9479_v18  ;;  %7164 = vmatprep.mubr.f32.mxu1 %v9427_v49  ;;  %v10970_v49 = vld [vmem:[#allocation8_spill] sm:$0xff]  ;;  %v5791_v18 = vld [vmem:[%s10922_s3 + $0x290] sm:$0xff] }
 0x1c8   : > { %6743 = vmatmul.mubr.f32.gmra.mrb[96].mxu0 %v9485_v42  ;;  %7165 = vmatmul.mubr.f32.gmra.mrb[30].mxu1 %v3368_v34  ;;  %v10979_v42 = vld [vmem:[#allocation14_spill] sm:$0xff]  ;;  %v7831_v34 = vpack.c.bf16 %v5802_v1, %v5801_v53  ;;  %v2196_v53 = vld [vmem:[#allocation2 + $0xc0] sm:$0xff]  ;;  %v9958_v1 = vld [vmem:[#allocation4 + $0xb0] sm:$0xff] }
 0x1c9   : > { %6745 = vmatprep.mubr.f32.mxu0 %v9503_v8  ;;  %7167 = vmatprep.mubr.f32.mxu1 %v9548_v48  ;;  %v10981_v8 = vld [vmem:[#allocation16_spill] sm:$0xff]  ;;  %v5795_v48 = vld [vmem:[%s10922_s3 + $0x2b0] sm:$0xff] }
 0x1cc   : > { %6746 = vmatmul.mubr.f32.gmra.mrb[98].mxu0 %v9509_v25  ;;  %7168 = vmatmul.mubr.f32.gmra.mrb[68].mxu1 %v9460_v0  ;;  %v10976_v0 = vld [vmem:[#allocation11_spill] sm:$0xff]  ;;  %v5794_v25 = vld [vmem:[%s10922_s3 + $0x2a8] sm:$0xff] }
 0x1cd   : > { %6748 = vmatprep.mubr.f32.mxu0 %v9530_v43  ;;  %7170 = vmatprep.mubr.f32.mxu1 %v9445_v23  ;;  %v10973_v23 = vld [vmem:[#allocation5_spill] sm:$0xff]  ;;  %v9806_v43 = vld [vmem:[#allocation4 + $0x20] sm:$0xff] }
 0x1d0   : > { %6749 = vmatmul.mubr.f32.gmra.mrb[62].mxu0 %v9533_v33  ;;  %7171 = vmatmul.mubr.f32.gmra.mrb[70].mxu1 %v9558_v58  ;;  %v2178_v33 = vld [vmem:[#allocation2 + $0x30] sm:$0xff] }
 0x1d1   : > { %6751 = vmatprep.mubr.f32.mxu0 %v9540_v46  ;;  %7173 = vmatprep.mubr.f32.mxu1 %v9482_v10  ;;  %v5792_v10 = vld [vmem:[%s10922_s3 + $0x298] sm:$0xff]  ;;  %v5727_v58 = vld [vmem:[%s10922_s3 + $0x90] sm:$0xff] }
 0x1d2   : > { %v7811_v11 = vpack.c.bf16 %v5792_v10, %v5791_v18  ;;  %v9808_v46 = vld [vmem:[#allocation4 + $0x18] sm:$0xff] }
 0x1d4   : > { %6752 = vmatmul.mubr.f32.gmra.mrb[100].mxu0 %v9543_v63  ;;  %7174 = vmatmul.mubr.f32.gmra.mrb[36].mxu1 %v9467_v5  ;;  %v10978_v5 = vld [vmem:[#allocation13_spill] sm:$0xff] }
 0x1d5   : > { %6754 = vmatprep.mubr.f32.mxu0 %v9550_v17  ;;  %7176 = vmatprep.mubr.f32.mxu1 %v9576_v15  ;;  %v10983_v17 = vld [vmem:[#allocation19_spill] sm:$0xff]  ;;  %v9825_v15 = vld [vmem:[#allocation4 + $0x28] sm:$0xff] }
 0x1d8   : > { %6755 = vmatmul.mubr.f32.gmra.mrb[102].mxu0 %v9553_v3  ;;  %7177 = vmatmul.mubr.f32.gmra.mrb[72].mxu1 %v9506_v47  ;;  %v5793_v47 = vld [vmem:[%s10922_s3 + $0x2a0] sm:$0xff]  ;;  %v5796_v3 = vld [vmem:[%s10922_s3 + $0x2b8] sm:$0xff] }
 0x1d9   : > { %6757 = vmatprep.mubr.f32.mxu0 %v9560_v2  ;;  %7179 = vmatprep.mubr.f32.mxu1 %v9489_v39  ;;  %v10980_v39 = vld [vmem:[#allocation15_spill] sm:$0xff]  ;;  %v7815_v63 = vpack.c.bf16 %v5794_v25, %v5793_v47  ;;  %v5728_v2 = vld [vmem:[%s10922_s3 + $0x98] sm:$0xff]  ;;  %v7819_v37 = vpack.c.bf16 %v5796_v3, %v5795_v48  ;;  %v5806_v47 = vld [vmem:[%s10922_s3 + $0x408] sm:$0xff] }
 0x1da   : > { %v7683_v12 = vpack.c.bf16 %v5728_v2, %v5727_v58  ;;  %v2189_v25 = vld [vmem:[#allocation2 + $0x88] sm:$0xff]  ;;  %v2190_v3 = vld [vmem:[#allocation2 + $0x90] sm:$0xff] }
 0x1db   : > { %v5739_v2 = vld [vmem:[%s10922_s3 + $0xf0] sm:$0xff] }
 0x1dc   : > { %6758 = vmatmul.mubr.f32.gmra.mrb[68].mxu0 %v10968_v44  ;;  %7180 = vmatmul.mubr.f32.gmra.mrb[74].mxu1 %v10969_v14  ;;  %v5803_v14 = vld [vmem:[%s10922_s3 + $0x2f0] sm:$0xff] }
 0x1dd   : > { %6760 = vmatprep.mubr.f32.mxu0 %v10970_v49  ;;  %7182 = vmatprep.mubr.f32.mxu1 %v10971_v51  ;;  %v5804_v49 = vld [vmem:[%s10922_s3 + $0x2f8] sm:$0xff]  ;;  %v5735_v51 = vld [vmem:[%s10922_s3 + $0xd0] sm:$0xff] }
 0x1de   : > { %v7835_v18 = vpack.c.bf16 %v5804_v49, %v5803_v14  ;;  %v9969_v14 = vld [vmem:[#allocation4 + $0xd0] sm:$0xff] }
 0x1e0   : > { %6761 = vmatmul.mubr.f32.gmra.mrb[104].mxu0 %v10972_v38  ;;  %7183 = vmatmul.mubr.f32.gmra.mrb[42].mxu1 %v10973_v23  ;;  %v5736_v38 = vld [vmem:[%s10922_s3 + $0xd8] sm:$0xff]  ;;  %v9898_v23 = vld [vmem:[#allocation4 + $0x68] sm:$0xff] }
 0x1e1   : > { %6763 = vmatprep.mubr.f32.mxu0 %v10974_v32  ;;  %7185 = vmatprep.mubr.f32.mxu1 %v10975_v52  ;;  %v9900_v32 = vld [vmem:[#allocation4 + $0x70] sm:$0xff]  ;;  %v2187_v52 = vld [vmem:[#allocation2 + $0x78] sm:$0xff]  ;;  %v7699_v10 = vpack.c.bf16 %v5736_v38, %v5735_v51 }
 0x1e2   : > { %v2199_v51 = vld [vmem:[#allocation2 + $0xd8] sm:$0xff] }
 0x1e4   : > { %6764 = vmatmul.mubr.f32.gmra.mrb[106].mxu0 %v10976_v0  ;;  %7186 = vmatmul.mubr.f32.gmra.mrb[76].mxu1 %v10977_v6  ;;  %v2188_v0 = vld [vmem:[#allocation2 + $0x80] sm:$0xff] }
 0x1e5   : > { %6766 = vmatprep.mubr.f32.mxu0 %v10978_v5  ;;  %7188 = vmatprep.mubr.f32.mxu1 %v10977_v6 }
 0x1e8   : > { %6767 = vmatmul.mubr.f32.gmra.mrb[74].mxu0 %v10979_v42  ;;  %7189 = vmatmul.mubr.f32.gmra.mrb[78].mxu1 %v10977_v6  ;;  %v5737_v42 = vld [vmem:[%s10922_s3 + $0xe0] sm:$0xff] }
 0x1e9   : > { %6769 = vmatprep.mubr.f32.mxu0 %v10980_v39  ;;  %7223 = vmatprep.mubr.f32.mxu1 %v10977_v6 }
 0x1ec   : > { %6770 = vmatmul.mubr.f32.gmra.mrb[108].mxu0 %v10981_v8  ;;  %7224 = vmatmul.mubr.f32.vlgmr.msra.gmra.mrb[0].mxu1 %v10977_v6  ;;  %v5805_v8 = vld [vmem:[%s10922_s3 + $0x400] sm:$0xff] }
 0x1ed   : > { %6772 = vmatprep.mubr.f32.mxu0 %v10982_v28  ;;  %7810 = vmatpush3.bf16.msra.mxu1 %v9714_v59  ;;  %v5731_v59 = vld [vmem:[%s10922_s3 + $0xb0] sm:$0xff] }
 0x1ee   : > { %7226 = vmatprep.mubr.f32.mxu1 %v10977_v6  ;;  %7812 = vmatprep.subr.bf16.mxu1 %v7811_v11  ;;  %v7691_v56 = vpack.c.bf16 %v5732_v45, %v5731_v59  ;;  %v2194_v59 = vld [vmem:[#allocation2 + $0xb0] sm:$0xff] }
 0x1f0   : > { %6773 = vmatmul.mubr.f32.gmra.mrb[110].mxu0 %v10983_v17  ;;  %7227 = vmatmul.mubr.f32.gmra.mrb[80].mxu1 %v9808_v46  ;;  %v9922_v17 = vpack.c.bf16 %v5806_v47, %v5805_v8  ;;  %v2202_v8 = vld [vmem:[#allocation2 + $0xf0] sm:$0xff] }
 0x1f1   : > { %6807 = vmatprep.mubr.f32.mxu0 %v2178_v33  ;;  %7229 = vmatprep.mubr.f32.mxu1 %v9806_v43  ;;  %v9918_v33 = vld [vmem:[#allocation4 + $0x78] sm:$0xff] }
 0x1f2   : > { %7814 = vmatpush3.bf16.msra.mxu1 %v7811_v11  ;;  %v5738_v11 = vld [vmem:[%s10922_s3 + $0xe8] sm:$0xff] }
 0x1f3   : > { %7816 = vmatprep.subr.bf16.mxu1 %v7815_v63  ;;  %v7703_v48 = vpack.c.bf16 %v5738_v11, %v5737_v42  ;;  %v2201_v42 = vld [vmem:[#allocation2 + $0xe8] sm:$0xff]  ;;  %v9979_v11 = vld [vmem:[#allocation4 + $0xd8] sm:$0xff] }
 0x1f4   : > { %6808 = vmatmul.mubr.f32.vlgmr.msra.gmra.mrb[32].mxu0 %v2179_v57  ;;  %7230 = vmatmul.mubr.f32.gmra.mrb[82].mxu1 %v9825_v15  ;;  %v5740_v57 = vld [vmem:[%s10922_s3 + $0xf8] sm:$0xff] }
 0x1f5   : > { %6810 = vmatprep.mubr.f32.mxu0 %v2180_v22  ;;  %7232 = vmatprep.mubr.f32.mxu1 %v9827_v62  ;;  %v9934_v22 = vld [vmem:[#allocation4 + $0x88] sm:$0xff] }
 0x1f6   : > { %7818 = vmatpush3.bf16.msra.mxu1 %v7815_v63  ;;  %7682 = vmatpush3.bf16.msra.mxu0 %v9739_v35  ;;  %v5734_v35 = vld [vmem:[%s10922_s3 + $0xc8] sm:$0xff]  ;;  %v9920_v63 = vld [vmem:[#allocation4 + $0x80] sm:$0xff] }
 0x1f7   : > { %7820 = vmatprep.subr.bf16.mxu1 %v7819_v37  ;;  %7684 = vmatprep.subr.bf16.mxu0 %v7683_v12  ;;  %v7695_v44 = vpack.c.bf16 %v5734_v35, %v5733_v13  ;;  %v9961_v13 = vld [vmem:[#allocation4 + $0xb8] sm:$0xff] }
 0x1f8   : > { %6811 = vmatmul.mubr.f32.gmra.mrb[112].mxu0 %v2181_v7  ;;  %7233 = vmatmul.mubr.f32.gmra.mrb[6].mxu1 %v9843_v21  ;;  %v9943_v7 = vld [vmem:[#allocation4 + $0xa0] sm:$0xff] }
 0x1f9   : > { %6813 = vmatprep.mubr.f32.mxu0 %v2182_v9  ;;  %7235 = vmatprep.mubr.f32.mxu1 %v9845_v41 }
 0x1fa   : > { %7822 = vmatpush3.bf16.msra.mxu1 %v7819_v37  ;;  %7686 = vmatpush3.bf16.msra.mxu0 %v7683_v12  ;;  %v7707_v12 = vpack.c.bf16 %v5740_v57, %v5739_v2  ;;  %v2204_v57 = vld [vmem:[#allocation2 + $0x100] sm:$0xff] }
 0x1fb   : > { %7824 = vmatprep.subr.bf16.mxu1 %v7823_v4  ;;  %7688 = vmatprep.subr.bf16.mxu0 %v7687_v60 }
 0x1fc   : > { %6814 = vmatmul.mubr.f32.gmra.mrb[114].mxu0 %v2183_v50  ;;  %7236 = vmatmul.mubr.f32.gmra.mrb[84].mxu1 %v9862_v29  ;;  %v2195_v50 = vld [vmem:[#allocation2 + $0xb8] sm:$0xff] }
 0x1fd   : > { %6816 = vmatprep.mubr.f32.mxu0 %v2184_v30  ;;  %7238 = vmatprep.mubr.f32.mxu1 %v9864_v24 }
 0x1fe   : > { %7826 = vmatpush3.bf16.msra.mxu1 %v7823_v4  ;;  %7690 = vmatpush3.bf16.msra.mxu0 %v7687_v60  ;;  %v2193_v4 = vld [vmem:[#allocation2 + $0xa8] sm:$0xff]  ;;  %v9947_v60 = vld [vmem:[#allocation4 + $0x98] sm:$0xff] }
 0x1ff   : > { %7828 = vmatprep.subr.bf16.mxu1 %v7827_v36  ;;  %7692 = vmatprep.subr.bf16.mxu0 %v7691_v56 }
 0x200   : > { %6817 = vmatmul.mubr.f32.gmra.mrb[38].mxu0 %v2185_v27  ;;  %7239 = vmatmul.mubr.f32.gmra.mrb[86].mxu1 %v9880_v61 }
 0x201   : > { %6819 = vmatprep.mubr.f32.mxu0 %v2186_v20  ;;  %7241 = vmatprep.mubr.f32.mxu1 %v9882_v55  ;;  %v9902_v5 = vpop.f32.mrb[2].mxu1  ;;  %v2197_v20 = vld [vmem:[#allocation2 + $0xc8] sm:$0xff] }
 0x202   : > { %7830 = vmatpush3.bf16.msra.mxu1 %v7827_v36  ;;  %7694 = vmatpush3.bf16.msra.mxu0 %v7691_v56  ;;  %10984 = vst [vmem:[#allocation7_spill] sm:$0xff] %v9902_v5  ;;  %v3091_v39 = vpop.f32.mrb[3].mxu1  ;;  %v9953_v36 = vld [vmem:[#allocation4 + $0xa8] sm:$0xff]  ;;  %v2222_v5 = vld [vmem:[#allocation2 + $0x190] sm:$0xff] }
 0x203   : > { %7832 = vmatprep.subr.bf16.mxu1 %v7831_v34  ;;  %7696 = vmatprep.subr.bf16.mxu0 %v7695_v44 }
 0x204   : > { %6820 = vmatmul.mubr.f32.gmra.mrb[116].mxu0 %v2187_v52  ;;  %7242 = vmatmul.mubr.f32.gmra.mrb[12].mxu1 %v9898_v23  ;;  %v9973_v52 = vld [vmem:[#allocation4 + $0xc8] sm:$0xff] }
 0x205   : > { %6822 = vmatprep.mubr.f32.mxu0 %v2188_v0  ;;  %7244 = vmatprep.mubr.f32.mxu1 %v9900_v32 }
 0x206   : > { %7834 = vmatpush3.bf16.msra.mxu1 %v7831_v34  ;;  %7698 = vmatpush3.bf16.msra.mxu0 %v7695_v44  ;;  %v7023_v28 = vpop.f32.mrb[4].mxu1  ;;  %v2198_v34 = vld [vmem:[#allocation2 + $0xd0] sm:$0xff]  ;;  %v9966_v44 = vld [vmem:[#allocation4 + $0xc0] sm:$0xff] }
 0x207   : > { %7836 = vmatprep.subr.bf16.mxu1 %v7835_v18  ;;  %7700 = vmatprep.subr.bf16.mxu0 %v7699_v10  ;;  %v9924_v58 = vpop.f32.mrb[5].mxu1  ;;  %v9987_v28 = vld [vmem:[#allocation4 + $0xe8] sm:$0xff] }
 0x208   : > { %6823 = vmatmul.mubr.f32.gmra.mrb[118].mxu0 %v2189_v25  ;;  %10985 = vst [vmem:[#allocation12_spill] sm:$0xff] %v9924_v58  ;;  %7245 = vmatmul.mubr.f32.gmra.mrb[88].mxu1 %v9918_v33  ;;  %v9984_v25 = vld [vmem:[#allocation4 + $0xe0] sm:$0xff] }
 0x209   : > { %6825 = vmatprep.mubr.f32.mxu0 %v2190_v3  ;;  %7247 = vmatprep.mubr.f32.mxu1 %v9920_v63  ;;  %v9936_v37 = vpop.f32.mrb[34].mxu0  ;;  %v2203_v3 = vld [vmem:[#allocation2 + $0xf8] sm:$0xff] }
 0x20a   : > { %7838 = vmatpush3.bf16.msra.mxu1 %v7835_v18  ;;  %7702 = vmatpush3.bf16.msra.mxu0 %v7699_v10  ;;  %v1675_v19 = vpop.f32.mrb[35].mxu0  ;;  %v2200_v18 = vld [vmem:[#allocation2 + $0xe0] sm:$0xff] }
 0x20b   : > { %7704 = vmatprep.subr.bf16.mxu0 %v7703_v48  ;;  %7840 = vmatprep.subr.bf16.mxu1 %v9922_v17 }
 0x20c   : > { %6826 = vmatmul.mubr.f32.gmra.mrb[44].mxu0 %v2191_v31  ;;  %7248 = vmatmul.mubr.f32.gmra.mrb[90].mxu1 %v9934_v22  ;;  %v9992_v31 = vld [vmem:[#allocation4 + $0xf0] sm:$0xff] }
 0x20d   : > { %6828 = vmatprep.mubr.f32.mxu0 %v2192_v26  ;;  %7250 = vmatprep.mubr.f32.mxu1 %v9940_v40  ;;  %v2205_v26 = vld [vmem:[#allocation2 + $0x108] sm:$0xff] }
 0x20e   : > { %7706 = vmatpush3.bf16.msra.mxu0 %v7703_v48  ;;  %v6607_v9 = vpop.f32.mrb[36].mxu0  ;;  %v9945_v16 = vpop.f32.mrb[8].mxu1 }
 0x20f   : > { %10986 = vst [vmem:[#allocation8_spill] sm:$0xff] %v9945_v16  ;;  %7708 = vmatprep.subr.bf16.mxu0 %v7707_v12  ;;  %v9949_v54 = vpop.f32.mrb[37].mxu0  ;;  %v3119_v45 = vpop.f32.mrb[9].mxu1  ;;  %v10057_v16 = vld [vmem:[#allocation4 + $0x168] sm:$0xff] }
 0x210   : > { %6829 = vmatmul.mubr.f32.gmra.mrb[120].mxu0 %v2193_v4  ;;  %7251 = vmatmul.mubr.f32.gmra.mrb[18].mxu1 %v9947_v60  ;;  %v9999_v4 = vld [vmem:[#allocation4 + $0xf8] sm:$0xff]  ;;  %v2206_v45 = vld [vmem:[#allocation2 + $0x110] sm:$0xff]  ;;  %10996 = vst [vmem:[#allocation15_spill] sm:$0xff] %v10057_v16 }
 0x211   : > { %6831 = vmatprep.mubr.f32.mxu0 %v2194_v59  ;;  %7253 = vmatprep.mubr.f32.mxu1 %v9943_v7 }
 0x212   : > { %7710 = vmatpush3.bf16.msra.mxu0 %v7707_v12  ;;  %v7032_v30 = vpop.f32.mrb[10].mxu1  ;;  %v9995_v12 = vld [vmem:[#allocation4 + $0x100] sm:$0xff] }
 0x213   : > { %v9955_v56 = vpop.f32.mrb[11].mxu1  ;;  %v2207_v30 = vld [vmem:[#allocation2 + $0x118] sm:$0xff] }
 0x214   : > { %6832 = vmatmul.mubr.f32.gmra.mrb[122].mxu0 %v2195_v50  ;;  %10987 = vst [vmem:[#allocation6_spill] sm:$0xff] %v9955_v56  ;;  %7254 = vmatmul.mubr.f32.gmra.mrb[92].mxu1 %v9953_v36 }
 0x215   : > { %6834 = vmatprep.mubr.f32.mxu0 %v2196_v53  ;;  %7256 = vmatprep.mubr.f32.mxu1 %v9958_v1 }
 0x216   : > { %v9963_v35 = vpop.f32.mrb[40].mxu0 }
 0x217   : > { %v1703_v27 = vpop.f32.mrb[41].mxu0 }
 0x218   : > { %6835 = vmatmul.mubr.f32.gmra.mrb[50].mxu0 %v2197_v20  ;;  %7257 = vmatmul.mubr.f32.gmra.mrb[94].mxu1 %v9961_v13  ;;  %v10005_v20 = vld [vmem:[#allocation4 + $0x108] sm:$0xff]  ;;  %v2208_v27 = vld [vmem:[#allocation2 + $0x120] sm:$0xff] }
 0x219   : > { %6837 = vmatprep.mubr.f32.mxu0 %v2198_v34  ;;  %7259 = vmatprep.mubr.f32.mxu1 %v9966_v44 }
 0x21b   : > { %v6616_v49 = vpop.f32.mrb[42].mxu0  ;;  %v9971_v38 = vpop.f32.mrb[14].mxu1 }
 0x21c   : > { %10988 = vst [vmem:[#allocation9_spill] sm:$0xff] %v9971_v38  ;;  %v9975_v0 = vpop.f32.mrb[43].mxu0  ;;  %6838 = vmatmul.mubr.f32.gmra.mrb[124].mxu0 %v2199_v51  ;;  %v3147_v10 = vpop.f32.mrb[15].mxu1  ;;  %7260 = vmatmul.mubr.f32.gmra.mrb[24].mxu1 %v9973_v52  ;;  %v10010_v49 = vld [vmem:[#allocation4 + $0x110] sm:$0xff]  ;;  %v10013_v51 = vld [vmem:[#allocation4 + $0x118] sm:$0xff] }
 0x21d   : > { %6840 = vmatprep.mubr.f32.mxu0 %v2200_v18  ;;  %7262 = vmatprep.mubr.f32.mxu1 %v9969_v14  ;;  %v2209_v10 = vld [vmem:[#allocation2 + $0x128] sm:$0xff] }
 0x21f   : > { %v7041_v39 = vpop.f32.mrb[16].mxu1 }
 0x220   : > { %6841 = vmatmul.mubr.f32.gmra.mrb[126].mxu0 %v2201_v42  ;;  %v9981_v47 = vpop.f32.mrb[17].mxu1  ;;  %7263 = vmatmul.mubr.f32.gmra.mrb[96].mxu1 %v9979_v11  ;;  %v2210_v39 = vld [vmem:[#allocation2 + $0x130] sm:$0xff] }
 0x221   : > { %10989 = vst [vmem:[#allocation5_spill] sm:$0xff] %v9981_v47  ;;  %6843 = vmatprep.mubr.f32.mxu0 %v2202_v8  ;;  %7265 = vmatprep.mubr.f32.mxu1 %v9984_v25  ;;  %v10018_v8 = vld [vmem:[#allocation4 + $0x120] sm:$0xff]  ;;  %v10051_v47 = vld [vmem:[#allocation4 + $0x158] sm:$0xff] }
 0x223   : > { %v9989_v48 = vpop.f32.mrb[46].mxu0 }
 0x224   : > { %v1731_v2 = vpop.f32.mrb[47].mxu0  ;;  %6844 = vmatmul.mubr.f32.gmra.mrb[56].mxu0 %v2203_v3  ;;  %7266 = vmatmul.mubr.f32.gmra.mrb[98].mxu1 %v9987_v28  ;;  %v10021_v3 = vld [vmem:[#allocation4 + $0x130] sm:$0xff] }
 0x225   : > { %6846 = vmatprep.mubr.f32.mxu0 %v2204_v57  ;;  %7268 = vmatprep.mubr.f32.mxu1 %v9992_v31  ;;  %v2211_v57 = vld [vmem:[#allocation2 + $0x138] sm:$0xff] }
 0x227   : > { %v6625_v19 = vpop.f32.mrb[48].mxu0  ;;  %v9997_v9 = vpop.f32.mrb[20].mxu1 }
 0x228   : > { %10990 = vst [vmem:[#allocation10_spill] sm:$0xff] %v9997_v9  ;;  %v10001_v59 = vpop.f32.mrb[49].mxu0  ;;  %6847 = vmatmul.mubr.f32.gmra.mrb[128].mxu0 %v2205_v26  ;;  %v3175_v50 = vpop.f32.mrb[21].mxu1  ;;  %7269 = vmatmul.mubr.f32.gmra.mrb[30].mxu1 %v9999_v4  ;;  %v10025_v26 = vld [vmem:[#allocation4 + $0x128] sm:$0xff] }
 0x229   : > { %6849 = vmatprep.mubr.f32.mxu0 %v2206_v45  ;;  %7271 = vmatprep.mubr.f32.mxu1 %v9995_v12  ;;  %v2212_v50 = vld [vmem:[#allocation2 + $0x140] sm:$0xff] }
 0x22b   : > { %v7050_v53 = vpop.f32.mrb[22].mxu1 }
 0x22c   : > { %6850 = vmatmul.mubr.f32.gmra.mrb[130].mxu0 %v2207_v30  ;;  %v10007_v34 = vpop.f32.mrb[23].mxu1  ;;  %7272 = vmatmul.mubr.f32.gmra.mrb[100].mxu1 %v10005_v20  ;;  %v2213_v53 = vld [vmem:[#allocation2 + $0x148] sm:$0xff] }
 0x22d   : > { %10991 = vst [vmem:[#allocation17_spill] sm:$0xff] %v10007_v34  ;;  %6852 = vmatprep.mubr.f32.mxu0 %v2208_v27  ;;  %7274 = vmatprep.mubr.f32.mxu1 %v10010_v49  ;;  %v2217_v34 = vld [vmem:[#allocation2 + $0x168] sm:$0xff] }
 0x22f   : > { %v10015_v18 = vpop.f32.mrb[52].mxu0 }
 0x230   : > { %v1759_v42 = vpop.f32.mrb[53].mxu0  ;;  %6853 = vmatmul.mubr.f32.gmra.mrb[62].mxu0 %v2209_v10  ;;  %7275 = vmatmul.mubr.f32.gmra.mrb[102].mxu1 %v10013_v51  ;;  %v10031_v10 = vld [vmem:[#allocation4 + $0x138] sm:$0xff] }
 0x231   : > { %6855 = vmatprep.mubr.f32.mxu0 %v2210_v39  ;;  %7277 = vmatprep.mubr.f32.mxu1 %v10018_v8  ;;  %v2214_v42 = vld [vmem:[#allocation2 + $0x150] sm:$0xff] }
 0x233   : > { %v6634_v2 = vpop.f32.mrb[54].mxu0  ;;  %v10023_v19 = vpop.f32.mrb[26].mxu1 }
 0x234   : > { %10992 = vst [vmem:[#allocation11_spill] sm:$0xff] %v10023_v19  ;;  %v10027_v45 = vpop.f32.mrb[55].mxu0  ;;  %6856 = vmatmul.mubr.f32.gmra.mrb[132].mxu0 %v2211_v57  ;;  %v3203_v30 = vpop.f32.mrb[27].mxu1  ;;  %7278 = vmatmul.mubr.f32.gmra.mrb[36].mxu1 %v10025_v26  ;;  %v10036_v2 = vld [vmem:[#allocation4 + $0x140] sm:$0xff]  ;;  %v10039_v57 = vld [vmem:[#allocation4 + $0x148] sm:$0xff] }
 0x235   : > { %6858 = vmatprep.mubr.f32.mxu0 %v2212_v50  ;;  %7280 = vmatprep.mubr.f32.mxu1 %v10021_v3  ;;  %v2215_v30 = vld [vmem:[#allocation2 + $0x158] sm:$0xff] }
 0x237   : > { %v7059_v27 = vpop.f32.mrb[28].mxu1 }
 0x238   : > { %6859 = vmatmul.mubr.f32.gmra.mrb[134].mxu0 %v2213_v53  ;;  %v10033_v39 = vpop.f32.mrb[29].mxu1  ;;  %7281 = vmatmul.mubr.f32.gmra.mrb[104].mxu1 %v10031_v10  ;;  %v2216_v27 = vld [vmem:[#allocation2 + $0x160] sm:$0xff]  ;;  %v10044_v53 = vld [vmem:[#allocation4 + $0x150] sm:$0xff] }
 0x239   : > { %10993 = vst [vmem:[#allocation20_spill] sm:$0xff] %v10033_v39  ;;  %6861 = vmatprep.mubr.f32.mxu0 %v2214_v42  ;;  %7283 = vmatprep.mubr.f32.mxu1 %v10036_v2  ;;  %v10047_v39 = vld [vmem:[#allocation4 + $0x160] sm:$0xff] }
 0x23b   : > { %v10041_v50 = vpop.f32.mrb[58].mxu0 }
 0x23c   : > { %v1787_v19 = vpop.f32.mrb[59].mxu0  ;;  %6862 = vmatmul.mubr.f32.gmra.mrb[68].mxu0 %v2215_v30  ;;  %7284 = vmatmul.mubr.f32.gmra.mrb[106].mxu1 %v10039_v57 }
 0x23d   : > { %6864 = vmatprep.mubr.f32.mxu0 %v2216_v27  ;;  %7286 = vmatprep.mubr.f32.mxu1 %v10044_v53  ;;  %v2218_v19 = vld [vmem:[#allocation2 + $0x170] sm:$0xff]  ;;  %v2219_v27 = vld [vmem:[#allocation2 + $0x178] sm:$0xff] }
 0x23f   : > { %v6643_v42 = vpop.f32.mrb[60].mxu0  ;;  %v10049_v9 = vpop.f32.mrb[32].mxu1 }
 0x240   : > { %10994 = vst [vmem:[#allocation13_spill] sm:$0xff] %v10049_v9  ;;  %v10053_v38 = vpop.f32.mrb[61].mxu0  ;;  %6865 = vmatmul.mubr.f32.gmra.mrb[136].mxu0 %v2217_v34  ;;  %v3231_v30 = vpop.f32.mrb[33].mxu1  ;;  %7287 = vmatmul.mubr.f32.gmra.mrb[42].mxu1 %v10051_v47  ;;  %v2220_v42 = vld [vmem:[#allocation2 + $0x180] sm:$0xff]  ;;  %v10062_v9 = vld [vmem:[#allocation4 + $0x170] sm:$0xff]  ;;  %v10065_v34 = vld [vmem:[#allocation4 + $0x178] sm:$0xff] }
 0x241   : > { %10995 = vst [vmem:[#allocation14_spill] sm:$0xff] %v10053_v38  ;;  %6867 = vmatprep.mubr.f32.mxu0 %v2218_v19  ;;  %7289 = vmatprep.mubr.f32.mxu1 %v10047_v39  ;;  %10998 = vst [vmem:[#allocation18_spill] sm:$0xff] %v10062_v9  ;;  %v2221_v30 = vld [vmem:[#allocation2 + $0x188] sm:$0xff] }
 0x243   : > { %v7068_v56 = vpop.f32.mrb[34].mxu1 }
 0x244   : > { %6868 = vmatmul.mubr.f32.gmra.mrb[138].mxu0 %v2219_v27  ;;  %v10059_v58 = vpop.f32.mrb[35].mxu1  ;;  %7290 = vmatmul.mubr.f32.gmra.mrb[108].mxu1 %v10057_v16  ;;  %v5807_v56 = vld [vmem:[%s10922_s3 + $0x410] sm:$0xff]  ;;  %v5808_v27 = vld [vmem:[%s10922_s3 + $0x418] sm:$0xff] }
 0x245   : > { %10997 = vst [vmem:[#allocation16_spill] sm:$0xff] %v10059_v58  ;;  %6870 = vmatprep.mubr.f32.mxu0 %v2220_v42  ;;  %7292 = vmatprep.mubr.f32.mxu1 %v10062_v9  ;;  %v7843_v42 = vpack.c.bf16 %v5808_v27, %v5807_v56  ;;  %v10106_v27 = vld [vmem:[#allocation2] sm:$0xff] }
 0x247   : > { %v10067_v19 = vpop.f32.mrb[64].mxu0 }
 0x248   : > { %10999 = vst [vmem:[#allocation19_spill] sm:$0xff] %v10067_v19  ;;  %v1815_v58 = vpop.f32.mrb[65].mxu0  ;;  %6871 = vmatmul.mubr.f32.gmra.mrb[74].mxu0 %v2221_v30  ;;  %7293 = vmatmul.mubr.f32.gmra.mrb[110].mxu1 %v10065_v34  ;;  %v5812_v30 = vld [vmem:[%s10922_s3 + $0x438] sm:$0xff] }
 0x249   : > { %6873 = vmatprep.mubr.f32.mxu0 %v2222_v5  ;;  %7327 = vmatprep.mubr.f32.mxu1 %v9808_v46  ;;  %v5809_v58 = vld [vmem:[%s10922_s3 + $0x420] sm:$0xff]  ;;  %v5810_v5 = vld [vmem:[%s10922_s3 + $0x428] sm:$0xff] }
 0x24b   : > { %v6652_v38 = vpop.f32.mrb[66].mxu0  ;;  %v10077_v19 = vpop.f32.mrb[38].mxu1 }
 0x24c   : > { %v10079_v9 = vpop.f32.mrb[67].mxu0  ;;  %6874 = vmatmul.mubr.f32.gmra.mrb[140].mxu0 %v10977_v6  ;;  %v3259_v16 = vpop.f32.mrb[39].mxu1  ;;  %7328 = vmatmul.mubr.f32.vlgmr.msra.gmra.mrb[0].mxu1 %v9806_v43  ;;  %v7847_v38 = vpack.c.bf16 %v5810_v5, %v5809_v58 }
 0x24d   : > { %6876 = vmatprep.mubr.f32.mxu0 %v10977_v6  ;;  %7842 = vmatpush3.bf16.msra.mxu1 %v9922_v17  ;;  %v5811_v16 = vld [vmem:[%s10922_s3 + $0x430] sm:$0xff] }
 0x24e   : > { %7330 = vmatprep.mubr.f32.mxu1 %v9825_v15  ;;  %7844 = vmatprep.subr.bf16.mxu1 %v7843_v42  ;;  %v7851_v17 = vpack.c.bf16 %v5812_v30, %v5811_v16  ;;  %v5815_v30 = vld [vmem:[%s10922_s3 + $0x450] sm:$0xff] }
 0x24f   : > { %v7077_v46 = vpop.f32.mrb[40].mxu1 }
 0x250   : > { %6877 = vmatmul.mubr.f32.gmra.mrb[142].mxu0 %v10977_v6  ;;  %v10093_v43 = vpop.f32.mrb[41].mxu1  ;;  %7331 = vmatmul.mubr.f32.gmra.mrb[112].mxu1 %v9827_v62  ;;  %v5813_v62 = vld [vmem:[%s10922_s3 + $0x440] sm:$0xff]  ;;  %v2568_v46 = vld [vmem:[#allocation3 + $0x20] sm:$0xff] }
 0x251   : > { %6911 = vmatprep.mubr.f32.mxu0 %v10977_v6  ;;  %7333 = vmatprep.mubr.f32.mxu1 %v9843_v21  ;;  %v5814_v6 = vld [vmem:[%s10922_s3 + $0x448] sm:$0xff] }
 0x252   : > { %7846 = vmatpush3.bf16.msra.mxu1 %v7843_v42  ;;  %v2567_v42 = vld [vmem:[#allocation3 + $0x18] sm:$0xff]  ;;  %v7855_v5 = vpack.c.bf16 %v5814_v6, %v5813_v62  ;;  %v2570_v6 = vld [vmem:[#allocation3 + $0x30] sm:$0xff] }
 0x253   : > { %v10104_v15 = vpop.f32.mrb[70].mxu0  ;;  %7848 = vmatprep.subr.bf16.mxu1 %v7847_v38 }
 0x254   : > { %v1843_v56 = vpop.f32.mrb[71].mxu0  ;;  %6912 = vmatmul.mubr.f32.vlgmr.msra.gmra.mrb[32].mxu0 %v10106_v27  ;;  %7334 = vmatmul.mubr.f32.gmra.mrb[114].mxu1 %v9845_v41 }
 0x255   : > { %6914 = vmatprep.mubr.f32.mxu0 %v10106_v27  ;;  %7336 = vmatprep.mubr.f32.mxu1 %v9862_v29  ;;  %v5816_v29 = vld [vmem:[%s10922_s3 + $0x458] sm:$0xff] }
 0x256   : > { %7850 = vmatpush3.bf16.msra.mxu1 %v7847_v38  ;;  %v2569_v38 = vld [vmem:[#allocation3 + $0x28] sm:$0xff]  ;;  %v7859_v62 = vpack.c.bf16 %v5816_v29, %v5815_v30 }
 0x257   : > { %v6661_v21 = vpop.f32.mrb[72].mxu0  ;;  %v10118_v58 = vpop.f32.mrb[44].mxu1  ;;  %7852 = vmatprep.subr.bf16.mxu1 %v7851_v17  ;;  %v5820_v29 = vld [vmem:[%s10922_s3 + $0x478] sm:$0xff] }
 0x258   : > { %11000 = vst [vmem:[#allocation21_spill] sm:$0xff] %v10118_v58  ;;  %v10120_v41 = vpop.f32.mrb[73].mxu0  ;;  %6915 = vmatmul.mubr.f32.gmra.mrb[144].mxu0 %v2567_v42  ;;  %v3287_v16 = vpop.f32.mrb[45].mxu1  ;;  %7337 = vmatmul.mubr.f32.gmra.mrb[6].mxu1 %v9864_v24  ;;  %v5817_v24 = vld [vmem:[%s10922_s3 + $0x460] sm:$0xff]  ;;  %v5818_v42 = vld [vmem:[%s10922_s3 + $0x468] sm:$0xff] }
 0x259   : > { %6917 = vmatprep.mubr.f32.mxu0 %v2568_v46  ;;  %7339 = vmatprep.mubr.f32.mxu1 %v9880_v61  ;;  %v2572_v61 = vld [vmem:[#allocation3 + $0x40] sm:$0xff]  ;;  %v2571_v46 = vld [vmem:[#allocation3 + $0x38] sm:$0xff]  ;;  %v7863_v16 = vpack.c.bf16 %v5818_v42, %v5817_v24 }
 0x25a   : > { %7854 = vmatpush3.bf16.msra.mxu1 %v7851_v17  ;;  %v2575_v42 = vld [vmem:[#allocation3 + $0x58] sm:$0xff] }
 0x25b   : > { %v7086_v56 = vpop.f32.mrb[46].mxu1  ;;  %7856 = vmatprep.subr.bf16.mxu1 %v7855_v5 }
 0x25c   : > { %6918 = vmatmul.mubr.f32.gmra.mrb[146].mxu0 %v2569_v38  ;;  %v10130_v21 = vpop.f32.mrb[47].mxu1  ;;  %7340 = vmatmul.mubr.f32.gmra.mrb[116].mxu1 %v9882_v55  ;;  %v5819_v55 = vld [vmem:[%s10922_s3 + $0x470] sm:$0xff] }
 0x25d   : > { %11001 = vst [vmem:[#allocation22_spill] sm:$0xff] %v10130_v21  ;;  %6920 = vmatprep.mubr.f32.mxu0 %v2570_v6  ;;  %7342 = vmatprep.mubr.f32.mxu1 %v9898_v23  ;;  %v7867_v56 = vpack.c.bf16 %v5820_v29, %v5819_v55  ;;  %v2579_v29 = vld [vmem:[#allocation3 + $0x78] sm:$0xff] }
 0x25e   : > { %7858 = vmatpush3.bf16.msra.mxu1 %v7855_v5  ;;  %v2573_v5 = vld [vmem:[#allocation3 + $0x48] sm:$0xff] }
 0x25f   : > { %v10140_v17 = vpop.f32.mrb[76].mxu0  ;;  %7860 = vmatprep.subr.bf16.mxu1 %v7859_v62 }
 0x260   : > { %v1871_v30 = vpop.f32.mrb[77].mxu0  ;;  %6921 = vmatmul.mubr.f32.gmra.mrb[38].mxu0 %v2571_v46  ;;  %7343 = vmatmul.mubr.f32.gmra.mrb[118].mxu1 %v9900_v32  ;;  %v2574_v32 = vld [vmem:[#allocation3 + $0x50] sm:$0xff] }
 0x261   : > { %6923 = vmatprep.mubr.f32.mxu0 %v2572_v61  ;;  %7345 = vmatprep.mubr.f32.mxu1 %v9918_v33  ;;  %v2578_v46 = vld [vmem:[#allocation3 + $0x70] sm:$0xff] }
 0x262   : > { %7862 = vmatpush3.bf16.msra.mxu1 %v7859_v62  ;;  %v2576_v62 = vld [vmem:[#allocation3 + $0x60] sm:$0xff] }
 0x263   : > { %v6670_v23 = vpop.f32.mrb[78].mxu0  ;;  %v10150_v38 = vpop.f32.mrb[48].mxu1  ;;  %7864 = vmatprep.subr.bf16.mxu1 %v7863_v16 }
 0x264   : > { %v10152_v6 = vpop.f32.mrb[79].mxu0  ;;  %6924 = vmatmul.mubr.f32.gmra.mrb[148].mxu0 %v2573_v5  ;;  %v3478_v24 = vpop.f32.mrb[49].mxu1  ;;  %7346 = vmatmul.mubr.f32.gmra.mrb[12].mxu1 %v9920_v63  ;;  %v2577_v63 = vld [vmem:[#allocation3 + $0x68] sm:$0xff] }
 0x265   : > { %6926 = vmatprep.mubr.f32.mxu0 %v2574_v32  ;;  %7348 = vmatprep.mubr.f32.mxu1 %v9934_v22  ;;  %v2584_v24 = vld [vmem:[#allocation3 + $0xa0] sm:$0xff] }
 0x266   : > { %7866 = vmatpush3.bf16.msra.mxu1 %v7863_v16 }
 0x267   : > { %v7127_v33 = vpop.f32.mrb[50].mxu1  ;;  %7868 = vmatprep.subr.bf16.mxu1 %v7867_v56 }
 0x268   : > { %6927 = vmatmul.mubr.f32.gmra.mrb[150].mxu0 %v2575_v42  ;;  %v10156_v61 = vpop.f32.mrb[51].mxu1  ;;  %7349 = vmatmul.mubr.f32.gmra.mrb[120].mxu1 %v9940_v40 }
 0x269   : > { %6929 = vmatprep.mubr.f32.mxu0 %v2576_v62  ;;  %7351 = vmatprep.mubr.f32.mxu1 %v9947_v60  ;;  %v2580_v60 = vld [vmem:[#allocation3 + $0x80] sm:$0xff]  ;;  %v2585_v62 = vld [vmem:[#allocation3 + $0xa8] sm:$0xff] }
 0x26a   : > { %7870 = vmatpush3.bf16.msra.mxu1 %v7867_v56  ;;  %v2581_v56 = vld [vmem:[#allocation3 + $0x88] sm:$0xff] }
 0x26b   : > { %v6708_v30 = vpop.f32.mrb[80].mxu0 }
 0x26c   : > { %v10161_v55 = vadd.f32 %v6708_v30, %v9936_v37  ;;  %v1964_v22 = vpop.f32.mrb[81].mxu0  ;;  %6930 = vmatmul.mubr.f32.gmra.mrb[44].mxu0 %v2577_v63  ;;  %7352 = vmatmul.mubr.f32.gmra.mrb[122].mxu1 %v9943_v7  ;;  %v2587_v63 = vld [vmem:[#allocation3 + $0xb8] sm:$0xff] }
 0x26d   : > { %6932 = vmatprep.mubr.f32.mxu0 %v2578_v46  ;;  %7354 = vmatprep.mubr.f32.mxu1 %v9953_v36  ;;  %v2582_v36 = vld [vmem:[#allocation3 + $0x90] sm:$0xff] }
 0x26f   : > { %v6711_v16 = vpop.f32.mrb[82].mxu0  ;;  %v10165_v40 = vpop.f32.mrb[52].mxu1 }
 0x270   : > { %v1973_v23 = vpop.f32.mrb[83].mxu0  ;;  %6933 = vmatmul.mubr.f32.gmra.mrb[152].mxu0 %v2579_v29  ;;  %v3506_v5 = vpop.f32.mrb[53].mxu1  ;;  %7355 = vmatmul.mubr.f32.gmra.mrb[18].mxu1 %v9958_v1  ;;  %v2583_v1 = vld [vmem:[#allocation3 + $0x98] sm:$0xff]  ;;  %v2590_v16 = vld [vmem:[#allocation3 + $0xd0] sm:$0xff] }
 0x271   : > { %v10169_v37 = vadd.f32 %v1973_v23, %v9949_v54  ;;  %6935 = vmatprep.mubr.f32.mxu0 %v2580_v60  ;;  %7357 = vmatprep.mubr.f32.mxu1 %v9961_v13  ;;  %v2591_v60 = vld [vmem:[#allocation3 + $0xd8] sm:$0xff] }
 0x273   : > { %v7136_v7 = vpop.f32.mrb[54].mxu1 }
 0x274   : > { %6936 = vmatmul.mubr.f32.gmra.mrb[154].mxu0 %v2581_v56  ;;  %v10172_v32 = vpop.f32.mrb[55].mxu1  ;;  %7358 = vmatmul.mubr.f32.gmra.mrb[124].mxu1 %v9966_v44  ;;  %v2593_v7 = vld [vmem:[#allocation3 + $0xe8] sm:$0xff] }
 0x275   : > { %6938 = vmatprep.mubr.f32.mxu0 %v2582_v36  ;;  %7360 = vmatprep.mubr.f32.mxu1 %v9973_v52  ;;  %v2586_v52 = vld [vmem:[#allocation3 + $0xb0] sm:$0xff] }
 0x277   : > { %v6717_v42 = vpop.f32.mrb[84].mxu0 }
 0x278   : > { %v10177_v54 = vadd.f32 %v6717_v42, %v9963_v35  ;;  %v1992_v33 = vpop.f32.mrb[85].mxu0  ;;  %6939 = vmatmul.mubr.f32.gmra.mrb[50].mxu0 %v2583_v1  ;;  %7361 = vmatmul.mubr.f32.gmra.mrb[126].mxu1 %v9969_v14 }
 0x279   : > { %6941 = vmatprep.mubr.f32.mxu0 %v2584_v24  ;;  %7363 = vmatprep.mubr.f32.mxu1 %v9979_v11  ;;  %v2588_v11 = vld [vmem:[#allocation3 + $0xc0] sm:$0xff]  ;;  %v2597_v33 = vld [vmem:[#allocation3 + $0x108] sm:$0xff] }
 0x27a   : > { %v2596_v24 = vld [vmem:[#allocation3 + $0x100] sm:$0xff] }
 0x27b   : > { %v6720_v13 = vpop.f32.mrb[86].mxu0  ;;  %v10181_v46 = vpop.f32.mrb[56].mxu1 }
 0x27c   : > { %v2001_v44 = vpop.f32.mrb[87].mxu0  ;;  %6942 = vmatmul.mubr.f32.gmra.mrb[156].mxu0 %v2585_v62  ;;  %v3534_v30 = vpop.f32.mrb[57].mxu1  ;;  %7364 = vmatmul.mubr.f32.gmra.mrb[24].mxu1 %v9984_v25  ;;  %v2589_v25 = vld [vmem:[#allocation3 + $0xc8] sm:$0xff]  ;;  %v2598_v62 = vld [vmem:[#allocation3 + $0x110] sm:$0xff] }
 0x27d   : > { %v10185_v35 = vadd.f32 %v2001_v44, %v9975_v0  ;;  %6944 = vmatprep.mubr.f32.mxu0 %v2586_v52  ;;  %7366 = vmatprep.mubr.f32.mxu1 %v9987_v28  ;;  %v2599_v52 = vld [vmem:[#allocation3 + $0x118] sm:$0xff] }
 0x27f   : > { %v7145_v14 = vpop.f32.mrb[58].mxu1 }
 0x280   : > { %6945 = vmatmul.mubr.f32.gmra.mrb[158].mxu0 %v2587_v63  ;;  %v10188_v22 = vpop.f32.mrb[59].mxu1  ;;  %7367 = vmatmul.mubr.f32.gmra.mrb[128].mxu1 %v9992_v31  ;;  %v2600_v63 = vld [vmem:[#allocation3 + $0x120] sm:$0xff] }
 0x281   : > { %6947 = vmatprep.mubr.f32.mxu0 %v2588_v11  ;;  %7369 = vmatprep.mubr.f32.mxu1 %v9999_v4  ;;  %v2592_v4 = vld [vmem:[#allocation3 + $0xe0] sm:$0xff]  ;;  %v2602_v11 = vld [vmem:[#allocation3 + $0x130] sm:$0xff] }
 0x283   : > { %v6726_v29 = vpop.f32.mrb[88].mxu0 }
 0x284   : > { %v10193_v0 = vadd.f32 %v6726_v29, %v9989_v48  ;;  %v2020_v23 = vpop.f32.mrb[89].mxu0  ;;  %6948 = vmatmul.mubr.f32.gmra.mrb[56].mxu0 %v2589_v25  ;;  %7370 = vmatmul.mubr.f32.gmra.mrb[130].mxu1 %v9995_v12  ;;  %v2601_v29 = vld [vmem:[#allocation3 + $0x128] sm:$0xff] }
 0x285   : > { %6950 = vmatprep.mubr.f32.mxu0 %v2590_v16  ;;  %7372 = vmatprep.mubr.f32.mxu1 %v10005_v20  ;;  %v2594_v20 = vld [vmem:[#allocation3 + $0xf0] sm:$0xff] }
 0x286   : > { %v11002_v23 = vld [vmem:[#allocation15_spill] sm:$0xff] }
 0x287   : > { %v6729_v28 = vpop.f32.mrb[90].mxu0  ;;  %v10197_v5 = vpop.f32.mrb[60].mxu1 }
 0x288   : > { %v2029_v31 = vpop.f32.mrb[91].mxu0  ;;  %6951 = vmatmul.mubr.f32.gmra.mrb[160].mxu0 %v2591_v60  ;;  %v3562_v56 = vpop.f32.mrb[61].mxu1  ;;  %7373 = vmatmul.mubr.f32.gmra.mrb[30].mxu1 %v10010_v49  ;;  %v2595_v49 = vld [vmem:[#allocation3 + $0xf8] sm:$0xff] }
 0x289   : > { %v10201_v48 = vadd.f32 %v2029_v31, %v10001_v59  ;;  %6953 = vmatprep.mubr.f32.mxu0 %v2592_v4  ;;  %7375 = vmatprep.mubr.f32.mxu1 %v10013_v51  ;;  %v2603_v60 = vld [vmem:[#allocation3 + $0x138] sm:$0xff]  ;;  %v2604_v56 = vld [vmem:[#allocation3 + $0x140] sm:$0xff] }
 0x28b   : > { %v7154_v12 = vpop.f32.mrb[62].mxu1 }
 0x28c   : > { %6954 = vmatmul.mubr.f32.gmra.mrb[162].mxu0 %v2593_v7  ;;  %v10204_v36 = vpop.f32.mrb[63].mxu1  ;;  %7376 = vmatmul.mubr.f32.gmra.mrb[132].mxu1 %v10018_v8  ;;  %v11003_v12 = vld [vmem:[#allocation18_spill] sm:$0xff] }
 0x28d   : > { %6956 = vmatprep.mubr.f32.mxu0 %v2594_v20  ;;  %7378 = vmatprep.mubr.f32.mxu1 %v10025_v26  ;;  %v11004_v20 = vld [vmem:[#allocation14_spill] sm:$0xff] }
 0x28f   : > { %v6735_v42 = vpop.f32.mrb[92].mxu0 }
 0x290   : > { %v10209_v59 = vadd.f32 %v6735_v42, %v10015_v18  ;;  %v2048_v1 = vpop.f32.mrb[93].mxu0  ;;  %6957 = vmatmul.mubr.f32.gmra.mrb[62].mxu0 %v2595_v49  ;;  %7379 = vmatmul.mubr.f32.gmra.mrb[134].mxu1 %v10021_v3  ;;  %v10236_v49 = vld [vmem:[#allocation4 + $0x180] sm:$0xff] }
 0x291   : > { %6959 = vmatprep.mubr.f32.mxu0 %v2596_v24  ;;  %7381 = vmatprep.mubr.f32.mxu1 %v10031_v10  ;;  %v2605_v24 = vld [vmem:[#allocation3 + $0x148] sm:$0xff]  ;;  %v2606_v1 = vld [vmem:[#allocation3 + $0x150] sm:$0xff] }
 0x293   : > { %v6738_v51 = vpop.f32.mrb[94].mxu0  ;;  %v10213_v13 = vpop.f32.mrb[64].mxu1 }
 0x294   : > { %v2057_v8 = vpop.f32.mrb[95].mxu0  ;;  %6960 = vmatmul.mubr.f32.gmra.mrb[164].mxu0 %v2597_v33  ;;  %v3590_v44 = vpop.f32.mrb[65].mxu1  ;;  %7382 = vmatmul.mubr.f32.gmra.mrb[36].mxu1 %v10036_v2  ;;  %v10241_v33 = vld [vmem:[#allocation4 + $0x188] sm:$0xff] }
 0x295   : > { %v10217_v18 = vadd.f32 %v2057_v8, %v10027_v45  ;;  %6962 = vmatprep.mubr.f32.mxu0 %v2598_v62  ;;  %7384 = vmatprep.mubr.f32.mxu1 %v10039_v57  ;;  %v10244_v8 = vld [vmem:[#allocation4 + $0x190] sm:$0xff] }
 0x296   : > { %v2608_v62 = vld [vmem:[#allocation3 + $0x160] sm:$0xff] }
 0x297   : > { %v7163_v30 = vpop.f32.mrb[66].mxu1 }
 0x298   : > { %6963 = vmatmul.mubr.f32.gmra.mrb[166].mxu0 %v2599_v52  ;;  %v10220_v14 = vpop.f32.mrb[67].mxu1  ;;  %7385 = vmatmul.mubr.f32.gmra.mrb[136].mxu1 %v10044_v53  ;;  %v2607_v52 = vld [vmem:[#allocation3 + $0x158] sm:$0xff]  ;;  %v11005_v30 = vld [vmem:[#allocation19_spill] sm:$0xff] }
 0x299   : > { %6965 = vmatprep.mubr.f32.mxu0 %v2600_v63  ;;  %7387 = vmatprep.mubr.f32.mxu1 %v10051_v47 }
 0x29b   : > { %v6744_v16 = vpop.f32.mrb[96].mxu0 }
 0x29c   : > { %v10225_v45 = vadd.f32 %v6744_v16, %v10041_v50  ;;  %v2076_v25 = vpop.f32.mrb[97].mxu0  ;;  %6966 = vmatmul.mubr.f32.gmra.mrb[68].mxu0 %v2601_v29  ;;  %7388 = vmatmul.mubr.f32.gmra.mrb[138].mxu1 %v10047_v39  ;;  %v4496_v16 = vld [vmem:[#allocation4 + $0x30] sm:$0xff]  ;;  %v4498_v29 = vld [vmem:[#allocation4 + $0x40] sm:$0xff] }
 0x29d   : > { %6968 = vmatprep.mubr.f32.mxu0 %v2602_v11  ;;  %7390 = vmatprep.mubr.f32.mxu1 %v11002_v23 }
 0x29f   : > { %v6747_v28 = vpop.f32.mrb[98].mxu0  ;;  %v10229_v31 = vpop.f32.mrb[68].mxu1 }
 0x2a0   : > { %v2085_v4 = vpop.f32.mrb[99].mxu0  ;;  %6969 = vmatmul.mubr.f32.gmra.mrb[168].mxu0 %v2603_v60  ;;  %v3618_v7 = vpop.f32.mrb[69].mxu1  ;;  %7391 = vmatmul.mubr.f32.gmra.mrb[42].mxu1 %v11003_v12  ;;  %v2609_v28 = vld [vmem:[#allocation3 + $0x168] sm:$0xff] }
 0x2a1   : > { %v10233_v50 = vadd.f32 %v2085_v4, %v11004_v20  ;;  %6971 = vmatprep.mubr.f32.mxu0 %v2604_v56  ;;  %7393 = vmatprep.mubr.f32.mxu1 %v10065_v34  ;;  %v4497_v4 = vld [vmem:[#allocation4 + $0x38] sm:$0xff]  ;;  %v2610_v7 = vld [vmem:[#allocation3 + $0x170] sm:$0xff] }
 0x2a3   : > { %v7172_v42 = vpop.f32.mrb[70].mxu1 }
 0x2a4   : > { %6972 = vmatmul.mubr.f32.gmra.mrb[170].mxu0 %v2605_v24  ;;  %v10238_v51 = vpop.f32.mrb[71].mxu1  ;;  %7394 = vmatmul.mubr.f32.gmra.mrb[140].mxu1 %v10236_v49  ;;  %v2611_v42 = vld [vmem:[#allocation3 + $0x178] sm:$0xff] }
 0x2a5   : > { %6974 = vmatprep.mubr.f32.mxu0 %v2606_v1  ;;  %7396 = vmatprep.mubr.f32.mxu1 %v10241_v33 }
 0x2a7   : > { %v6753_v44 = vpop.f32.mrb[100].mxu0 }
 0x2a8   : > { %v10247_v63 = vadd.f32 %v6753_v44, %v11005_v30  ;;  %v2104_v11 = vpop.f32.mrb[101].mxu0  ;;  %6975 = vmatmul.mubr.f32.gmra.mrb[74].mxu0 %v2607_v52  ;;  %7397 = vmatmul.mubr.f32.gmra.mrb[142].mxu1 %v10244_v8  ;;  %v4500_v52 = vld [vmem:[#allocation4 + $0x50] sm:$0xff]  ;;  %v4501_v30 = vld [vmem:[#allocation4 + $0x58] sm:$0xff] }
 0x2a9   : > { %6977 = vmatprep.mubr.f32.mxu0 %v2608_v62  ;;  %7431 = vmatprep.mubr.f32.mxu1 %v4496_v16  ;;  %v4499_v62 = vld [vmem:[#allocation4 + $0x48] sm:$0xff] }
 0x2ab   : > { %v6756_v25 = vpop.f32.mrb[102].mxu0  ;;  %v10250_v60 = vpop.f32.mrb[72].mxu1 }
 0x2ac   : > { %v2113_v56 = vpop.f32.mrb[103].mxu0  ;;  %6978 = vmatmul.mubr.f32.gmra.mrb[172].mxu0 %v2609_v28  ;;  %v3646_v20 = vpop.f32.mrb[73].mxu1  ;;  %7432 = vmatmul.mubr.f32.vlgmr.msra.gmra.mrb[0].mxu1 %v4497_v4  ;;  %v4504_v28 = vld [vmem:[#allocation4 + $0x70] sm:$0xff] }
 0x2ad   : > { %v10253_v24 = vadd.f32 %v2113_v56, %v10079_v9  ;;  %6980 = vmatprep.mubr.f32.mxu0 %v2610_v7  ;;  %7434 = vmatprep.mubr.f32.mxu1 %v4498_v29  ;;  %v4502_v9 = vld [vmem:[#allocation4 + $0x60] sm:$0xff]  ;;  %v4503_v56 = vld [vmem:[#allocation4 + $0x68] sm:$0xff] }
 0x2af   : > { %v7181_v1 = vpop.f32.mrb[74].mxu1 }
 0x2b0   : > { %6981 = vmatmul.mubr.f32.gmra.mrb[174].mxu0 %v2611_v42  ;;  %v10255_v44 = vpop.f32.mrb[75].mxu1  ;;  %7435 = vmatmul.mubr.f32.gmra.mrb[144].mxu1 %v4499_v62  ;;  %v4505_v62 = vld [vmem:[#allocation4 + $0x78] sm:$0xff] }
 0x2b1   : > { %11006 = vst [vmem:[#allocation15_spill] sm:$0xff] %v10255_v44  ;;  %7437 = vmatprep.mubr.f32.mxu1 %v4500_v52  ;;  %v4506_v52 = vld [vmem:[#allocation4 + $0x80] sm:$0xff]  ;;  %v4523_v44 = vld [vmem:[#allocation4 + $0x108] sm:$0xff] }
 0x2b3   : > { %v6762_v11 = vpop.f32.mrb[104].mxu0 }
 0x2b4   : > { %v10258_v16 = vadd.f32 %v6762_v11, %v10104_v15  ;;  %v2132_v25 = vpop.f32.mrb[105].mxu0  ;;  %7438 = vmatmul.mubr.f32.gmra.mrb[146].mxu1 %v4501_v30  ;;  %v4507_v30 = vld [vmem:[#allocation4 + $0x88] sm:$0xff] }
 0x2b5   : > { %7440 = vmatprep.mubr.f32.mxu1 %v4502_v9 }
 0x2b7   : > { %v6765_v4 = vpop.f32.mrb[106].mxu0  ;;  %v10260_v29 = vpop.f32.mrb[76].mxu1 }
 0x2b8   : > { %11007 = vst [vmem:[#allocation18_spill] sm:$0xff] %v10260_v29  ;;  %v2141_v7 = vpop.f32.mrb[107].mxu0  ;;  %v3674_v20 = vpop.f32.mrb[77].mxu1  ;;  %7441 = vmatmul.mubr.f32.gmra.mrb[6].mxu1 %v4503_v56  ;;  %v4508_v4 = vld [vmem:[#allocation4 + $0x90] sm:$0xff]  ;;  %v4510_v56 = vld [vmem:[#allocation4 + $0xa0] sm:$0xff]  ;;  %v4517_v29 = vld [vmem:[#allocation4 + $0xd8] sm:$0xff] }
 0x2b9   : > { %v10263_v42 = vadd.f32 %v2141_v7, %v10120_v41  ;;  %7443 = vmatprep.mubr.f32.mxu1 %v4504_v28  ;;  %v4509_v28 = vld [vmem:[#allocation4 + $0x98] sm:$0xff] }
 0x2bb   : > { %v7190_v1 = vpop.f32.mrb[78].mxu1 }
 0x2bc   : > { %v10265_v15 = vpop.f32.mrb[79].mxu1  ;;  %7444 = vmatmul.mubr.f32.gmra.mrb[148].mxu1 %v4505_v62 }
 0x2bd   : > { %11008 = vst [vmem:[#allocation14_spill] sm:$0xff] %v10265_v15  ;;  %7446 = vmatprep.mubr.f32.mxu1 %v4506_v52  ;;  %v4511_v15 = vld [vmem:[#allocation4 + $0xa8] sm:$0xff] }
 0x2bf   : > { %v6771_v11 = vpop.f32.mrb[108].mxu0 }
 0x2c0   : > { %v10268_v25 = vadd.f32 %v6771_v11, %v10140_v17  ;;  %v2160_v9 = vpop.f32.mrb[109].mxu0  ;;  %7447 = vmatmul.mubr.f32.gmra.mrb[150].mxu1 %v4507_v30  ;;  %v4512_v30 = vld [vmem:[#allocation4 + $0xb0] sm:$0xff]  ;;  %v4513_v11 = vld [vmem:[#allocation4 + $0xb8] sm:$0xff] }
 0x2c1   : > { %7449 = vmatprep.mubr.f32.mxu1 %v4508_v4 }
 0x2c3   : > { %v6774_v41 = vpop.f32.mrb[110].mxu0  ;;  %v10270_v7 = vpop.f32.mrb[80].mxu1 }
 0x2c4   : > { %v2169_v20 = vpop.f32.mrb[111].mxu0  ;;  %v3864_v1 = vpop.f32.mrb[81].mxu1  ;;  %7450 = vmatmul.mubr.f32.gmra.mrb[12].mxu1 %v4509_v28  ;;  %v4516_v28 = vld [vmem:[#allocation4 + $0xd0] sm:$0xff] }
 0x2c5   : > { %v10273_v62 = vadd.f32 %v2169_v20, %v10152_v6  ;;  %7452 = vmatprep.mubr.f32.mxu1 %v4510_v56  ;;  %v4514_v1 = vld [vmem:[#allocation4 + $0xc0] sm:$0xff]  ;;  %v4515_v56 = vld [vmem:[#allocation4 + $0xc8] sm:$0xff] }
 0x2c7   : > { %v7231_v52 = vpop.f32.mrb[82].mxu1 }
 0x2c8   : > { %v10275_v17 = vpop.f32.mrb[83].mxu1  ;;  %7453 = vmatmul.mubr.f32.gmra.mrb[152].mxu1 %v4511_v15 }
 0x2c9   : > { %7455 = vmatprep.mubr.f32.mxu1 %v4512_v30 }
 0x2cb   : > { %v6812_v9 = vpop.f32.mrb[112].mxu0 }
 0x2cc   : > { %v10278_v4 = vadd.f32 %v6812_v9, %v10161_v55  ;;  %v2319_v41 = vpop.f32.mrb[113].mxu0  ;;  %7456 = vmatmul.mubr.f32.gmra.mrb[154].mxu1 %v4513_v11  ;;  %v4518_v11 = vld [vmem:[#allocation4 + $0xe0] sm:$0xff]  ;;  %v4519_v9 = vld [vmem:[#allocation4 + $0xe8] sm:$0xff] }
 0x2cd   : > { %7458 = vmatprep.mubr.f32.mxu1 %v4514_v1 }
 0x2cf   : > { %v6815_v6 = vpop.f32.mrb[114].mxu0  ;;  %v10280_v20 = vpop.f32.mrb[84].mxu1 }
 0x2d0   : > { %v2328_v52 = vpop.f32.mrb[115].mxu0  ;;  %v3892_v21 = vpop.f32.mrb[85].mxu1  ;;  %7459 = vmatmul.mubr.f32.gmra.mrb[18].mxu1 %v4515_v56  ;;  %v4522_v56 = vld [vmem:[#allocation4 + $0x100] sm:$0xff] }
 0x2d1   : > { %v10283_v15 = vadd.f32 %v2328_v52, %v10169_v37  ;;  %7461 = vmatprep.mubr.f32.mxu1 %v4516_v28  ;;  %v4520_v21 = vld [vmem:[#allocation4 + $0xf0] sm:$0xff]  ;;  %v4521_v28 = vld [vmem:[#allocation4 + $0xf8] sm:$0xff] }
 0x2d3   : > { %v7240_v30 = vpop.f32.mrb[86].mxu1 }
 0x2d4   : > { %v10285_v55 = vpop.f32.mrb[87].mxu1  ;;  %7462 = vmatmul.mubr.f32.gmra.mrb[156].mxu1 %v4517_v29 }
 0x2d5   : > { %7464 = vmatprep.mubr.f32.mxu1 %v4518_v11 }
 0x2d7   : > { %v6821_v41 = vpop.f32.mrb[116].mxu0 }
 0x2d8   : > { %v10288_v1 = vadd.f32 %v6821_v41, %v10177_v54  ;;  %v2347_v6 = vpop.f32.mrb[117].mxu0  ;;  %7465 = vmatmul.mubr.f32.gmra.mrb[158].mxu1 %v4519_v9  ;;  %v4524_v9 = vld [vmem:[#allocation4 + $0x110] sm:$0xff]  ;;  %v4525_v41 = vld [vmem:[#allocation4 + $0x118] sm:$0xff] }
 0x2d9   : > { %7467 = vmatprep.mubr.f32.mxu1 %v4520_v21 }
 0x2db   : > { %v6824_v37 = vpop.f32.mrb[118].mxu0  ;;  %v10290_v52 = vpop.f32.mrb[88].mxu1 }
 0x2dc   : > { %v2356_v30 = vpop.f32.mrb[119].mxu0  ;;  %v3920_v58 = vpop.f32.mrb[89].mxu1  ;;  %7468 = vmatmul.mubr.f32.gmra.mrb[24].mxu1 %v4521_v28 }
 0x2dd   : > { %v10293_v29 = vadd.f32 %v2356_v30, %v10185_v35  ;;  %7470 = vmatprep.mubr.f32.mxu1 %v4522_v56  ;;  %v4526_v58 = vld [vmem:[#allocation4 + $0x120] sm:$0xff] }
 0x2df   : > { %v7249_v11 = vpop.f32.mrb[90].mxu1 }
 0x2e0   : > { %v10295_v54 = vpop.f32.mrb[91].mxu1  ;;  %7471 = vmatmul.mubr.f32.gmra.mrb[160].mxu1 %v4523_v44 }
 0x2e1   : > { %7473 = vmatprep.mubr.f32.mxu1 %v4524_v9 }
 0x2e3   : > { %v6830_v6 = vpop.f32.mrb[120].mxu0 }
 0x2e4   : > { %v10298_v21 = vadd.f32 %v6830_v6, %v10193_v0  ;;  %v2375_v37 = vpop.f32.mrb[121].mxu0  ;;  %7474 = vmatmul.mubr.f32.gmra.mrb[162].mxu1 %v4525_v41 }
 0x2e5   : > { %7476 = vmatprep.mubr.f32.mxu1 %v4526_v58 }
 0x2e7   : > { %v6833_v28 = vpop.f32.mrb[122].mxu0  ;;  %v10300_v35 = vpop.f32.mrb[92].mxu1 }
 0x2e8   : > { %v2384_v56 = vpop.f32.mrb[123].mxu0  ;;  %v3948_v30 = vpop.f32.mrb[93].mxu1  ;;  %7477 = vmatmul.mubr.f32.gmra.mrb[30].mxu1 %v10025_v26  ;;  %v5184_v26 = vld [vmem:[%s10924_s5] sm:$0xff] }
 0x2e9   : > { %v10304_v44 = vadd.f32 %v2384_v56, %v10201_v48  ;;  %7479 = vmatprep.mubr.f32.mxu1 %v10021_v3  ;;  %v5185_v3 = vld [vmem:[%s10924_s5 + $0x8] sm:$0xff] }
 0x2eb   : > { %v7258_v11 = vpop.f32.mrb[94].mxu1 }
 0x2ec   : > { %v10307_v9 = vpop.f32.mrb[95].mxu1  ;;  %7480 = vmatmul.mubr.f32.gmra.mrb[164].mxu1 %v10031_v10  ;;  %v7871_v10 = vpack.c.bf16 %v5185_v3, %v5184_v26 }
 0x2ed   : > { %7482 = vmatprep.mubr.f32.mxu1 %v10036_v2 }
 0x2ee   : > { %7872 = vmatprep.subr.bf16.mxu0 %v7871_v10 }
 0x2ef   : > { %v6839_v0 = vpop.f32.mrb[124].mxu0  ;;  %7874 = vmatpush3.bf16.msra.mxu0 %v7871_v10 }
 0x2f0   : > { %v10312_v41 = vadd.f32 %v6839_v0, %v10209_v59  ;;  %v2403_v6 = vpop.f32.mrb[125].mxu0  ;;  %7483 = vmatmul.mubr.f32.gmra.mrb[166].mxu1 %v10039_v57 }
 0x2f1   : > { %7485 = vmatprep.mubr.f32.mxu1 %v10044_v53 }
 0x2f3   : > { %v6842_v48 = vpop.f32.mrb[126].mxu0  ;;  %v10322_v2 = vpop.f32.mrb[96].mxu1 }
 0x2f4   : > { %v2412_v59 = vpop.f32.mrb[127].mxu0  ;;  %v3976_v37 = vpop.f32.mrb[97].mxu1  ;;  %7486 = vmatmul.mubr.f32.gmra.mrb[36].mxu1 %v10051_v47  ;;  %v5186_v47 = vld [vmem:[%s10924_s5 + $0x10] sm:$0xff] }
 0x2f5   : > { %v10326_v57 = vadd.f32 %v2412_v59, %v10217_v18  ;;  %7488 = vmatprep.mubr.f32.mxu1 %v10047_v39  ;;  %v5187_v39 = vld [vmem:[%s10924_s5 + $0x18] sm:$0xff] }
 0x2f6   : > { %v7875_v18 = vpack.c.bf16 %v5187_v39, %v5186_v47 }
 0x2f7   : > { %v7267_v58 = vpop.f32.mrb[98].mxu1 }
 0x2f8   : > { %v10329_v28 = vpop.f32.mrb[99].mxu1  ;;  %7489 = vmatmul.mubr.f32.gmra.mrb[168].mxu1 %v11002_v23  ;;  %7876 = vmatprep.subr.bf16.mxu0 %v7875_v18 }
 0x2f9   : > { %7491 = vmatprep.mubr.f32.mxu1 %v11003_v12  ;;  %7878 = vmatpush3.bf16.msra.mxu0 %v7875_v18 }
 0x2fb   : > { %v6848_v53 = vpop.f32.mrb[128].mxu0 }
 0x2fc   : > { %v10334_v56 = vadd.f32 %v6848_v53, %v10225_v45  ;;  %v2431_v30 = vpop.f32.mrb[129].mxu0  ;;  %7492 = vmatmul.mubr.f32.gmra.mrb[170].mxu1 %v10065_v34 }
 0x2fd   : > { %7494 = vmatprep.mubr.f32.mxu1 %v10236_v49 }
 0x2ff   : > { %v6851_v23 = vpop.f32.mrb[130].mxu0  ;;  %v10344_v12 = vpop.f32.mrb[100].mxu1 }
 0x300   : > { %v2440_v45 = vpop.f32.mrb[131].mxu0  ;;  %v4004_v11 = vpop.f32.mrb[101].mxu1  ;;  %7495 = vmatmul.mubr.f32.gmra.mrb[42].mxu1 %v10241_v33  ;;  %v5189_v33 = vld [vmem:[%s10924_s5 + $0x28] sm:$0xff] }
 0x301   : > { %v10348_v34 = vadd.f32 %v2440_v45, %v10233_v50  ;;  %7497 = vmatprep.mubr.f32.mxu1 %v10244_v8  ;;  %v5188_v50 = vld [vmem:[%s10924_s5 + $0x20] sm:$0xff] }
 0x302   : > { %v7879_v8 = vpack.c.bf16 %v5189_v33, %v5188_v50  ;;  %v5191_v33 = vld [vmem:[%s10924_s5 + $0x38] sm:$0xff] }
 0x303   : > { %v7276_v0 = vpop.f32.mrb[102].mxu1 }
 0x304   : > { %v10351_v6 = vpop.f32.mrb[103].mxu1  ;;  %7498 = vmatmul.mubr.f32.gmra.mrb[172].mxu1 %v10106_v27  ;;  %7880 = vmatprep.subr.bf16.mxu0 %v7879_v8 }
 0x305   : > { %7500 = vmatprep.mubr.f32.mxu1 %v10106_v27  ;;  %7882 = vmatpush3.bf16.msra.mxu0 %v7879_v8 }
 0x307   : > { %v6857_v49 = vpop.f32.mrb[132].mxu0 }
 0x308   : > { %v10356_v26 = vadd.f32 %v6857_v49, %v10247_v63  ;;  %v2459_v3 = vpop.f32.mrb[133].mxu0  ;;  %7501 = vmatmul.mubr.f32.gmra.mrb[174].mxu1 %v10106_v27 }
 0x30b   : > { %v6860_v10 = vpop.f32.mrb[134].mxu0  ;;  %v10365_v48 = vpop.f32.mrb[104].mxu1 }
 0x30c   : > { %v2468_v59 = vpop.f32.mrb[135].mxu0  ;;  %v4032_v37 = vpop.f32.mrb[105].mxu1 }
 0x30d   : > { %v10368_v63 = vadd.f32 %v2468_v59, %v10253_v24 }
 0x30f   : > { %v7285_v27 = vpop.f32.mrb[106].mxu1 }
 0x310   : > { %v10370_v58 = vpop.f32.mrb[107].mxu1 }
 0x313   : > { %v6866_v53 = vpop.f32.mrb[136].mxu0 }
 0x314   : > { %v10373_v30 = vadd.f32 %v6866_v53, %v10258_v16  ;;  %v2487_v47 = vpop.f32.mrb[137].mxu0  ;;  %v5190_v16 = vld [vmem:[%s10924_s5 + $0x30] sm:$0xff] }
 0x317   : > { %v6869_v39 = vpop.f32.mrb[138].mxu0  ;;  %v10375_v18 = vpop.f32.mrb[108].mxu1 }
 0x318   : > { %11009 = vst [vmem:[#allocation19_spill] sm:$0xff] %v10375_v18  ;;  %v2496_v23 = vpop.f32.mrb[139].mxu0  ;;  %v4060_v45 = vpop.f32.mrb[109].mxu1 }
 0x319   : > { %v10378_v11 = vadd.f32 %v2496_v23, %v10263_v42  ;;  %v7883_v42 = vpack.c.bf16 %v5191_v33, %v5190_v16  ;;  %v5192_v16 = vld [vmem:[%s10924_s5 + $0x40] sm:$0xff] }
 0x31b   : > { %v7294_v0 = vpop.f32.mrb[110].mxu1  ;;  %7884 = vmatprep.subr.bf16.mxu0 %v7883_v42 }
 0x31c   : > { %v10380_v49 = vpop.f32.mrb[111].mxu1  ;;  %7886 = vmatpush3.bf16.msra.mxu0 %v7883_v42 }
 0x31d   : > { %11010 = vst [vmem:[#allocation23_spill] sm:$0xff] %v10380_v49 }
 0x31f   : > { %v6875_v24 = vpop.f32.mrb[140].mxu0 }
 0x320   : > { %v10383_v3 = vadd.f32 %v6875_v24, %v10268_v25  ;;  %v2515_v50 = vpop.f32.mrb[141].mxu0  ;;  %v11011_v24 = vld [vmem:[#allocation7_spill] sm:$0xff] }
 0x323   : > { %v6878_v8 = vpop.f32.mrb[142].mxu0  ;;  %v7332_v10 = vpop.f32.mrb[112].mxu1 }
 0x324   : > { %v2524_v59 = vpop.f32.mrb[143].mxu0  ;;  %v4250_v37 = vpop.f32.mrb[113].mxu1 }
 0x325   : > { %v10392_v27 = vadd.f32 %v2524_v59, %v10273_v62  ;;  %v5193_v62 = vld [vmem:[%s10924_s5 + $0x48] sm:$0xff] }
 0x326   : > { %v7887_v42 = vpack.c.bf16 %v5193_v62, %v5192_v16 }
 0x327   : > { %v10394_v25 = vpop.f32.mrb[32].mxu0  ;;  %v7335_v53 = vpop.f32.mrb[114].mxu1 }
 0x328   : > { %v10396_v47 = vpop.f32.mrb[33].mxu0  ;;  %v4259_v39 = vpop.f32.mrb[115].mxu1  ;;  %7888 = vmatprep.subr.bf16.mxu0 %v7887_v42 }
 0x329   : > { %7890 = vmatpush3.bf16.msra.mxu0 %v7887_v42 }
 0x32b   : > { %v6916_v23 = vpop.f32.mrb[144].mxu0 }
 0x32c   : > { %v2920_v45 = vadd.f32 %v6916_v23, %v10278_v4  ;;  %v2705_v0 = vpop.f32.mrb[145].mxu0 }
 0x32e   : > { %v3306_v50 = vadd.f32 %v11011_v24, %v2920_v45  ;;  %v11012_v45 = vld [vmem:[#allocation12_spill] sm:$0xff] }
 0x32f   : > { %v6919_v33 = vpop.f32.mrb[146].mxu0  ;;  %v7341_v8 = vpop.f32.mrb[116].mxu1 }
 0x330   : > { %v3693_v59 = vadd.f32 %v10150_v38, %v3306_v50  ;;  %v2714_v37 = vpop.f32.mrb[147].mxu0  ;;  %v4278_v53 = vpop.f32.mrb[117].mxu1 }
 0x331   : > { %v2921_v4 = vadd.f32 %v2714_v37, %v10283_v15 }
 0x332   : > { %v4079_v23 = vadd.f32 %v10270_v7, %v3693_v59  ;;  %v5194_v7 = vld [vmem:[%s10924_s5 + $0x50] sm:$0xff]  ;;  %v11013_v59 = vld [vmem:[#allocation8_spill] sm:$0xff] }
 0x333   : > { %v3307_v0 = vadd.f32 %v11012_v45, %v2921_v4  ;;  %v10410_v24 = vpop.f32.mrb[38].mxu0  ;;  %v7344_v49 = vpop.f32.mrb[118].mxu1  ;;  %v5196_v45 = vld [vmem:[%s10924_s5 + $0x60] sm:$0xff] }
 0x334   : > { %v10412_v18 = vadd.f32 %v7332_v10, %v4079_v23  ;;  %v10414_v33 = vpop.f32.mrb[39].mxu0  ;;  %v4287_v16 = vpop.f32.mrb[119].mxu1  ;;  %v5195_v49 = vld [vmem:[%s10924_s5 + $0x58] sm:$0xff] }
 0x335   : > { %v3694_v38 = vadd.f32 %v10156_v61, %v3307_v0  ;;  %v7891_v42 = vpack.c.bf16 %v5195_v49, %v5194_v7  ;;  %v5198_v7 = vld [vmem:[%s10924_s5 + $0x70] sm:$0xff]  ;;  %v5199_v49 = vld [vmem:[%s10924_s5 + $0x78] sm:$0xff] }
 0x337   : > { %v4080_v50 = vadd.f32 %v10275_v17, %v3694_v38  ;;  %v6925_v62 = vpop.f32.mrb[148].mxu0  ;;  %7892 = vmatprep.subr.bf16.mxu0 %v7891_v42 }
 0x338   : > { %v2924_v15 = vadd.f32 %v6925_v62, %v10288_v1  ;;  %v2733_v37 = vpop.f32.mrb[149].mxu0  ;;  %7894 = vmatpush3.bf16.msra.mxu0 %v7891_v42  ;;  %v11014_v62 = vld [vmem:[#allocation6_spill] sm:$0xff] }
 0x339   : > { %v10425_v10 = vadd.f32 %v4259_v39, %v4080_v50  ;;  %v5197_v39 = vld [vmem:[%s10924_s5 + $0x68] sm:$0xff] }
 0x33a   : > { %v3310_v53 = vadd.f32 %v11013_v59, %v2924_v15  ;;  %v7895_v38 = vpack.c.bf16 %v5197_v39, %v5196_v45  ;;  %v11015_v39 = vld [vmem:[#allocation9_spill] sm:$0xff] }
 0x33b   : > { %v6928_v61 = vpop.f32.mrb[150].mxu0  ;;  %v7350_v4 = vpop.f32.mrb[120].mxu1 }
 0x33c   : > { %v3697_v17 = vadd.f32 %v10165_v40, %v3310_v53  ;;  %v2742_v1 = vpop.f32.mrb[151].mxu0  ;;  %v4306_v23 = vpop.f32.mrb[121].mxu1  ;;  %7896 = vmatprep.subr.bf16.mxu0 %v7895_v38 }
 0x33d   : > { %v2925_v0 = vadd.f32 %v2742_v1, %v10293_v29  ;;  %7898 = vmatpush3.bf16.msra.mxu0 %v7895_v38 }
 0x33e   : > { %v4083_v50 = vadd.f32 %v10280_v20, %v3697_v17  ;;  %v7899_v20 = vpack.c.bf16 %v5199_v49, %v5198_v7 }
 0x33f   : > { %v3311_v15 = vadd.f32 %v11014_v62, %v2925_v0  ;;  %v10438_v37 = vpop.f32.mrb[44].mxu0  ;;  %v7353_v40 = vpop.f32.mrb[122].mxu1 }
 0x340   : > { %v10446_v42 = vadd.f32 %v7341_v8, %v4083_v50  ;;  %v10448_v29 = vpop.f32.mrb[45].mxu0  ;;  %v4315_v59 = vpop.f32.mrb[123].mxu1  ;;  %7900 = vmatprep.subr.bf16.mxu0 %v7899_v20 }
 0x341   : > { %v3698_v53 = vadd.f32 %v10172_v32, %v3311_v15  ;;  %7902 = vmatpush3.bf16.msra.mxu0 %v7899_v20 }
 0x343   : > { %v4084_v61 = vadd.f32 %v10285_v55, %v3698_v53  ;;  %v6934_v17 = vpop.f32.mrb[152].mxu0  ;;  %v11016_v55 = vld [vmem:[#allocation5_spill] sm:$0xff] }
 0x344   : > { %v2928_v1 = vadd.f32 %v6934_v17, %v10298_v21  ;;  %v2761_v23 = vpop.f32.mrb[153].mxu0 }
 0x345   : > { %v10453_v45 = vadd.f32 %v4287_v16, %v4084_v61 }
 0x346   : > { %v3314_v8 = vadd.f32 %v11015_v39, %v2928_v1 }
 0x347   : > { %v6937_v0 = vpop.f32.mrb[154].mxu0  ;;  %v7359_v50 = vpop.f32.mrb[124].mxu1 }
 0x348   : > { %v3701_v62 = vadd.f32 %v10181_v46, %v3314_v8  ;;  %v2770_v38 = vpop.f32.mrb[155].mxu0  ;;  %v4334_v40 = vpop.f32.mrb[125].mxu1 }
 0x349   : > { %v2929_v32 = vadd.f32 %v2770_v38, %v10304_v44 }
 0x34a   : > { %v4087_v15 = vadd.f32 %v10290_v52, %v3701_v62  ;;  %v11017_v52 = vld [vmem:[#allocation10_spill] sm:$0xff] }
 0x34b   : > { %v3315_v7 = vadd.f32 %v11016_v55, %v2929_v32  ;;  %v10460_v49 = vpop.f32.mrb[50].mxu0  ;;  %v7362_v21 = vpop.f32.mrb[126].mxu1  ;;  %v11018_v32 = vld [vmem:[#allocation17_spill] sm:$0xff] }
 0x34c   : > { %v10462_v20 = vadd.f32 %v7350_v4, %v4087_v15  ;;  %v10464_v16 = vpop.f32.mrb[51].mxu0  ;;  %v4343_v53 = vpop.f32.mrb[127].mxu1 }
 0x34d   : > { %v3702_v61 = vadd.f32 %v10188_v22, %v3315_v7 }
 0x34f   : > { %v4088_v46 = vadd.f32 %v10295_v54, %v3702_v61  ;;  %v6943_v17 = vpop.f32.mrb[156].mxu0 }
 0x350   : > { %v2932_v1 = vadd.f32 %v6943_v17, %v10312_v41  ;;  %v2789_v44 = vpop.f32.mrb[157].mxu0 }
 0x351   : > { %v10469_v23 = vadd.f32 %v4315_v59, %v4088_v46 }
 0x352   : > { %v3318_v39 = vadd.f32 %v11017_v52, %v2932_v1 }
 0x353   : > { %v6946_v8 = vpop.f32.mrb[158].mxu0  ;;  %v7368_v0 = vpop.f32.mrb[128].mxu1 }
 0x354   : > { %v3705_v4 = vadd.f32 %v10197_v5, %v3318_v39  ;;  %v2798_v62 = vpop.f32.mrb[159].mxu0  ;;  %v4362_v38 = vpop.f32.mrb[129].mxu1 }
 0x355   : > { %v2933_v40 = vadd.f32 %v2798_v62, %v10326_v57  ;;  %v11020_v62 = vld [vmem:[#allocation20_spill] sm:$0xff] }
 0x356   : > { %v4091_v22 = vadd.f32 %v10300_v35, %v3705_v4  ;;  %v11019_v35 = vld [vmem:[#allocation11_spill] sm:$0xff] }
 0x357   : > { %v3319_v54 = vadd.f32 %v11018_v32, %v2933_v40  ;;  %v10476_v15 = vpop.f32.mrb[56].mxu0  ;;  %v7371_v41 = vpop.f32.mrb[130].mxu1 }
 0x358   : > { %v10478_v55 = vadd.f32 %v7359_v50, %v4091_v22  ;;  %v10480_v59 = vpop.f32.mrb[57].mxu0  ;;  %v4371_v7 = vpop.f32.mrb[131].mxu1 }
 0x359   : > { %v3706_v21 = vadd.f32 %v10204_v36, %v3319_v54 }
 0x35b   : > { %v4092_v5 = vadd.f32 %v10307_v9, %v3706_v21  ;;  %v6952_v61 = vpop.f32.mrb[160].mxu0 }
 0x35c   : > { %v2936_v46 = vadd.f32 %v6952_v61, %v10334_v56  ;;  %v2817_v57 = vpop.f32.mrb[161].mxu0 }
 0x35d   : > { %v10485_v17 = vadd.f32 %v4343_v53, %v4092_v5 }
 0x35e   : > { %v3322_v1 = vadd.f32 %v11019_v35, %v2936_v46 }
 0x35f   : > { %v6955_v44 = vpop.f32.mrb[162].mxu0  ;;  %v7377_v52 = vpop.f32.mrb[132].mxu1 }
 0x360   : > { %v3709_v50 = vadd.f32 %v10213_v13, %v3322_v1  ;;  %v2826_v39 = vpop.f32.mrb[163].mxu0  ;;  %v4390_v8 = vpop.f32.mrb[133].mxu1  ;;  %v11022_v44 = vld [vmem:[#allocation16_spill] sm:$0xff] }
 0x361   : > { %v2937_v4 = vadd.f32 %v2826_v39, %v10348_v34 }
 0x362   : > { %v4095_v36 = vadd.f32 %v10322_v2, %v3709_v50  ;;  %v11021_v2 = vld [vmem:[#allocation13_spill] sm:$0xff] }
 0x363   : > { %v3323_v9 = vadd.f32 %v11020_v62, %v2937_v4  ;;  %v10492_v38 = vpop.f32.mrb[62].mxu0  ;;  %v7380_v56 = vpop.f32.mrb[134].mxu1 }
 0x364   : > { %v10494_v40 = vadd.f32 %v7368_v0, %v4095_v36  ;;  %v10496_v53 = vpop.f32.mrb[63].mxu0  ;;  %v4399_v22 = vpop.f32.mrb[135].mxu1 }
 0x365   : > { %v3710_v32 = vadd.f32 %v10220_v14, %v3323_v9 }
 0x367   : > { %v4096_v13 = vadd.f32 %v10329_v28, %v3710_v32  ;;  %v6961_v54 = vpop.f32.mrb[164].mxu0 }
 0x368   : > { %v2940_v41 = vadd.f32 %v6961_v54, %v10356_v26  ;;  %v2845_v34 = vpop.f32.mrb[165].mxu0 }
 0x369   : > { %v10501_v21 = vadd.f32 %v4371_v7, %v4096_v13 }
 0x36a   : > { %v3326_v5 = vadd.f32 %v11021_v2, %v2940_v41 }
 0x36b   : > { %v6964_v61 = vpop.f32.mrb[166].mxu0  ;;  %v7386_v46 = vpop.f32.mrb[136].mxu1 }
 0x36c   : > { %v3713_v0 = vadd.f32 %v10229_v31, %v3326_v5  ;;  %v2854_v57 = vpop.f32.mrb[167].mxu0  ;;  %v4418_v35 = vpop.f32.mrb[137].mxu1  ;;  %v11023_v5 = vld [vmem:[#allocation15_spill] sm:$0xff] }
 0x36d   : > { %v2941_v1 = vadd.f32 %v2854_v57, %v10368_v63 }
 0x36e   : > { %v4099_v14 = vadd.f32 %v10344_v12, %v3713_v0 }
 0x36f   : > { %v3327_v28 = vadd.f32 %v11022_v44, %v2941_v1  ;;  %v10508_v50 = vpop.f32.mrb[68].mxu0  ;;  %v7389_v26 = vpop.f32.mrb[138].mxu1  ;;  %v11024_v44 = vld [vmem:[#allocation21_spill] sm:$0xff] }
 0x370   : > { %v10510_v39 = vadd.f32 %v7377_v52, %v4099_v14  ;;  %v10512_v7 = vpop.f32.mrb[69].mxu0  ;;  %v4427_v8 = vpop.f32.mrb[139].mxu1 }
 0x371   : > { %v3714_v4 = vadd.f32 %v10238_v51, %v3327_v28 }
 0x373   : > { %v4100_v31 = vadd.f32 %v10351_v6, %v3714_v4  ;;  %v6970_v36 = vpop.f32.mrb[168].mxu0 }
 0x374   : > { %v2944_v62 = vadd.f32 %v6970_v36, %v10373_v30  ;;  %v2873_v63 = vpop.f32.mrb[169].mxu0  ;;  %v11025_v36 = vld [vmem:[#allocation18_spill] sm:$0xff] }
 0x375   : > { %v10517_v9 = vadd.f32 %v4399_v22, %v4100_v31 }
 0x376   : > { %v3330_v12 = vadd.f32 %v10077_v19, %v2944_v62 }
 0x377   : > { %v6973_v56 = vpop.f32.mrb[170].mxu0  ;;  %v7395_v32 = vpop.f32.mrb[140].mxu1 }
 0x378   : > { %v3717_v52 = vadd.f32 %v10250_v60, %v3330_v12  ;;  %v2882_v13 = vpop.f32.mrb[171].mxu0  ;;  %v4446_v54 = vpop.f32.mrb[141].mxu1  ;;  %v11026_v56 = vld [vmem:[#allocation19_spill] sm:$0xff] }
 0x379   : > { %v2945_v41 = vadd.f32 %v2882_v13, %v10378_v11  ;;  %v11027_v54 = vld [vmem:[#allocation22_spill] sm:$0xff] }
 0x37a   : > { %v4103_v51 = vadd.f32 %v10365_v48, %v3717_v52  ;;  %v10535_v48 = vld [vmem:[%s10923_s4] ss:$0 sm:$0xff] }
 0x37b   : > { %v3331_v6 = vadd.f32 %v10093_v43, %v2945_v41  ;;  %v10524_v34 = vpop.f32.mrb[74].mxu0  ;;  %v7398_v30 = vpop.f32.mrb[142].mxu1 }
 0x37c   : > { %v10526_v2 = vadd.f32 %v7386_v46, %v4103_v51  ;;  %v10528_v22 = vpop.f32.mrb[75].mxu0  ;;  %v4455_v19 = vpop.f32.mrb[143].mxu1 }
 0x37d   : > { %v3718_v61 = vadd.f32 %v11023_v5, %v3331_v6  ;;  %v11028_v5 = vld [vmem:[#allocation14_spill] sm:$0xff] }
 0x37f   : > { %v4104_v60 = vadd.f32 %v10370_v58, %v3718_v61  ;;  %v6979_v0 = vpop.f32.mrb[172].mxu0  ;;  %v7433_v57 = vpop.f32.mrb[0].mxu1 }
 0x380   : > { %v2948_v43 = vadd.f32 %v6979_v0, %v10383_v3  ;;  %v2901_v11 = vpop.f32.mrb[173].mxu0  ;;  %v7903_v46 = vadd.f32 %v7433_v57, %v10394_v25  ;;  %v4627_v35 = vpop.f32.mrb[1].mxu1 }
 0x381   : > { %v10539_v1 = vadd.f32 %v4427_v8, %v4104_v60  ;;  %v7904_v14 = vadd.f32 %v4627_v35, %v10396_v47  ;;  %v11029_v60 = vld [vmem:[#allocation23_spill] sm:$0xff] }
 0x382   : > { %v3334_v28 = vadd.f32 %v11024_v44, %v2948_v43  ;;  %v10544_v58 = vadd.f32 %v7903_v46, %v10535_v48 }
 0x383   : > { %v6982_v26 = vpop.f32.mrb[174].mxu0  ;;  %v10547_v4 = vadd.f32 %v7904_v14, %v10535_v48  ;;  %v7436_v31 = vpop.f32.mrb[144].mxu1 }
 0x384   : > { %v3721_v3 = vadd.f32 %v11025_v36, %v3334_v28  ;;  %v2910_v62 = vpop.f32.mrb[175].mxu0  ;;  %v5823_v25 = vmul.f32 -1.442695, %v10544_v58  ;;  %v4852_v8 = vadd.f32 %v7436_v31, %v10412_v18  ;;  %v4637_v63 = vpop.f32.mrb[145].mxu1 }
 0x385   : > { %v2949_v47 = vadd.f32 %v2910_v62, %v10392_v27  ;;  %v5822_v12 = vmul.f32 -1.442695, %v10547_v4 }
 0x386   : > { %v4107_v52 = vadd.f32 %v11026_v56, %v3721_v3  ;;  %8296 = vpow2.f32 %v5823_v25  ;;  %v10556_v13 = vadd.f32 %v10535_v48, %v4852_v8 }
 0x387   : > { %v3335_v41 = vadd.f32 %v11027_v54, %v2949_v47  ;;  %8298 = vpow2.f32 %v5822_v12  ;;  %v7439_v51 = vpop.f32.mrb[146].mxu1 }
 0x388   : > { %v10559_v6 = vadd.f32 %v7395_v32, %v4107_v52  ;;  %v5824_v30 = vmul.f32 -1.442695, %v10556_v13  ;;  %v4646_v18 = vpop.f32.mrb[147].mxu1 }
 0x389   : > { %v3722_v61 = vadd.f32 %v11028_v5, %v3335_v41  ;;  %v4853_v27 = vadd.f32 %v4646_v18, %v10425_v10 }
 0x38a   : > { %8300 = vpow2.f32 %v5824_v30 }
 0x38b   : > { %v4108_v0 = vadd.f32 %v11029_v60, %v3722_v61  ;;  %v10566_v57 = vadd.f32 %v10535_v48, %v4853_v27  ;;  %v7442_v43 = vpop.f32.mrb[6].mxu1 }
 0x38c   : > { %v7905_v11 = vadd.f32 %v7442_v43, %v10410_v24  ;;  %v4655_v46 = vpop.f32.mrb[7].mxu1 }
 0x38d   : > { %v10569_v35 = vadd.f32 %v4455_v19, %v4108_v0  ;;  %v5825_v32 = vmul.f32 -1.442695, %v10566_v57  ;;  %v7906_v14 = vadd.f32 %v4655_v46, %v10414_v33 }
 0x38e   : > { %v10574_v44 = vadd.f32 %v7905_v11, %v10535_v48 }
 0x38f   : > { %8302 = vpow2.f32 %v5825_v32  ;;  %v10577_v10 = vadd.f32 %v7906_v14, %v10535_v48  ;;  %v7445_v28 = vpop.f32.mrb[148].mxu1 }
 0x390   : > { %v8297_v26 = vpop.eup %8296  ;;  %v5827_v31 = vmul.f32 -1.442695, %v10574_v44  ;;  %v4856_v24 = vadd.f32 %v7445_v28, %v10446_v42  ;;  %v4665_v36 = vpop.f32.mrb[149].mxu1 }
 0x391   : > { %v8299_v19 = vpop.eup %8298  ;;  %v5018_v3 = vadd.f32 1.0, %v8297_v26  ;;  %v5826_v62 = vmul.f32 -1.442695, %v10577_v10  ;;  %v10606_v26 = vld [vmem:[%s10928_s9] ss:$0 sm:$0xff] }
 0x392   : > { %v5017_v25 = vadd.f32 1.0, %v8299_v19  ;;  %8304 = vpow2.f32 %v5827_v31  ;;  %v10583_v33 = vadd.f32 %v10535_v48, %v4856_v24 }
 0x393   : > { %8306 = vrcp.f32 %v5018_v3  ;;  %v7448_v8 = vpop.f32.mrb[150].mxu1 }
 0x394   : > { %v8301_v63 = vpop.eup %8300  ;;  %8308 = vrcp.f32 %v5017_v25  ;;  %v5828_v47 = vmul.f32 -1.442695, %v10583_v33  ;;  %v4674_v12 = vpop.f32.mrb[151].mxu1 }
 0x395   : > { %v5019_v56 = vadd.f32 1.0, %v8301_v63  ;;  %8310 = vpow2.f32 %v5826_v62  ;;  %v4857_v42 = vadd.f32 %v4674_v12, %v10453_v45 }
 0x396   : > { %8312 = vpow2.f32 %v5828_v47 }
 0x397   : > { %8314 = vrcp.f32 %v5019_v56  ;;  %v10588_v52 = vadd.f32 %v10535_v48, %v4857_v42  ;;  %v7451_v54 = vpop.f32.mrb[12].mxu1 }
 0x398   : > { %v7907_v41 = vadd.f32 %v7451_v54, %v10438_v37  ;;  %v4683_v51 = vpop.f32.mrb[13].mxu1 }
 0x399   : > { %v8303_v30 = vpop.eup %8302  ;;  %v5829_v18 = vmul.f32 -1.442695, %v10588_v52  ;;  %v7908_v5 = vadd.f32 %v4683_v51, %v10448_v29 }
 0x39a   : > { %v5020_v61 = vadd.f32 1.0, %v8303_v30  ;;  %v10594_v27 = vadd.f32 %v7907_v41, %v10535_v48 }
 0x39b   : > { %8316 = vpow2.f32 %v5829_v18  ;;  %v10597_v45 = vadd.f32 %v7908_v5, %v10535_v48  ;;  %v7454_v60 = vpop.f32.mrb[152].mxu1 }
 0x39c   : > { %v8305_v0 = vpop.eup %8304  ;;  %8318 = vrcp.f32 %v5020_v61  ;;  %v5831_v43 = vmul.f32 -1.442695, %v10594_v27  ;;  %v4860_v37 = vadd.f32 %v7454_v60, %v10462_v20  ;;  %v4693_v11 = vpop.f32.mrb[153].mxu1 }
 0x39d   : > { %v8307_v46 = vpop.eup %8306  ;;  %v5022_v32 = vadd.f32 1.0, %v8305_v0  ;;  %v5830_v29 = vmul.f32 -1.442695, %v10597_v45 }
 0x39e   : > { %v8309_v14 = vpop.eup %8308  ;;  %v5114_v28 = vmul.f32 %v8307_v46, %v10544_v58  ;;  %8320 = vpow2.f32 %v5831_v43  ;;  %v10609_v31 = vadd.f32 %v10535_v48, %v4860_v37 }
 0x39f   : > { %v8311_v24 = vpop.eup %8310  ;;  %v5113_v20 = vmul.f32 %v8309_v14, %v10547_v4  ;;  %8322 = vrcp.f32 %v5022_v32  ;;  %v7457_v36 = vpop.f32.mrb[154].mxu1 }
 0x3a0   : > { %v8313_v19 = vpop.eup %8312  ;;  %v5021_v3 = vadd.f32 1.0, %v8311_v24  ;;  %8324 = vpow2.f32 %v5830_v29  ;;  %v5832_v62 = vmul.f32 -1.442695, %v10609_v31  ;;  %v4702_v58 = vpop.f32.mrb[155].mxu1  ;;  %v5153_v12 = vadd.f32 %v10606_v26, %v5114_v28 }
 0x3a1   : > { %v8315_v25 = vpop.eup %8314  ;;  %v5023_v8 = vadd.f32 1.0, %v8313_v19  ;;  %v4861_v63 = vadd.f32 %v4702_v58, %v10469_v23  ;;  %v5152_v47 = vadd.f32 %v10606_v26, %v5113_v20 }
 0x3a2   : > { %v5115_v56 = vmul.f32 %v8315_v25, %v10556_v13  ;;  %8326 = vrcp.f32 %v5021_v3 }
 0x3a3   : > { %8328 = vrcp.f32 %v5023_v8  ;;  %v10618_v4 = vadd.f32 %v10535_v48, %v4861_v63  ;;  %v7460_v42 = vpop.f32.mrb[18].mxu1  ;;  %7535 = vmatprep.mubr.f32.mxu0 %v5152_v47 }
 0x3a4   : > { %8330 = vpow2.f32 %v5832_v62  ;;  %v7909_v54 = vadd.f32 %v7460_v42, %v10460_v49  ;;  %v4711_v41 = vpop.f32.mrb[19].mxu1  ;;  %7536 = vmatmul.mubr.f32.vlgmr.msra.gmra.mrb[176].mxu0 %v5153_v12  ;;  %v5154_v23 = vadd.f32 %v10606_v26, %v5115_v56 }
 0x3a5   : > { %v8317_v51 = vpop.eup %8316  ;;  %v5833_v30 = vmul.f32 -1.442695, %v10618_v4  ;;  %v7910_v18 = vadd.f32 %v4711_v41, %v10464_v16 }
 0x3a6   : > { %v8319_v13 = vpop.eup %8318  ;;  %v5024_v5 = vadd.f32 1.0, %v8317_v51  ;;  %v10625_v61 = vadd.f32 %v7909_v54, %v10535_v48  ;;  %7538 = vmatprep.mubr.f32.mxu0 %v5154_v23 }
 0x3a7   : > { %v5116_v60 = vmul.f32 %v8319_v13, %v10566_v57  ;;  %8332 = vpow2.f32 %v5833_v30  ;;  %v10629_v49 = vadd.f32 %v7910_v18, %v10535_v48  ;;  %v7463_v0 = vpop.f32.mrb[156].mxu1 }
 0x3a8   : > { %v8321_v43 = vpop.eup %8320  ;;  %8334 = vrcp.f32 %v5024_v5  ;;  %v5835_v37 = vmul.f32 -1.442695, %v10625_v61  ;;  %v4864_v11 = vadd.f32 %v7463_v0, %v10478_v55  ;;  %v4721_v16 = vpop.f32.mrb[157].mxu1 }
 0x3a9   : > { %v8323_v46 = vpop.eup %8322  ;;  %v5026_v32 = vadd.f32 1.0, %v8321_v43  ;;  %v5834_v29 = vmul.f32 -1.442695, %v10629_v49  ;;  %v5155_v14 = vadd.f32 %v10606_v26, %v5116_v60 }
 0x3aa   : > { %v8325_v28 = vpop.eup %8324  ;;  %8336 = vpow2.f32 %v5835_v37  ;;  %v10636_v57 = vadd.f32 %v10535_v48, %v4864_v11  ;;  %v5118_v19 = vmul.f32 %v8323_v46, %v10574_v44 }
 0x3ab   : > { %8338 = vrcp.f32 %v5026_v32  ;;  %v5025_v24 = vadd.f32 1.0, %v8325_v28  ;;  %v7466_v20 = vpop.f32.mrb[158].mxu1  ;;  %7539 = vmatmul.mubr.f32.gmra.mrb[178].mxu0 %v5155_v14 }
 0x3ac   : > { %v8327_v36 = vpop.eup %8326  ;;  %8340 = vpow2.f32 %v5834_v29  ;;  %v5836_v55 = vmul.f32 -1.442695, %v10636_v57  ;;  %v4730_v3 = vpop.f32.mrb[159].mxu1  ;;  %v5157_v41 = vadd.f32 %v10606_v26, %v5118_v19 }
 0x3ad   : > { %v8329_v62 = vpop.eup %8328  ;;  %v5117_v58 = vmul.f32 %v8327_v36, %v10577_v10  ;;  %8342 = vrcp.f32 %v5025_v24  ;;  %v4865_v25 = vadd.f32 %v4730_v3, %v10485_v17 }
 0x3ae   : > { %v8331_v8 = vpop.eup %8330  ;;  %v5119_v63 = vmul.f32 %v8329_v62, %v10583_v33  ;;  %8344 = vpow2.f32 %v5836_v55 }
 0x3af   : > { %v5027_v47 = vadd.f32 1.0, %v8331_v8  ;;  %v10644_v12 = vadd.f32 %v10535_v48, %v4865_v25  ;;  %v7469_v56 = vpop.f32.mrb[24].mxu1  ;;  %v5156_v44 = vadd.f32 %v10606_v26, %v5117_v58 }
 0x3b0   : > { %v7911_v42 = vadd.f32 %v7469_v56, %v10476_v15  ;;  %v4739_v54 = vpop.f32.mrb[25].mxu1  ;;  %v5158_v10 = vadd.f32 %v10606_v26, %v5119_v63 }
 0x3b1   : > { %v8333_v23 = vpop.eup %8332  ;;  %8346 = vrcp.f32 %v5027_v47  ;;  %v5837_v17 = vmul.f32 -1.442695, %v10644_v12  ;;  %7541 = vmatprep.mubr.f32.mxu0 %v5156_v44  ;;  %v7912_v33 = vadd.f32 %v4739_v54, %v10480_v59 }
 0x3b2   : > { %v8335_v51 = vpop.eup %8334  ;;  %v5028_v30 = vadd.f32 1.0, %v8333_v23  ;;  %v10653_v18 = vadd.f32 %v7911_v42, %v10535_v48  ;;  %7542 = vmatmul.mubr.f32.gmra.mrb[180].mxu0 %v5157_v41 }
 0x3b3   : > { %v5120_v15 = vmul.f32 %v8335_v51, %v10588_v52  ;;  %8348 = vpow2.f32 %v5837_v17  ;;  %v10657_v13 = vadd.f32 %v7912_v33, %v10535_v48  ;;  %7544 = vmatprep.mubr.f32.mxu0 %v5158_v10  ;;  %v7472_v5 = vpop.f32.mrb[160].mxu1 }
 0x3b4   : > { %v8337_v60 = vpop.eup %8336  ;;  %8350 = vrcp.f32 %v5028_v30  ;;  %v5839_v0 = vmul.f32 -1.442695, %v10653_v18  ;;  %v4868_v59 = vadd.f32 %v7472_v5, %v10494_v40  ;;  %v4749_v43 = vpop.f32.mrb[161].mxu1 }
 0x3b5   : > { %v8339_v37 = vpop.eup %8338  ;;  %v5030_v11 = vadd.f32 1.0, %v8337_v60  ;;  %v5838_v16 = vmul.f32 -1.442695, %v10657_v13  ;;  %v5159_v46 = vadd.f32 %v10606_v26, %v5120_v15 }
 0x3b6   : > { %v8341_v52 = vpop.eup %8340  ;;  %8352 = vpow2.f32 %v5839_v0  ;;  %v10664_v32 = vadd.f32 %v10535_v48, %v4868_v59  ;;  %v5122_v14 = vmul.f32 %v8339_v37, %v10594_v27 }
 0x3b7   : > { %v8343_v29 = vpop.eup %8342  ;;  %8354 = vrcp.f32 %v5030_v11  ;;  %v5029_v28 = vadd.f32 1.0, %v8341_v52  ;;  %v7475_v24 = vpop.f32.mrb[162].mxu1  ;;  %7545 = vmatmul.mubr.f32.gmra.mrb[182].mxu0 %v5159_v46 }
 0x3b8   : > { %v8345_v40 = vpop.eup %8344  ;;  %v5121_v20 = vmul.f32 %v8343_v29, %v10597_v45  ;;  %8356 = vpow2.f32 %v5838_v16  ;;  %v5840_v36 = vmul.f32 -1.442695, %v10664_v32  ;;  %v4758_v19 = vpop.f32.mrb[163].mxu1  ;;  %v5161_v8 = vadd.f32 %v10606_v26, %v5122_v14 }
 0x3b9   : > { %8358 = vrcp.f32 %v5029_v28  ;;  %v5031_v55 = vadd.f32 1.0, %v8345_v40  ;;  %v4869_v3 = vadd.f32 %v4758_v19, %v10501_v21 }
 0x3ba   : > { %8360 = vpow2.f32 %v5840_v36  ;;  %v5160_v62 = vadd.f32 %v10606_v26, %v5121_v20 }
 0x3bb   : > { %v8347_v58 = vpop.eup %8346  ;;  %8362 = vrcp.f32 %v5031_v55  ;;  %v10672_v27 = vadd.f32 %v10535_v48, %v4869_v3  ;;  %v7478_v25 = vpop.f32.mrb[30].mxu1 }
 0x3bc   : > { %v5123_v45 = vmul.f32 %v8347_v58, %v10609_v31  ;;  %v7913_v63 = vadd.f32 %v7478_v25, %v10492_v38  ;;  %7547 = vmatprep.mubr.f32.mxu0 %v5160_v62  ;;  %v4767_v47 = vpop.f32.mrb[31].mxu1 }
 0x3bd   : > { %v8349_v56 = vpop.eup %8348  ;;  %v5841_v21 = vmul.f32 -1.442695, %v10672_v27  ;;  %v7914_v44 = vadd.f32 %v4767_v47, %v10496_v53  ;;  %7548 = vmatmul.mubr.f32.gmra.mrb[184].mxu0 %v5161_v8 }
 0x3be   : > { %v8351_v42 = vpop.eup %8350  ;;  %v5032_v54 = vadd.f32 1.0, %v8349_v56  ;;  %v10680_v41 = vadd.f32 %v7913_v63, %v10535_v48  ;;  %v5162_v10 = vadd.f32 %v10606_v26, %v5123_v45 }
 0x3bf   : > { %v5124_v23 = vmul.f32 %v8351_v42, %v10618_v4  ;;  %8364 = vpow2.f32 %v5841_v21  ;;  %v10685_v38 = vadd.f32 %v7914_v44, %v10535_v48  ;;  %v7481_v31 = vpop.f32.mrb[164].mxu1 }
 0x3c0   : > { %v8353_v17 = vpop.eup %8352  ;;  %8366 = vrcp.f32 %v5032_v54  ;;  %v5843_v33 = vmul.f32 -1.442695, %v10680_v41  ;;  %7550 = vmatprep.mubr.f32.mxu0 %v5162_v10  ;;  %v4872_v53 = vadd.f32 %v7481_v31, %v10510_v39  ;;  %v4777_v51 = vpop.f32.mrb[165].mxu1 }
 0x3c1   : > { %v8355_v30 = vpop.eup %8354  ;;  %v5034_v15 = vadd.f32 1.0, %v8353_v17  ;;  %v5842_v5 = vmul.f32 -1.442695, %v10685_v38  ;;  %v5163_v60 = vadd.f32 %v10606_v26, %v5124_v23 }
 0x3c2   : > { %v8357_v4 = vpop.eup %8356  ;;  %8368 = vpow2.f32 %v5843_v33  ;;  %v10692_v0 = vadd.f32 %v10535_v48, %v4872_v53  ;;  %v5126_v43 = vmul.f32 %v8355_v30, %v10625_v61 }
 0x3c3   : > { %v8359_v59 = vpop.eup %8358  ;;  %8370 = vrcp.f32 %v5034_v15  ;;  %v5033_v37 = vadd.f32 1.0, %v8357_v4  ;;  %v7484_v11 = vpop.f32.mrb[166].mxu1  ;;  %7551 = vmatmul.mubr.f32.gmra.mrb[186].mxu0 %v5163_v60 }
 0x3c4   : > { %v8361_v39 = vpop.eup %8360  ;;  %v5125_v16 = vmul.f32 %v8359_v59, %v10629_v49  ;;  %8372 = vpow2.f32 %v5842_v5  ;;  %v5844_v46 = vmul.f32 -1.442695, %v10692_v0  ;;  %v4786_v52 = vpop.f32.mrb[167].mxu1  ;;  %v5165_v49 = vadd.f32 %v10606_v26, %v5126_v43 }
 0x3c5   : > { %v8363_v29 = vpop.eup %8362  ;;  %8374 = vrcp.f32 %v5033_v37  ;;  %v5035_v14 = vadd.f32 1.0, %v8361_v39  ;;  %v4873_v28 = vadd.f32 %v4786_v52, %v10517_v9 }
 0x3c6   : > { %v5127_v24 = vmul.f32 %v8363_v29, %v10636_v57  ;;  %8376 = vpow2.f32 %v5844_v46  ;;  %v5164_v61 = vadd.f32 %v10606_v26, %v5125_v16 }
 0x3c7   : > { %8378 = vrcp.f32 %v5035_v14  ;;  %v10701_v40 = vadd.f32 %v10535_v48, %v4873_v28  ;;  %v7487_v20 = vpop.f32.mrb[36].mxu1 }
 0x3c8   : > { %v7915_v36 = vadd.f32 %v7487_v20, %v10508_v50  ;;  %7553 = vmatprep.mubr.f32.mxu0 %v5164_v61  ;;  %v4795_v19 = vpop.f32.mrb[37].mxu1  ;;  %v5166_v55 = vadd.f32 %v10606_v26, %v5127_v24 }
 0x3c9   : > { %v8365_v3 = vpop.eup %8364  ;;  %v5845_v9 = vmul.f32 -1.442695, %v10701_v40  ;;  %v7916_v57 = vadd.f32 %v4795_v19, %v10512_v7  ;;  %7554 = vmatmul.mubr.f32.gmra.mrb[188].mxu0 %v5165_v49 }
 0x3ca   : > { %v8367_v62 = vpop.eup %8366  ;;  %v5036_v58 = vadd.f32 1.0, %v8365_v3  ;;  %v10709_v25 = vadd.f32 %v7915_v36, %v10535_v48  ;;  %7556 = vmatprep.mubr.f32.mxu0 %v5166_v55 }
 0x3cb   : > { %v5128_v8 = vmul.f32 %v8367_v62, %v10644_v12  ;;  %8380 = vpow2.f32 %v5845_v9  ;;  %v10713_v50 = vadd.f32 %v7916_v57, %v10535_v48  ;;  %v7490_v45 = vpop.f32.mrb[168].mxu1 }
 0x3cc   : > { %v8369_v63 = vpop.eup %8368  ;;  %8382 = vrcp.f32 %v5036_v58  ;;  %v5847_v47 = vmul.f32 -1.442695, %v10709_v25  ;;  %v4876_v7 = vadd.f32 %v7490_v45, %v10526_v2  ;;  %v4805_v56 = vpop.f32.mrb[169].mxu1 }
 0x3cd   : > { %v8371_v21 = vpop.eup %8370  ;;  %v5038_v44 = vadd.f32 1.0, %v8369_v63  ;;  %v5846_v42 = vmul.f32 -1.442695, %v10713_v50  ;;  %v5167_v54 = vadd.f32 %v10606_v26, %v5128_v8 }
 0x3ce   : > { %v8373_v10 = vpop.eup %8372  ;;  %8384 = vpow2.f32 %v5847_v47  ;;  %v10720_v12 = vadd.f32 %v10535_v48, %v4876_v7  ;;  %v5130_v31 = vmul.f32 %v8371_v21, %v10653_v18 }
 0x3cf   : > { %v8375_v23 = vpop.eup %8374  ;;  %8386 = vrcp.f32 %v5038_v44  ;;  %v5037_v17 = vadd.f32 1.0, %v8373_v10  ;;  %v7493_v33 = vpop.f32.mrb[170].mxu1  ;;  %7557 = vmatmul.mubr.f32.gmra.mrb[190].mxu0 %v5167_v54 }
 0x3d0   : > { %v8377_v2 = vpop.eup %8376  ;;  %v5129_v53 = vmul.f32 %v8375_v23, %v10657_v13  ;;  %8388 = vpow2.f32 %v5846_v42  ;;  %v5848_v51 = vmul.f32 -1.442695, %v10720_v12  ;;  %v4814_v30 = vpop.f32.mrb[171].mxu1  ;;  %v5169_v13 = vadd.f32 %v10606_v26, %v5130_v31 }
 0x3d1   : > { %v8379_v15 = vpop.eup %8378  ;;  %8390 = vrcp.f32 %v5037_v17  ;;  %v5039_v5 = vadd.f32 1.0, %v8377_v2  ;;  %v4877_v60 = vadd.f32 %v4814_v30, %v10539_v1 }
 0x3d2   : > { %v5131_v4 = vmul.f32 %v8379_v15, %v10664_v32  ;;  %8392 = vpow2.f32 %v5848_v51  ;;  %v5168_v18 = vadd.f32 %v10606_v26, %v5129_v53 }
 0x3d3   : > { %8394 = vrcp.f32 %v5039_v5  ;;  %v10729_v59 = vadd.f32 %v10535_v48, %v4877_v60  ;;  %v7496_v43 = vpop.f32.mrb[42].mxu1 }
 0x3d4   : > { %v7917_v37 = vadd.f32 %v7496_v43, %v10524_v34  ;;  %7559 = vmatprep.mubr.f32.mxu0 %v5168_v18  ;;  %v4823_v11 = vpop.f32.mrb[43].mxu1  ;;  %v5170_v39 = vadd.f32 %v10606_v26, %v5131_v4 }
 0x3d5   : > { %v8381_v16 = vpop.eup %8380  ;;  %v5849_v1 = vmul.f32 -1.442695, %v10729_v59  ;;  %v7918_v32 = vadd.f32 %v4823_v11, %v10528_v22  ;;  %7560 = vmatmul.mubr.f32.gmra.mrb[192].mxu0 %v5169_v13 }
 0x3d6   : > { %v8383_v46 = vpop.eup %8382  ;;  %v5040_v52 = vadd.f32 1.0, %v8381_v16  ;;  %v10737_v29 = vadd.f32 %v7917_v37, %v10535_v48  ;;  %7562 = vmatprep.mubr.f32.mxu0 %v5170_v39 }
 0x3d7   : > { %v5132_v14 = vmul.f32 %v8383_v46, %v10672_v27  ;;  %8396 = vpow2.f32 %v5849_v1  ;;  %v10741_v34 = vadd.f32 %v7918_v32, %v10535_v48  ;;  %v7499_v28 = vpop.f32.mrb[172].mxu1 }
 0x3d8   : > { %v8385_v24 = vpop.eup %8384  ;;  %8398 = vrcp.f32 %v5040_v52  ;;  %v5851_v61 = vmul.f32 -1.442695, %v10737_v29  ;;  %v4880_v22 = vadd.f32 %v7499_v28, %v10559_v6  ;;  %v4833_v20 = vpop.f32.mrb[173].mxu1 }
 0x3d9   : > { %v8387_v49 = vpop.eup %8386  ;;  %v5042_v36 = vadd.f32 1.0, %v8385_v24  ;;  %v5850_v19 = vmul.f32 -1.442695, %v10741_v34  ;;  %v5171_v55 = vadd.f32 %v10606_v26, %v5132_v14 }
 0x3da   : > { %v8389_v3 = vpop.eup %8388  ;;  %8400 = vpow2.f32 %v5851_v61  ;;  %v10748_v27 = vadd.f32 %v10535_v48, %v4880_v22  ;;  %v5134_v57 = vmul.f32 %v8387_v49, %v10680_v41  ;;  %v8430_v22 = vld [vmem:[%s8555_s26 + $0x8] sm:$0xff]  ;;  %v8431_v49 = vld [vmem:[%s8555_s26] sm:$0xff] }
 0x3db   : > { %v8391_v9 = vpop.eup %8390  ;;  %8402 = vrcp.f32 %v5042_v36  ;;  %v5041_v62 = vadd.f32 1.0, %v8389_v3  ;;  %v7502_v58 = vpop.f32.mrb[174].mxu1  ;;  %7563 = vmatmul.mubr.f32.gmra.mrb[194].mxu0 %v5171_v55 }
 0x3dc   : > { %v8393_v6 = vpop.eup %8392  ;;  %v5133_v8 = vmul.f32 %v8391_v9, %v10685_v38  ;;  %8404 = vpow2.f32 %v5850_v19  ;;  %v5852_v45 = vmul.f32 -1.442695, %v10748_v27  ;;  %v4842_v63 = vpop.f32.mrb[175].mxu1  ;;  %v5173_v42 = vadd.f32 %v10606_v26, %v5134_v57  ;;  %v8433_v57 = vld [vmem:[%s8555_s26 + $0x10] sm:$0xff] }
 0x3dd   : > { %v8395_v47 = vpop.eup %8394  ;;  %8406 = vrcp.f32 %v5041_v62  ;;  %v5043_v7 = vadd.f32 1.0, %v8393_v6  ;;  %v4881_v56 = vadd.f32 %v4842_v63, %v10569_v35  ;;  %v8434_v63 = vld [vmem:[%s8555_s26 + $0x28] sm:$0xff] }
 0x3de   : > { %v5135_v21 = vmul.f32 %v8395_v47, %v10692_v0  ;;  %8408 = vpow2.f32 %v5852_v45  ;;  %v5172_v41 = vadd.f32 %v10606_v26, %v5133_v8 }
 0x3df   : > { %8410 = vrcp.f32 %v5043_v7  ;;  %v4920_v44 = vadd.f32 %v10535_v48, %v4881_v56  ;;  %v8435_v7 = vld [vmem:[%s8555_s26 + $0x20] sm:$0xff] }
 0x3e0   : > { %7565 = vmatprep.mubr.f32.mxu0 %v5172_v41  ;;  %v5174_v38 = vadd.f32 %v10606_v26, %v5135_v21 }
 0x3e1   : > { %v8397_v54 = vpop.eup %8396  ;;  %v5853_v10 = vmul.f32 -1.442695, %v4920_v44  ;;  %7566 = vmatmul.mubr.f32.gmra.mrb[196].mxu0 %v5173_v42 }
 0x3e2   : > { %v8399_v23 = vpop.eup %8398  ;;  %v5044_v31 = vadd.f32 1.0, %v8397_v54  ;;  %7568 = vmatprep.mubr.f32.mxu0 %v5174_v38  ;;  %v8436_v38 = vld [vmem:[%s8555_s26 + $0x38] sm:$0xff] }
 0x3e3   : > { %v5136_v35 = vmul.f32 %v8399_v23, %v10701_v40  ;;  %8412 = vpow2.f32 %v5853_v10  ;;  %v8437_v10 = vld [vmem:[%s8555_s26 + $0x30] sm:$0xff] }
 0x3e4   : > { %v8401_v0 = vpop.eup %8400  ;;  %8414 = vrcp.f32 %v5044_v31 }
 0x3e5   : > { %v8403_v17 = vpop.eup %8402  ;;  %v5046_v33 = vadd.f32 1.0, %v8401_v0  ;;  %v5175_v48 = vadd.f32 %v10606_v26, %v5136_v35 }
 0x3e6   : > { %v8405_v2 = vpop.eup %8404  ;;  %v5138_v51 = vmul.f32 %v8403_v17, %v10709_v25 }
 0x3e7   : > { %v8407_v53 = vpop.eup %8406  ;;  %8416 = vrcp.f32 %v5046_v33  ;;  %v5045_v30 = vadd.f32 1.0, %v8405_v2  ;;  %7569 = vmatmul.mubr.f32.gmra.mrb[198].mxu0 %v5175_v48  ;;  %v8438_v33 = vld [vmem:[%s8555_s26 + $0x48] sm:$0xff]  ;;  %v8439_v2 = vld [vmem:[%s8555_s26 + $0x40] sm:$0xff] }
 0x3e8   : > { %v8409_v15 = vpop.eup %8408  ;;  %v5137_v5 = vmul.f32 %v8407_v53, %v10713_v50  ;;  %v5177_v43 = vadd.f32 %v10606_v26, %v5138_v51 }
 0x3e9   : > { %v8411_v60 = vpop.eup %8410  ;;  %8418 = vrcp.f32 %v5045_v30  ;;  %v5047_v40 = vadd.f32 1.0, %v8409_v15 }
 0x3ea   : > { %v5139_v4 = vmul.f32 %v8411_v60, %v10720_v12  ;;  %v5176_v18 = vadd.f32 %v10606_v26, %v5137_v5  ;;  %v8440_v60 = vld [vmem:[%s8555_s26 + $0x58] sm:$0xff] }
 0x3eb   : > { %8420 = vrcp.f32 %v5047_v40 }
 0x3ec   : > { %7571 = vmatprep.mubr.f32.mxu0 %v5176_v18  ;;  %v5178_v13 = vadd.f32 %v10606_v26, %v5139_v4  ;;  %v8441_v4 = vld [vmem:[%s8555_s26 + $0x50] sm:$0xff] }
 0x3ed   : > { %v8413_v25 = vpop.eup %8412  ;;  %7572 = vmatmul.mubr.f32.gmra.mrb[200].mxu0 %v5177_v43 }
 0x3ee   : > { %v8415_v37 = vpop.eup %8414  ;;  %v5048_v11 = vadd.f32 1.0, %v8413_v25  ;;  %7574 = vmatprep.mubr.f32.mxu0 %v5178_v13 }
 0x3ef   : > { %v5140_v50 = vmul.f32 %v8415_v37, %v10729_v59 }
 0x3f0   : > { %8422 = vrcp.f32 %v5048_v11  ;;  %v8442_v11 = vld [vmem:[%s8555_s26 + $0x68] sm:$0xff] }
 0x3f1   : > { %v8417_v39 = vpop.eup %8416  ;;  %v5179_v16 = vadd.f32 %v10606_v26, %v5140_v50 }
 0x3f2   : > { %v5142_v1 = vmul.f32 %v8417_v39, %v10737_v29  ;;  %v8443_v39 = vld [vmem:[%s8555_s26 + $0x60] sm:$0xff] }
 0x3f3   : > { %v8419_v12 = vpop.eup %8418  ;;  %7575 = vmatmul.mubr.f32.gmra.mrb[202].mxu0 %v5179_v16 }
 0x3f4   : > { %v5141_v32 = vmul.f32 %v8419_v12, %v10741_v34  ;;  %v5181_v59 = vadd.f32 %v10606_v26, %v5142_v1  ;;  %v10779_v34 = vld [vmem:[%s10929_s10] ss:$0 sm:$0xff] }
 0x3f5   : > { %v8421_v46 = vpop.eup %8420  ;;  %v5433_v20 = vmul.f32 %v8430_v22, %v10779_v34  ;;  %v5432_v36 = vmul.f32 %v8431_v49, %v10779_v34  ;;  %v5434_v62 = vmul.f32 %v8433_v57, %v10779_v34  ;;  %v5437_v47 = vmul.f32 %v8434_v63, %v10779_v34 }
 0x3f6   : > { %v5143_v52 = vmul.f32 %v8421_v46, %v10748_v27  ;;  %v5180_v14 = vadd.f32 %v10606_v26, %v5141_v32  ;;  %v8432_v27 = vld [vmem:[%s8555_s26 + $0x18] sm:$0xff]  ;;  %v5436_v56 = vmul.f32 %v8435_v7, %v10779_v34  ;;  %v5439_v54 = vmul.f32 %v8436_v38, %v10779_v34 }
 0x3f7   : > { %v5435_v9 = vmul.f32 %v8432_v27, %v10779_v34  ;;  %v5438_v23 = vmul.f32 %v8437_v10, %v10779_v34  ;;  %v5441_v48 = vmul.f32 %v8438_v33, %v10779_v34  ;;  %v5440_v53 = vmul.f32 %v8439_v2, %v10779_v34 }
 0x3f8   : > { %7577 = vmatprep.mubr.f32.mxu0 %v5180_v14  ;;  %v5182_v28 = vadd.f32 %v10606_v26, %v5143_v52  ;;  %v5443_v40 = vmul.f32 %v8440_v60, %v10779_v34  ;;  %v5442_v18 = vmul.f32 %v8441_v4, %v10779_v34  ;;  %v5445_v50 = vmul.f32 %v8442_v11, %v10779_v34  ;;  %v8444_v52 = vld [vmem:[%s8555_s26 + $0x78] sm:$0xff] }
 0x3f9   : > { %7578 = vmatmul.mubr.f32.gmra.mrb[204].mxu0 %v5181_v59  ;;  %v5444_v16 = vmul.f32 %v8443_v39, %v10779_v34  ;;  %v5447_v14 = vmul.f32 %v8444_v52, %v10779_v34  ;;  %v8445_v59 = vld [vmem:[%s8555_s26 + $0x70] sm:$0xff] }
 0x3fa   : > { %v8423_v24 = vpop.eup %8422  ;;  %7580 = vmatprep.mubr.f32.mxu0 %v5182_v28  ;;  %v5446_v28 = vmul.f32 %v8445_v59, %v10779_v34 }
 0x3fb   : > { %v5144_v29 = vmul.f32 %v8423_v24, %v4920_v44 }
 0x3fd   : > { %v5183_v61 = vadd.f32 %v10606_v26, %v5144_v29 }
 0x3ff   : > { %7581 = vmatmul.mubr.f32.gmra.mrb[206].mxu0 %v5183_v61 }
 0x477   : > { %v7537_v26 = vpop.f32.mrb[176].mxu0 }
 0x478   : > { %v5465_v19 = vadd.f32 %v7537_v26, %v5433_v20  ;;  %v5266_v55 = vpop.f32.mrb[177].mxu0  ;;  %v8446_v20 = vld [vmem:[%s8555_s26 + $0x88] sm:$0xff] }
 0x479   : > { %v5464_v3 = vadd.f32 %v5432_v36, %v5266_v55  ;;  %v5449_v49 = vmul.f32 %v8446_v20, %v10779_v34  ;;  %v8447_v36 = vld [vmem:[%s8555_s26 + $0x80] sm:$0xff] }
 0x47a   : > { %5497 = vst.msk [vmem:[%s10790_s14 + $0x8] sm:$0xff] %vm729_vm1, %v5465_v19  ;;  %v5448_v26 = vmul.f32 %v8447_v36, %v10779_v34 }
 0x47b   : > { %5496 = vst.msk [vmem:[%s10790_s14] sm:$0xff] %vm729_vm1, %v5464_v3 }
 0x47e   : > { %v7540_v58 = vpop.f32.mrb[178].mxu0 }
 0x47f   : > { %v5467_v6 = vadd.f32 %v7540_v58, %v5435_v9  ;;  %v5276_v8 = vpop.f32.mrb[179].mxu0  ;;  %v8448_v9 = vld [vmem:[%s8555_s26 + $0x98] sm:$0xff] }
 0x480   : > { %v5466_v45 = vadd.f32 %v5434_v62, %v5276_v8  ;;  %v5451_v57 = vmul.f32 %v8448_v9, %v10779_v34  ;;  %v8449_v62 = vld [vmem:[%s8555_s26 + $0x90] sm:$0xff] }
 0x481   : > { %5499 = vst.msk [vmem:[%s10790_s14 + $0x18] sm:$0xff] %vm729_vm1, %v5467_v6  ;;  %v5450_v58 = vmul.f32 %v8449_v62, %v10779_v34 }
 0x482   : > { %5498 = vst.msk [vmem:[%s10790_s14 + $0x10] sm:$0xff] %vm729_vm1, %v5466_v45 }
 0x485   : > { %v7543_v21 = vpop.f32.mrb[180].mxu0 }
 0x486   : > { %v5469_v41 = vadd.f32 %v7543_v21, %v5437_v47  ;;  %v5286_v44 = vpop.f32.mrb[181].mxu0  ;;  %v8450_v47 = vld [vmem:[%s8555_s26 + $0xa8] sm:$0xff] }
 0x487   : > { %v5468_v42 = vadd.f32 %v5436_v56, %v5286_v44  ;;  %v5453_v7 = vmul.f32 %v8450_v47, %v10779_v34  ;;  %v8451_v56 = vld [vmem:[%s8555_s26 + $0xa0] sm:$0xff] }
 0x488   : > { %5501 = vst.msk [vmem:[%s10790_s14 + $0x28] sm:$0xff] %vm729_vm1, %v5469_v41  ;;  %v5452_v21 = vmul.f32 %v8451_v56, %v10779_v34 }
 0x489   : > { %5500 = vst.msk [vmem:[%s10790_s14 + $0x20] sm:$0xff] %vm729_vm1, %v5468_v42 }
 0x48a   : > { %v7546_v31 = vpop.f32.mrb[182].mxu0 }
 0x48b   : > { %v5471_v35 = vadd.f32 %v7546_v31, %v5439_v54  ;;  %v5296_v0 = vpop.f32.mrb[183].mxu0  ;;  %v8452_v54 = vld [vmem:[%s8555_s26 + $0xb8] sm:$0xff] }
 0x48c   : > { %v5470_v17 = vadd.f32 %v5438_v23, %v5296_v0  ;;  %v5455_v10 = vmul.f32 %v8452_v54, %v10779_v34  ;;  %v8453_v23 = vld [vmem:[%s8555_s26 + $0xb0] sm:$0xff] }
 0x48d   : > { %5503 = vst.msk [vmem:[%s10790_s14 + $0x38] sm:$0xff] %vm729_vm1, %v5471_v35  ;;  %v5454_v31 = vmul.f32 %v8453_v23, %v10779_v34 }
 0x48e   : > { %5502 = vst.msk [vmem:[%s10790_s14 + $0x30] sm:$0xff] %vm729_vm1, %v5470_v17 }
 0x490   : > { %v7549_v51 = vpop.f32.mrb[184].mxu0 }
 0x491   : > { %v5473_v30 = vadd.f32 %v7549_v51, %v5441_v48  ;;  %v5306_v15 = vpop.f32.mrb[185].mxu0  ;;  %v8454_v48 = vld [vmem:[%s8555_s26 + $0xc8] sm:$0xff] }
 0x492   : > { %v5472_v5 = vadd.f32 %v5440_v53, %v5306_v15  ;;  %v5457_v2 = vmul.f32 %v8454_v48, %v10779_v34  ;;  %v8455_v53 = vld [vmem:[%s8555_s26 + $0xc0] sm:$0xff] }
 0x493   : > { %5505 = vst.msk [vmem:[%s10790_s14 + $0x48] sm:$0xff] %vm729_vm1, %v5473_v30  ;;  %v5456_v51 = vmul.f32 %v8455_v53, %v10779_v34 }
 0x494   : > { %5504 = vst.msk [vmem:[%s10790_s14 + $0x40] sm:$0xff] %vm729_vm1, %v5472_v5 }
 0x496   : > { %v7552_v43 = vpop.f32.mrb[186].mxu0 }
 0x497   : > { %v5475_v13 = vadd.f32 %v7552_v43, %v5443_v40  ;;  %v5316_v25 = vpop.f32.mrb[187].mxu0  ;;  %v8456_v40 = vld [vmem:[%s8555_s26 + $0xd8] sm:$0xff] }
 0x498   : > { %v5474_v37 = vadd.f32 %v5442_v18, %v5316_v25  ;;  %v5459_v4 = vmul.f32 %v8456_v40, %v10779_v34  ;;  %v8457_v18 = vld [vmem:[%s8555_s26 + $0xd0] sm:$0xff] }
 0x499   : > { %5507 = vst.msk [vmem:[%s10790_s14 + $0x58] sm:$0xff] %vm729_vm1, %v5475_v13  ;;  %v5458_v43 = vmul.f32 %v8457_v18, %v10779_v34 }
 0x49a   : > { %5506 = vst.msk [vmem:[%s10790_s14 + $0x50] sm:$0xff] %vm729_vm1, %v5474_v37 }
 0x49c   : > { %v7555_v12 = vpop.f32.mrb[188].mxu0 }
 0x49d   : > { %v5477_v1 = vadd.f32 %v7555_v12, %v5445_v50  ;;  %v5326_v32 = vpop.f32.mrb[189].mxu0  ;;  %v8458_v50 = vld [vmem:[%s8555_s26 + $0xe8] sm:$0xff] }
 0x49e   : > { %v5476_v46 = vadd.f32 %v5444_v16, %v5326_v32  ;;  %v5461_v39 = vmul.f32 %v8458_v50, %v10779_v34  ;;  %v8459_v16 = vld [vmem:[%s8555_s26 + $0xe0] sm:$0xff] }
 0x49f   : > { %5509 = vst.msk [vmem:[%s10790_s14 + $0x68] sm:$0xff] %vm729_vm1, %v5477_v1  ;;  %v5460_v12 = vmul.f32 %v8459_v16, %v10779_v34 }
 0x4a0   : > { %5508 = vst.msk [vmem:[%s10790_s14 + $0x60] sm:$0xff] %vm729_vm1, %v5476_v46 }
 0x4a2   : > { %v7558_v24 = vpop.f32.mrb[190].mxu0 }
 0x4a3   : > { %v5479_v29 = vadd.f32 %v7558_v24, %v5447_v14  ;;  %v5336_v61 = vpop.f32.mrb[191].mxu0  ;;  %v8460_v14 = vld [vmem:[%s8555_s26 + $0xf8] sm:$0xff] }
 0x4a4   : > { %v5478_v22 = vadd.f32 %v5446_v28, %v5336_v61  ;;  %v5463_v59 = vmul.f32 %v8460_v14, %v10779_v34  ;;  %v8461_v28 = vld [vmem:[%s8555_s26 + $0xf0] sm:$0xff] }
 0x4a5   : > { %5511 = vst.msk [vmem:[%s10790_s14 + $0x78] sm:$0xff] %vm729_vm1, %v5479_v29  ;;  %v5462_v24 = vmul.f32 %v8461_v28, %v10779_v34 }
 0x4a6   : > { %5510 = vst.msk [vmem:[%s10790_s14 + $0x70] sm:$0xff] %vm729_vm1, %v5478_v22 }
 0x4a8   : > { %v7561_v19 = vpop.f32.mrb[192].mxu0 }
 0x4a9   : > { %v5481_v55 = vadd.f32 %v7561_v19, %v5449_v49  ;;  %v5346_v3 = vpop.f32.mrb[193].mxu0 }
 0x4aa   : > { %v5480_v27 = vadd.f32 %v5448_v26, %v5346_v3 }
 0x4ab   : > { %5513 = vst.msk [vmem:[%s10790_s14 + $0x88] sm:$0xff] %vm729_vm1, %v5481_v55 }
 0x4ac   : > { %5512 = vst.msk [vmem:[%s10790_s14 + $0x80] sm:$0xff] %vm729_vm1, %v5480_v27 }
 0x4ae   : > { %v7564_v6 = vpop.f32.mrb[194].mxu0 }
 0x4af   : > { %v5483_v8 = vadd.f32 %v7564_v6, %v5451_v57  ;;  %v5356_v45 = vpop.f32.mrb[195].mxu0 }
 0x4b0   : > { %v5482_v63 = vadd.f32 %v5450_v58, %v5356_v45 }
 0x4b1   : > { %5515 = vst.msk [vmem:[%s10790_s14 + $0x98] sm:$0xff] %vm729_vm1, %v5483_v8 }
 0x4b2   : > { %5514 = vst.msk [vmem:[%s10790_s14 + $0x90] sm:$0xff] %vm729_vm1, %v5482_v63 }
 0x4b4   : > { %v7567_v41 = vpop.f32.mrb[196].mxu0 }
 0x4b5   : > { %v5485_v44 = vadd.f32 %v7567_v41, %v5453_v7  ;;  %v5366_v42 = vpop.f32.mrb[197].mxu0 }
 0x4b6   : > { %v5484_v38 = vadd.f32 %v5452_v21, %v5366_v42 }
 0x4b7   : > { %5517 = vst.msk [vmem:[%s10790_s14 + $0xa8] sm:$0xff] %vm729_vm1, %v5485_v44 }
 0x4b8   : > { %5516 = vst.msk [vmem:[%s10790_s14 + $0xa0] sm:$0xff] %vm729_vm1, %v5484_v38 }
 0x4ba   : > { %v7570_v35 = vpop.f32.mrb[198].mxu0 }
 0x4bb   : > { %v5487_v0 = vadd.f32 %v7570_v35, %v5455_v10  ;;  %v5376_v17 = vpop.f32.mrb[199].mxu0 }
 0x4bc   : > { %v5486_v33 = vadd.f32 %v5454_v31, %v5376_v17 }
 0x4bd   : > { %5519 = vst.msk [vmem:[%s10790_s14 + $0xb8] sm:$0xff] %vm729_vm1, %v5487_v0 }
 0x4be   : > { %5518 = vst.msk [vmem:[%s10790_s14 + $0xb0] sm:$0xff] %vm729_vm1, %v5486_v33 }
 0x4c0   : > { %v7573_v30 = vpop.f32.mrb[200].mxu0 }
 0x4c1   : > { %v5489_v15 = vadd.f32 %v7573_v30, %v5457_v2  ;;  %v5386_v5 = vpop.f32.mrb[201].mxu0 }
 0x4c2   : > { %v5488_v60 = vadd.f32 %v5456_v51, %v5386_v5 }
 0x4c3   : > { %5521 = vst.msk [vmem:[%s10790_s14 + $0xc8] sm:$0xff] %vm729_vm1, %v5489_v15 }
 0x4c4   : > { %5520 = vst.msk [vmem:[%s10790_s14 + $0xc0] sm:$0xff] %vm729_vm1, %v5488_v60 }
 0x4c6   : > { %v7576_v13 = vpop.f32.mrb[202].mxu0 }
 0x4c7   : > { %v5491_v25 = vadd.f32 %v7576_v13, %v5459_v4  ;;  %v5396_v37 = vpop.f32.mrb[203].mxu0 }
 0x4c8   : > { %v5490_v11 = vadd.f32 %v5458_v43, %v5396_v37 }
 0x4c9   : > { %5523 = vst.msk [vmem:[%s10790_s14 + $0xd8] sm:$0xff] %vm729_vm1, %v5491_v25 }
 0x4ca   : > { %5522 = vst.msk [vmem:[%s10790_s14 + $0xd0] sm:$0xff] %vm729_vm1, %v5490_v11 }
 0x4cc   : > { %v7579_v1 = vpop.f32.mrb[204].mxu0 }
 0x4cd   : > { %v5493_v32 = vadd.f32 %v7579_v1, %v5461_v39  ;;  %v5406_v46 = vpop.f32.mrb[205].mxu0 }
 0x4ce   : > { %v5492_v52 = vadd.f32 %v5460_v12, %v5406_v46 }
 0x4cf   : > { %5525 = vst.msk [vmem:[%s10790_s14 + $0xe8] sm:$0xff] %vm729_vm1, %v5493_v32 }
 0x4d0   : > { %5524 = vst.msk [vmem:[%s10790_s14 + $0xe0] sm:$0xff] %vm729_vm1, %v5492_v52 }
 0x4d2   : > { %v7582_v29 = vpop.f32.mrb[206].mxu0 }
 0x4d3   : > { %v5495_v61 = vadd.f32 %v7582_v29, %v5463_v59  ;;  %v5416_v22 = vpop.f32.mrb[207].mxu0 }
 0x4d4   : > { %v5494_v20 = vadd.f32 %v5462_v24, %v5416_v22 }
 0x4d5   : > { %5527 = vst.msk [vmem:[%s10790_s14 + $0xf8] sm:$0xff] %vm729_vm1, %v5495_v61 }
 0x4d6   : > { %5526 = vst.msk [vmem:[%s10790_s14 + $0xf0] sm:$0xff] %vm729_vm1, %v5494_v20 }
 0x4d7 PF: > { %s21_s17 = sadd.s32 1, %s8468_s17  }
 0x4d8   : > { %p18_p4 = scmp.ge.s32.totalorder %s21_s17, 4  }
 0x4da   :  { %20 = sbr.rel (!%p18_p4) target bundleno = 1 (0x1), region = 111 }

</bundles_post_ra>
